<compile_context>
chip_gen: v5e
topology: v5e:2x2
jax: 0.10.0
libtpu: 0.0.40
codegen_flags: <defaults>
</compile_context>

<pallas_src>
import jax
import jax.numpy as jnp
import numpy as np
from jax import lax
from jax.experimental import pallas as pl
from jax.experimental.pallas import tpu as pltpu

LANE = 128
SUBLANE = 8


def _round_up(x, m):
    return (x + m - 1) // m * m


def _choose_time_chunk(S, max_chunk=16):
    # Largest divisor of S <= max_chunk (keeps SP == S, so no masking needed).
    for t in range(min(S, max_chunk), 0, -1):
        if S % t == 0:
            return t
    return 1


def _choose_batch_tile(BP, max_tile=64):
    # Largest multiple of 8 that divides the (already 8-padded) batch.
    for t in range(min(BP, max_tile), 0, -SUBLANE):
        if BP % t == 0 and t % SUBLANE == 0:
            return t
    return SUBLANE


# --------------------------------------------------------------------------------
# LSTM layer kernel: grid = (batch_tiles [parallel], time_chunks [arbitrary]).
# h/c carried in VMEM scratch across time chunks; gate order i, f, g, o (torch).
# --------------------------------------------------------------------------------
def _lstm_chunk_kernel(x_ref, wih_ref, whh_ref, b_ref, out_ref, h_scr, c_scr, gx_scr):
    chunk = pl.program_id(1)

    @pl.when(chunk == 0)
    def _():
        h_scr[...] = jnp.zeros_like(h_scr)
        c_scr[...] = jnp.zeros_like(c_scr)

    T, B, Ein = x_ref.shape
    HP = h_scr.shape[-1]

    # Hoisted input projection: one MXU-friendly matmul for the whole chunk.
    x2 = x_ref[...].reshape(T * B, Ein)
    gx = jnp.dot(x2, wih_ref[...], preferred_element_type=jnp.float32) + b_ref[...]
    gx_scr[...] = gx.reshape(T, B, 4 * HP)

    def step(t, carry):
        h, c = carry
        gates = gx_scr[t] + jnp.dot(h, whh_ref[...],
                                    preferred_element_type=jnp.float32)  # (B, 4*HP)
        # HP is a multiple of 128, so each gate slice is a lane-aligned view.
        i_g = jax.nn.sigmoid(gates[:, 0 * HP:1 * HP])
        f_g = jax.nn.sigmoid(gates[:, 1 * HP:2 * HP])
        g_g = jnp.tanh(gates[:, 2 * HP:3 * HP])
        o_g = jax.nn.sigmoid(gates[:, 3 * HP:4 * HP])
        c_new = f_g * c + i_g * g_g
        h_new = o_g * jnp.tanh(c_new)
        out_ref[t] = h_new
        return h_new, c_new

    h, c = lax.fori_loop(0, T, step, (h_scr[...], c_scr[...]), unroll=True)
    h_scr[...] = h
    c_scr[...] = c


def lstm_layer(x, wih_p, whh_p, b_p, *, time_chunk, batch_tile):
    S, BP, Ein = x.shape
    HP = whh_p.shape[0]
    T, BT = time_chunk, batch_tile
    return pl.pallas_call(
        _lstm_chunk_kernel,
        out_shape=jax.ShapeDtypeStruct((S, BP, HP), jnp.float32),
        grid_spec=pltpu.PrefetchScalarGridSpec(
            num_scalar_prefetch=0,
            grid=(BP // BT, S // T),
            in_specs=[
                pl.BlockSpec((T, BT, Ein), lambda b, c: (c, b, 0)),
                pl.BlockSpec((Ein, 4 * HP), lambda b, c: (0, 0)),
                pl.BlockSpec((HP, 4 * HP), lambda b, c: (0, 0)),
                pl.BlockSpec((1, 4 * HP), lambda b, c: (0, 0)),
            ],
            out_specs=pl.BlockSpec((T, BT, HP), lambda b, c: (c, b, 0)),
            scratch_shapes=[
                pltpu.VMEM((BT, HP), jnp.float32),        # h carry
                pltpu.VMEM((BT, HP), jnp.float32),        # c carry
                pltpu.VMEM((T, BT, 4 * HP), jnp.float32),  # precomputed gate inputs
            ],
        ),
        compiler_params=pltpu.CompilerParams(
            # batch axis parallel (megacore / v7x), time axis must stay arbitrary
            # because h/c scratch carries across chunks.
            dimension_semantics=("parallel", "arbitrary"),
            vmem_limit_bytes=32 * 1024 * 1024,
        ),
    )(x, wih_p, whh_p, b_p)


# --------------------------------------------------------------------------------
# Fused attention + FC kernel. Consumes time-major (S, B, HP), softmax over time.
# wqk = W_q @ W_k is pre-folded; logits and context use VPU/XLU (no degenerate
# MXU pushes). Gridded over batch tiles.
# --------------------------------------------------------------------------------
def _attn_fc_kernel(x_ref, wv_ref, wqk_ref, fcw_ref, fcb_ref, out_ref):
    S, B, HP = x_ref.shape
    x = x_ref[...]
    v = jnp.dot(x.reshape(S * B, HP), wv_ref[...],
                preferred_element_type=jnp.float32).reshape(S, B, HP)
    att = jnp.sum(x * wqk_ref[...], axis=-1)            # (S, B) logits on VPU/XLU
    att = att - jnp.max(att, axis=0, keepdims=True)     # softmax over the seq axis
    e = jnp.exp(att)
    score = e / jnp.sum(e, axis=0, keepdims=True)       # (S, B)
    ctx = jnp.sum(score[:, :, None] * v, axis=0)        # (B, HP)
    out_ref[...] = (jnp.dot(ctx, fcw_ref[...], preferred_element_type=jnp.float32)
                    + fcb_ref[...])


def attn_fc(x, wv_p, wqk_p, fcw_p, fcb_p, *, batch_tile):
    S, BP, HP = x.shape
    OP = fcw_p.shape[1]
    BT = batch_tile
    return pl.pallas_call(
        _attn_fc_kernel,
        out_shape=jax.ShapeDtypeStruct((BP, OP), jnp.float32),
        grid_spec=pltpu.PrefetchScalarGridSpec(
            num_scalar_prefetch=0,
            grid=(BP // BT,),
            in_specs=[
                pl.BlockSpec((S, BT, HP), lambda b: (0, b, 0)),
                pl.BlockSpec((HP, HP), lambda b: (0, 0)),
                pl.BlockSpec((1, HP), lambda b: (0, 0)),
                pl.BlockSpec((HP, OP), lambda b: (0, 0)),
                pl.BlockSpec((1, OP), lambda b: (0, 0)),
            ],
            out_specs=pl.BlockSpec((BT, OP), lambda b: (b, 0)),
        ),
        compiler_params=pltpu.CompilerParams(
            dimension_semantics=("parallel",),
            vmem_limit_bytes=32 * 1024 * 1024,
        ),
    )(x, wv_p, wqk_p, fcw_p, fcb_p)


# --------------------------------------------------------------------------------
# Parameter init (torch-like shapes) and zero-padded / folded kernel parameters.
# --------------------------------------------------------------------------------
def make_params(key, vocab, E, H, O, L):
    kit = iter(jax.random.split(key, 4 + 3 * L + 5))
    std = 1.0 / np.sqrt(H)
    p = {'emb': jax.random.normal(next(kit), (vocab, E), jnp.float32)}
    lstm = []
    for l in range(L):
        in_dim = E if l == 0 else H
        wih_t = jax.random.uniform(next(kit), (in_dim, 4 * H), jnp.float32, -std, std)
        whh_t = jax.random.uniform(next(kit), (H, 4 * H), jnp.float32, -std, std)
        b = jax.random.uniform(next(kit), (1, 4 * H), jnp.float32, -std, std)  # b_ih+b_hh
        lstm.append((wih_t, whh_t, b))
    p['lstm'] = lstm
    p['W_q'] = jax.random.uniform(next(kit), (H, H), jnp.float32, -0.1, 0.1)
    p['W_k'] = jax.random.uniform(next(kit), (H, 1), jnp.float32, -0.1, 0.1)
    p['W_v'] = jax.random.uniform(next(kit), (H, H), jnp.float32, -0.1, 0.1)
    p['fc_w'] = jax.random.uniform(next(kit), (H, O), jnp.float32, -std, std)
    p['fc_b'] = jax.random.uniform(next(kit), (1, O), jnp.float32, -std, std)
    return p


def pad_kernel_params(params, E, H, O):
    """Zero-pad to lane/sublane-friendly shapes and fold W_q @ W_k.

    Each LSTM gate is placed at a 128-lane-aligned column block so in-kernel gate
    slices are free; zero padding keeps the math identical to the unpadded model
    (padded h/c lanes provably stay zero).
    """
    EP, HP, OP = _round_up(E, LANE), _round_up(H, LANE), _round_up(O, LANE)

    def pad_gate_cols(w):                                  # (r, 4H) -> (r, 4*HP)
        out = jnp.zeros((w.shape[0], 4 * HP), jnp.float32)
        for g in range(4):
            out = out.at[:, g * HP:g * HP + H].set(w[:, g * H:(g + 1) * H])
        return out

    def pad_rows(w, new_rows):
        return jnp.zeros((new_rows, w.shape[1]), jnp.float32).at[:w.shape[0]].set(w)

    kp = {'emb': jnp.zeros((params['emb'].shape[0], EP), jnp.float32)
                    .at[:, :E].set(params['emb'])}
    lstm = []
    for l, (wih_t, whh_t, b) in enumerate(params['lstm']):
        in_p = EP if l == 0 else HP
        lstm.append((pad_rows(pad_gate_cols(wih_t), in_p),
                     pad_rows(pad_gate_cols(whh_t), HP),
                     pad_gate_cols(b)))
    kp['lstm'] = lstm
    wqk = (params['W_q'] @ params['W_k'])[:, 0]            # fold: q only feeds q @ W_k
    kp['wqk'] = jnp.zeros((1, HP), jnp.float32).at[0, :H].set(wqk)
    kp['W_v'] = jnp.zeros((HP, HP), jnp.float32).at[:H, :H].set(params['W_v'])
    kp['fc_w'] = jnp.zeros((HP, OP), jnp.float32).at[:H, :O].set(params['fc_w'])
    kp['fc_b'] = jnp.zeros((1, OP), jnp.float32).at[:, :O].set(params['fc_b'])
    return kp, (EP, HP, OP)


# --------------------------------------------------------------------------------
# Full forward: embedding gather in JAX glue, recurrence + attention+FC in Pallas.
# --------------------------------------------------------------------------------
def lstm_forward(kparams, text, *, batch, out_dim, time_chunk=None):
    S, B_real = text.shape
    BP = _round_up(B_real, SUBLANE)
    text_p = jnp.zeros((S, BP), jnp.int32).at[:, :B_real].set(text)
    x = jnp.take(kparams['emb'], text_p, axis=0)           # (S, BP, EP) gather (XLA glue)

    T = time_chunk if time_chunk is not None else _choose_time_chunk(S)
    BT = _choose_batch_tile(BP)
    for (wih_p, whh_p, b_p) in kparams['lstm']:
        x = lstm_layer(x, wih_p, whh_p, b_p, time_chunk=T, batch_tile=BT)
    # TODO(synk): nn.LSTM inter-layer dropout is train-only; eval (identity) used.
    out_p = attn_fc(x, kparams['W_v'], kparams['wqk'], kparams['fc_w'], kparams['fc_b'],
                    batch_tile=BT)                         # (BP, OP)
    return out_p[:batch, :out_dim]


# --------------------------------------------------------------------------------
# Pure-JAX reference (unpadded, torch semantics) for the correctness check.
# --------------------------------------------------------------------------------
def reference_forward(params, text):
    x = jnp.take(params['emb'], text, axis=0)
    for (wih_t, whh_t, b) in params['lstm']:
        H = whh_t.shape[0]

        def step(carry, x_t, wih_t=wih_t, whh_t=whh_t, b=b, H=H):
            h, c = carry
            gates = x_t @ wih_t + h @ whh_t + b
            i = jax.nn.sigmoid(gates[:, :H])
            f = jax.nn.sigmoid(gates[:, H:2 * H])
            g = jnp.tanh(gates[:, 2 * H:3 * H])
            o = jax.nn.sigmoid(gates[:, 3 * H:])
            c2 = f * c + i * g
            h2 = o * jnp.tanh(c2)
            return (h2, c2), h2

        Bsz = x.shape[1]
        init = (jnp.zeros((Bsz, H), jnp.float32), jnp.zeros((Bsz, H), jnp.float32))
        _, x = jax.lax.scan(step, init, x)
    xb = jnp.transpose(x, (1, 0, 2))
    Q = xb @ params['W_q']
    V = xb @ params['W_v']
    att = Q @ params['W_k']                                # (B, S, 1)
    score = jax.nn.softmax(att, axis=1)
    scored = jnp.transpose(V, (0, 2, 1)) @ score           # (B, H, 1)
    return scored[:, :, 0] @ params['fc_w'] + params['fc_b']


if __name__ == "__main__":
    vocab, E, H, O, L = 50, 16, 32, 4, 2
    S, B = 8, 2
    key = jax.random.PRNGKey(0)
    pkey, tkey = jax.random.split(key)
    params = make_params(pkey, vocab, E, H, O, L)
    text = jax.random.randint(tkey, (S, B), 0, vocab, dtype=jnp.int32)

    kparams, _ = pad_kernel_params(params, E, H, O)
    ref = reference_forward(params, text)

    # Default chunking (single chunk for S=8).
    out = jax.block_until_ready(lstm_forward(kparams, text, batch=B, out_dim=O))
    np.testing.assert_allclose(np.asarray(out), np.asarray(ref), atol=1e-4, rtol=1e-4)

    # Also exercise the multi-chunk h/c carry path explicitly.
    out2 = jax.block_until_ready(
        lstm_forward(kparams, text, batch=B, out_dim=O, time_chunk=2))
    np.testing.assert_allclose(np.asarray(out2), np.asarray(ref), atol=1e-4, rtol=1e-4)

    print("KERNEL_OK")
</pallas_src>

<mosaic_0001>
module attributes {stable_mosaic.version = 11 : i64} {
  func.func @_lstm_chunk_kernel(%arg0: i32, %arg1: i32, %arg2: memref<8x8x128xf32, #tpu.memory_space<vmem>>, %arg3: memref<128x512xf32, #tpu.memory_space<vmem>>, %arg4: memref<128x512xf32, #tpu.memory_space<vmem>>, %arg5: memref<1x512xf32, #tpu.memory_space<vmem>>, %arg6: memref<8x8x128xf32, #tpu.memory_space<vmem>>, %arg7: memref<8x128xf32, #tpu.memory_space<vmem>>, %arg8: memref<8x128xf32, #tpu.memory_space<vmem>>, %arg9: memref<8x8x512xf32, #tpu.memory_space<vmem>>) attributes {dimension_semantics = [#tpu.dimension_semantics<parallel>, #tpu.dimension_semantics<arbitrary>], iteration_bounds = array<i64: 1, 1>, scalar_prefetch = 0 : i64, scratch_operands = 3 : i64, tpu.core_type = #tpu.core_type<tc>, window_params = [{transform_indices = @transform_0, window_bounds = array<i64: 8, 8, 128>}, {pipeline_mode = #tpu.pipeline_mode<synchronous>, transform_indices = @transform_1, window_bounds = array<i64: 128, 512>}, {pipeline_mode = #tpu.pipeline_mode<synchronous>, transform_indices = @transform_2, window_bounds = array<i64: 128, 512>}, {pipeline_mode = #tpu.pipeline_mode<synchronous>, transform_indices = @transform_3, window_bounds = array<i64: 1, 512>}, {transform_indices = @transform_4, window_bounds = array<i64: 8, 8, 128>}]} {
    %c0_i32 = arith.constant 0 : i32
    %0 = arith.cmpi eq, %arg1, %c0_i32 : i32
    %1 = arith.extui %0 : i1 to i32
    %c0_i32_0 = arith.constant 0 : i32
    %2 = arith.cmpi ne, %1, %c0_i32_0 : i32
    scf.if %2 {
      %cst_99 = arith.constant 0.000000e+00 : f32
      %296 = vector.broadcast %cst_99 : f32 to vector<8x128xf32>
      %c0_100 = arith.constant 0 : index
      %c0_101 = arith.constant 0 : index
      %297 = vector.load %arg7[%c0_100, %c0_101] : memref<8x128xf32, #tpu.memory_space<vmem>>, vector<8x128xf32>
      tpu.vector_store %arg7[%c0_100, %c0_101], %296 {strides = array<i32>} : memref<8x128xf32, #tpu.memory_space<vmem>>, vector<8x128xf32>,
      %cst_102 = arith.constant 0.000000e+00 : f32
      %298 = vector.broadcast %cst_102 : f32 to vector<8x128xf32>
      %c0_103 = arith.constant 0 : index
      %c0_104 = arith.constant 0 : index
      %299 = vector.load %arg8[%c0_103, %c0_104] : memref<8x128xf32, #tpu.memory_space<vmem>>, vector<8x128xf32>
      tpu.vector_store %arg8[%c0_103, %c0_104], %298 {strides = array<i32>} : memref<8x128xf32, #tpu.memory_space<vmem>>, vector<8x128xf32>,
    } else {
    }
    %c0 = arith.constant 0 : index
    %c0_1 = arith.constant 0 : index
    %c0_2 = arith.constant 0 : index
    %3 = vector.load %arg2[%c0, %c0_1, %c0_2] : memref<8x8x128xf32, #tpu.memory_space<vmem>>, vector<8x8x128xf32>
    %4 = vector.shape_cast %3 : vector<8x8x128xf32> to vector<64x128xf32>
    %c0_3 = arith.constant 0 : index
    %c0_4 = arith.constant 0 : index
    %5 = vector.load %arg3[%c0_3, %c0_4] : memref<128x512xf32, #tpu.memory_space<vmem>>, vector<128x512xf32>
    %cst = arith.constant dense<0.000000e+00> : vector<64x512xf32>
    %6 = tpu.matmul %4, %5, %cst {dimension_numbers = #tpu.dot_dimension_numbers<[1], [0], [0], [1], [0, 0, 1, 1], [], []>} : vector<64x128xf32>, vector<128x512xf32>, vector<64x512xf32> -> vector<64x512xf32>
    %c0_5 = arith.constant 0 : index
    %c0_6 = arith.constant 0 : index
    %7 = vector.load %arg5[%c0_5, %c0_6] : memref<1x512xf32, #tpu.memory_space<vmem>>, vector<1x512xf32>
    %8 = vector.broadcast %7 : vector<1x512xf32> to vector<64x512xf32>
    %9 = arith.addf %6, %8 : vector<64x512xf32>
    %10 = vector.shape_cast %9 : vector<64x512xf32> to vector<8x8x512xf32>
    %c0_7 = arith.constant 0 : index
    %c0_8 = arith.constant 0 : index
    %c0_9 = arith.constant 0 : index
    %11 = vector.load %arg9[%c0_7, %c0_8, %c0_9] : memref<8x8x512xf32, #tpu.memory_space<vmem>>, vector<8x8x512xf32>
    tpu.vector_store %arg9[%c0_7, %c0_8, %c0_9], %10 {strides = array<i32>} : memref<8x8x512xf32, #tpu.memory_space<vmem>>, vector<8x8x512xf32>,
    %c0_10 = arith.constant 0 : index
    %c0_11 = arith.constant 0 : index
    %12 = vector.load %arg7[%c0_10, %c0_11] : memref<8x128xf32, #tpu.memory_space<vmem>>, vector<8x128xf32>
    %c0_12 = arith.constant 0 : index
    %c0_13 = arith.constant 0 : index
    %13 = vector.load %arg8[%c0_12, %c0_13] : memref<8x128xf32, #tpu.memory_space<vmem>>, vector<8x128xf32>
    %c0_i32_14 = arith.constant 0 : i32
    %14 = arith.index_cast %c0_i32_14 : i32 to index
    %c0_15 = arith.constant 0 : index
    %c0_16 = arith.constant 0 : index
    %15 = vector.load %arg9[%14, %c0_15, %c0_16] : memref<8x8x512xf32, #tpu.memory_space<vmem>>, vector<1x8x512xf32>
    %16 = vector.shape_cast %15 : vector<1x8x512xf32> to vector<8x512xf32>
    %c0_17 = arith.constant 0 : index
    %c0_18 = arith.constant 0 : index
    %17 = vector.load %arg4[%c0_17, %c0_18] : memref<128x512xf32, #tpu.memory_space<vmem>>, vector<128x512xf32>
    %cst_19 = arith.constant dense<0.000000e+00> : vector<8x512xf32>
    %18 = tpu.matmul %12, %17, %cst_19 {dimension_numbers = #tpu.dot_dimension_numbers<[1], [0], [0], [1], [0, 0, 1, 1], [], []>} : vector<8x128xf32>, vector<128x512xf32>, vector<8x512xf32> -> vector<8x512xf32>
    %19 = arith.addf %16, %18 : vector<8x512xf32>
    %20 = vector.extract_strided_slice %19 {offsets = [0, 0], sizes = [8, 128], strides = [1, 1]} : vector<8x512xf32> to vector<8x128xf32>
    %21 = arith.negf %20 : vector<8x128xf32>
    %22 = math.exp %21 : vector<8x128xf32>
    %cst_20 = arith.constant 1.000000e+00 : f32
    %23 = vector.broadcast %cst_20 : f32 to vector<8x128xf32>
    %24 = arith.addf %23, %22 : vector<8x128xf32>
    %25 = arith.divf %23, %24 : vector<8x128xf32>
    %26 = vector.extract_strided_slice %19 {offsets = [0, 128], sizes = [8, 128], strides = [1, 1]} : vector<8x512xf32> to vector<8x128xf32>
    %27 = arith.negf %26 : vector<8x128xf32>
    %28 = math.exp %27 : vector<8x128xf32>
    %cst_21 = arith.constant 1.000000e+00 : f32
    %29 = vector.broadcast %cst_21 : f32 to vector<8x128xf32>
    %30 = arith.addf %29, %28 : vector<8x128xf32>
    %31 = arith.divf %29, %30 : vector<8x128xf32>
    %32 = vector.extract_strided_slice %19 {offsets = [0, 256], sizes = [8, 128], strides = [1, 1]} : vector<8x512xf32> to vector<8x128xf32>
    %33 = math.tanh %32 : vector<8x128xf32>
    %34 = vector.extract_strided_slice %19 {offsets = [0, 384], sizes = [8, 128], strides = [1, 1]} : vector<8x512xf32> to vector<8x128xf32>
    %35 = arith.negf %34 : vector<8x128xf32>
    %36 = math.exp %35 : vector<8x128xf32>
    %cst_22 = arith.constant 1.000000e+00 : f32
    %37 = vector.broadcast %cst_22 : f32 to vector<8x128xf32>
    %38 = arith.addf %37, %36 : vector<8x128xf32>
    %39 = arith.divf %37, %38 : vector<8x128xf32>
    %40 = arith.mulf %31, %13 : vector<8x128xf32>
    %41 = arith.mulf %25, %33 : vector<8x128xf32>
    %42 = arith.addf %40, %41 : vector<8x128xf32>
    %43 = math.tanh %42 : vector<8x128xf32>
    %44 = arith.mulf %39, %43 : vector<8x128xf32>
    %45 = arith.index_cast %c0_i32_14 : i32 to index
    %c0_23 = arith.constant 0 : index
    %c0_24 = arith.constant 0 : index
    %46 = vector.load %arg6[%45, %c0_23, %c0_24] : memref<8x8x128xf32, #tpu.memory_space<vmem>>, vector<1x8x128xf32>
    %47 = vector.shape_cast %46 : vector<1x8x128xf32> to vector<8x128xf32>
    %48 = vector.shape_cast %44 : vector<8x128xf32> to vector<1x8x128xf32>
    tpu.vector_store %arg6[%45, %c0_23, %c0_24], %48 {strides = array<i32>} : memref<8x8x128xf32, #tpu.memory_space<vmem>>, vector<1x8x128xf32>,
    %c1_i32 = arith.constant 1 : i32
    %49 = arith.index_cast %c1_i32 : i32 to index
    %c0_25 = arith.constant 0 : index
    %c0_26 = arith.constant 0 : index
    %50 = vector.load %arg9[%49, %c0_25, %c0_26] : memref<8x8x512xf32, #tpu.memory_space<vmem>>, vector<1x8x512xf32>
    %51 = vector.shape_cast %50 : vector<1x8x512xf32> to vector<8x512xf32>
    %c0_27 = arith.constant 0 : index
    %c0_28 = arith.constant 0 : index
    %52 = vector.load %arg4[%c0_27, %c0_28] : memref<128x512xf32, #tpu.memory_space<vmem>>, vector<128x512xf32>
    %cst_29 = arith.constant dense<0.000000e+00> : vector<8x512xf32>
    %53 = tpu.matmul %44, %52, %cst_29 {dimension_numbers = #tpu.dot_dimension_numbers<[1], [0], [0], [1], [0, 0, 1, 1], [], []>} : vector<8x128xf32>, vector<128x512xf32>, vector<8x512xf32> -> vector<8x512xf32>
    %54 = arith.addf %51, %53 : vector<8x512xf32>
    %55 = vector.extract_strided_slice %54 {offsets = [0, 0], sizes = [8, 128], strides = [1, 1]} : vector<8x512xf32> to vector<8x128xf32>
    %56 = arith.negf %55 : vector<8x128xf32>
    %57 = math.exp %56 : vector<8x128xf32>
    %cst_30 = arith.constant 1.000000e+00 : f32
    %58 = vector.broadcast %cst_30 : f32 to vector<8x128xf32>
    %59 = arith.addf %58, %57 : vector<8x128xf32>
    %60 = arith.divf %58, %59 : vector<8x128xf32>
    %61 = vector.extract_strided_slice %54 {offsets = [0, 128], sizes = [8, 128], strides = [1, 1]} : vector<8x512xf32> to vector<8x128xf32>
    %62 = arith.negf %61 : vector<8x128xf32>
    %63 = math.exp %62 : vector<8x128xf32>
    %cst_31 = arith.constant 1.000000e+00 : f32
    %64 = vector.broadcast %cst_31 : f32 to vector<8x128xf32>
    %65 = arith.addf %64, %63 : vector<8x128xf32>
    %66 = arith.divf %64, %65 : vector<8x128xf32>
    %67 = vector.extract_strided_slice %54 {offsets = [0, 256], sizes = [8, 128], strides = [1, 1]} : vector<8x512xf32> to vector<8x128xf32>
    %68 = math.tanh %67 : vector<8x128xf32>
    %69 = vector.extract_strided_slice %54 {offsets = [0, 384], sizes = [8, 128], strides = [1, 1]} : vector<8x512xf32> to vector<8x128xf32>
    %70 = arith.negf %69 : vector<8x128xf32>
    %71 = math.exp %70 : vector<8x128xf32>
    %cst_32 = arith.constant 1.000000e+00 : f32
    %72 = vector.broadcast %cst_32 : f32 to vector<8x128xf32>
    %73 = arith.addf %72, %71 : vector<8x128xf32>
    %74 = arith.divf %72, %73 : vector<8x128xf32>
    %75 = arith.mulf %66, %42 : vector<8x128xf32>
    %76 = arith.mulf %60, %68 : vector<8x128xf32>
    %77 = arith.addf %75, %76 : vector<8x128xf32>
    %78 = math.tanh %77 : vector<8x128xf32>
    %79 = arith.mulf %74, %78 : vector<8x128xf32>
    %80 = arith.index_cast %c1_i32 : i32 to index
    %c0_33 = arith.constant 0 : index
    %c0_34 = arith.constant 0 : index
    %81 = vector.load %arg6[%80, %c0_33, %c0_34] : memref<8x8x128xf32, #tpu.memory_space<vmem>>, vector<1x8x128xf32>
    %82 = vector.shape_cast %81 : vector<1x8x128xf32> to vector<8x128xf32>
    %83 = vector.shape_cast %79 : vector<8x128xf32> to vector<1x8x128xf32>
    tpu.vector_store %arg6[%80, %c0_33, %c0_34], %83 {strides = array<i32>} : memref<8x8x128xf32, #tpu.memory_space<vmem>>, vector<1x8x128xf32>,
    %c2_i32 = arith.constant 2 : i32
    %84 = arith.index_cast %c2_i32 : i32 to index
    %c0_35 = arith.constant 0 : index
    %c0_36 = arith.constant 0 : index
    %85 = vector.load %arg9[%84, %c0_35, %c0_36] : memref<8x8x512xf32, #tpu.memory_space<vmem>>, vector<1x8x512xf32>
    %86 = vector.shape_cast %85 : vector<1x8x512xf32> to vector<8x512xf32>
    %c0_37 = arith.constant 0 : index
    %c0_38 = arith.constant 0 : index
    %87 = vector.load %arg4[%c0_37, %c0_38] : memref<128x512xf32, #tpu.memory_space<vmem>>, vector<128x512xf32>
    %cst_39 = arith.constant dense<0.000000e+00> : vector<8x512xf32>
    %88 = tpu.matmul %79, %87, %cst_39 {dimension_numbers = #tpu.dot_dimension_numbers<[1], [0], [0], [1], [0, 0, 1, 1], [], []>} : vector<8x128xf32>, vector<128x512xf32>, vector<8x512xf32> -> vector<8x512xf32>
    %89 = arith.addf %86, %88 : vector<8x512xf32>
    %90 = vector.extract_strided_slice %89 {offsets = [0, 0], sizes = [8, 128], strides = [1, 1]} : vector<8x512xf32> to vector<8x128xf32>
    %91 = arith.negf %90 : vector<8x128xf32>
    %92 = math.exp %91 : vector<8x128xf32>
    %cst_40 = arith.constant 1.000000e+00 : f32
    %93 = vector.broadcast %cst_40 : f32 to vector<8x128xf32>
    %94 = arith.addf %93, %92 : vector<8x128xf32>
    %95 = arith.divf %93, %94 : vector<8x128xf32>
    %96 = vector.extract_strided_slice %89 {offsets = [0, 128], sizes = [8, 128], strides = [1, 1]} : vector<8x512xf32> to vector<8x128xf32>
    %97 = arith.negf %96 : vector<8x128xf32>
    %98 = math.exp %97 : vector<8x128xf32>
    %cst_41 = arith.constant 1.000000e+00 : f32
    %99 = vector.broadcast %cst_41 : f32 to vector<8x128xf32>
    %100 = arith.addf %99, %98 : vector<8x128xf32>
    %101 = arith.divf %99, %100 : vector<8x128xf32>
    %102 = vector.extract_strided_slice %89 {offsets = [0, 256], sizes = [8, 128], strides = [1, 1]} : vector<8x512xf32> to vector<8x128xf32>
    %103 = math.tanh %102 : vector<8x128xf32>
    %104 = vector.extract_strided_slice %89 {offsets = [0, 384], sizes = [8, 128], strides = [1, 1]} : vector<8x512xf32> to vector<8x128xf32>
    %105 = arith.negf %104 : vector<8x128xf32>
    %106 = math.exp %105 : vector<8x128xf32>
    %cst_42 = arith.constant 1.000000e+00 : f32
    %107 = vector.broadcast %cst_42 : f32 to vector<8x128xf32>
    %108 = arith.addf %107, %106 : vector<8x128xf32>
    %109 = arith.divf %107, %108 : vector<8x128xf32>
    %110 = arith.mulf %101, %77 : vector<8x128xf32>
    %111 = arith.mulf %95, %103 : vector<8x128xf32>
    %112 = arith.addf %110, %111 : vector<8x128xf32>
    %113 = math.tanh %112 : vector<8x128xf32>
    %114 = arith.mulf %109, %113 : vector<8x128xf32>
    %115 = arith.index_cast %c2_i32 : i32 to index
    %c0_43 = arith.constant 0 : index
    %c0_44 = arith.constant 0 : index
    %116 = vector.load %arg6[%115, %c0_43, %c0_44] : memref<8x8x128xf32, #tpu.memory_space<vmem>>, vector<1x8x128xf32>
    %117 = vector.shape_cast %116 : vector<1x8x128xf32> to vector<8x128xf32>
    %118 = vector.shape_cast %114 : vector<8x128xf32> to vector<1x8x128xf32>
    tpu.vector_store %arg6[%115, %c0_43, %c0_44], %118 {strides = array<i32>} : memref<8x8x128xf32, #tpu.memory_space<vmem>>, vector<1x8x128xf32>,
    %c3_i32 = arith.constant 3 : i32
    %119 = arith.index_cast %c3_i32 : i32 to index
    %c0_45 = arith.constant 0 : index
    %c0_46 = arith.constant 0 : index
    %120 = vector.load %arg9[%119, %c0_45, %c0_46] : memref<8x8x512xf32, #tpu.memory_space<vmem>>, vector<1x8x512xf32>
    %121 = vector.shape_cast %120 : vector<1x8x512xf32> to vector<8x512xf32>
    %c0_47 = arith.constant 0 : index
    %c0_48 = arith.constant 0 : index
    %122 = vector.load %arg4[%c0_47, %c0_48] : memref<128x512xf32, #tpu.memory_space<vmem>>, vector<128x512xf32>
    %cst_49 = arith.constant dense<0.000000e+00> : vector<8x512xf32>
    %123 = tpu.matmul %114, %122, %cst_49 {dimension_numbers = #tpu.dot_dimension_numbers<[1], [0], [0], [1], [0, 0, 1, 1], [], []>} : vector<8x128xf32>, vector<128x512xf32>, vector<8x512xf32> -> vector<8x512xf32>
    %124 = arith.addf %121, %123 : vector<8x512xf32>
    %125 = vector.extract_strided_slice %124 {offsets = [0, 0], sizes = [8, 128], strides = [1, 1]} : vector<8x512xf32> to vector<8x128xf32>
    %126 = arith.negf %125 : vector<8x128xf32>
    %127 = math.exp %126 : vector<8x128xf32>
    %cst_50 = arith.constant 1.000000e+00 : f32
    %128 = vector.broadcast %cst_50 : f32 to vector<8x128xf32>
    %129 = arith.addf %128, %127 : vector<8x128xf32>
    %130 = arith.divf %128, %129 : vector<8x128xf32>
    %131 = vector.extract_strided_slice %124 {offsets = [0, 128], sizes = [8, 128], strides = [1, 1]} : vector<8x512xf32> to vector<8x128xf32>
    %132 = arith.negf %131 : vector<8x128xf32>
    %133 = math.exp %132 : vector<8x128xf32>
    %cst_51 = arith.constant 1.000000e+00 : f32
    %134 = vector.broadcast %cst_51 : f32 to vector<8x128xf32>
    %135 = arith.addf %134, %133 : vector<8x128xf32>
    %136 = arith.divf %134, %135 : vector<8x128xf32>
    %137 = vector.extract_strided_slice %124 {offsets = [0, 256], sizes = [8, 128], strides = [1, 1]} : vector<8x512xf32> to vector<8x128xf32>
    %138 = math.tanh %137 : vector<8x128xf32>
    %139 = vector.extract_strided_slice %124 {offsets = [0, 384], sizes = [8, 128], strides = [1, 1]} : vector<8x512xf32> to vector<8x128xf32>
    %140 = arith.negf %139 : vector<8x128xf32>
    %141 = math.exp %140 : vector<8x128xf32>
    %cst_52 = arith.constant 1.000000e+00 : f32
    %142 = vector.broadcast %cst_52 : f32 to vector<8x128xf32>
    %143 = arith.addf %142, %141 : vector<8x128xf32>
    %144 = arith.divf %142, %143 : vector<8x128xf32>
    %145 = arith.mulf %136, %112 : vector<8x128xf32>
    %146 = arith.mulf %130, %138 : vector<8x128xf32>
    %147 = arith.addf %145, %146 : vector<8x128xf32>
    %148 = math.tanh %147 : vector<8x128xf32>
    %149 = arith.mulf %144, %148 : vector<8x128xf32>
    %150 = arith.index_cast %c3_i32 : i32 to index
    %c0_53 = arith.constant 0 : index
    %c0_54 = arith.constant 0 : index
    %151 = vector.load %arg6[%150, %c0_53, %c0_54] : memref<8x8x128xf32, #tpu.memory_space<vmem>>, vector<1x8x128xf32>
    %152 = vector.shape_cast %151 : vector<1x8x128xf32> to vector<8x128xf32>
    %153 = vector.shape_cast %149 : vector<8x128xf32> to vector<1x8x128xf32>
    tpu.vector_store %arg6[%150, %c0_53, %c0_54], %153 {strides = array<i32>} : memref<8x8x128xf32, #tpu.memory_space<vmem>>, vector<1x8x128xf32>,
    %c4_i32 = arith.constant 4 : i32
    %154 = arith.index_cast %c4_i32 : i32 to index
    %c0_55 = arith.constant 0 : index
    %c0_56 = arith.constant 0 : index
    %155 = vector.load %arg9[%154, %c0_55, %c0_56] : memref<8x8x512xf32, #tpu.memory_space<vmem>>, vector<1x8x512xf32>
    %156 = vector.shape_cast %155 : vector<1x8x512xf32> to vector<8x512xf32>
    %c0_57 = arith.constant 0 : index
    %c0_58 = arith.constant 0 : index
    %157 = vector.load %arg4[%c0_57, %c0_58] : memref<128x512xf32, #tpu.memory_space<vmem>>, vector<128x512xf32>
    %cst_59 = arith.constant dense<0.000000e+00> : vector<8x512xf32>
    %158 = tpu.matmul %149, %157, %cst_59 {dimension_numbers = #tpu.dot_dimension_numbers<[1], [0], [0], [1], [0, 0, 1, 1], [], []>} : vector<8x128xf32>, vector<128x512xf32>, vector<8x512xf32> -> vector<8x512xf32>
    %159 = arith.addf %156, %158 : vector<8x512xf32>
    %160 = vector.extract_strided_slice %159 {offsets = [0, 0], sizes = [8, 128], strides = [1, 1]} : vector<8x512xf32> to vector<8x128xf32>
    %161 = arith.negf %160 : vector<8x128xf32>
    %162 = math.exp %161 : vector<8x128xf32>
    %cst_60 = arith.constant 1.000000e+00 : f32
    %163 = vector.broadcast %cst_60 : f32 to vector<8x128xf32>
    %164 = arith.addf %163, %162 : vector<8x128xf32>
    %165 = arith.divf %163, %164 : vector<8x128xf32>
    %166 = vector.extract_strided_slice %159 {offsets = [0, 128], sizes = [8, 128], strides = [1, 1]} : vector<8x512xf32> to vector<8x128xf32>
    %167 = arith.negf %166 : vector<8x128xf32>
    %168 = math.exp %167 : vector<8x128xf32>
    %cst_61 = arith.constant 1.000000e+00 : f32
    %169 = vector.broadcast %cst_61 : f32 to vector<8x128xf32>
    %170 = arith.addf %169, %168 : vector<8x128xf32>
    %171 = arith.divf %169, %170 : vector<8x128xf32>
    %172 = vector.extract_strided_slice %159 {offsets = [0, 256], sizes = [8, 128], strides = [1, 1]} : vector<8x512xf32> to vector<8x128xf32>
    %173 = math.tanh %172 : vector<8x128xf32>
    %174 = vector.extract_strided_slice %159 {offsets = [0, 384], sizes = [8, 128], strides = [1, 1]} : vector<8x512xf32> to vector<8x128xf32>
    %175 = arith.negf %174 : vector<8x128xf32>
    %176 = math.exp %175 : vector<8x128xf32>
    %cst_62 = arith.constant 1.000000e+00 : f32
    %177 = vector.broadcast %cst_62 : f32 to vector<8x128xf32>
    %178 = arith.addf %177, %176 : vector<8x128xf32>
    %179 = arith.divf %177, %178 : vector<8x128xf32>
    %180 = arith.mulf %171, %147 : vector<8x128xf32>
    %181 = arith.mulf %165, %173 : vector<8x128xf32>
    %182 = arith.addf %180, %181 : vector<8x128xf32>
    %183 = math.tanh %182 : vector<8x128xf32>
    %184 = arith.mulf %179, %183 : vector<8x128xf32>
    %185 = arith.index_cast %c4_i32 : i32 to index
    %c0_63 = arith.constant 0 : index
    %c0_64 = arith.constant 0 : index
    %186 = vector.load %arg6[%185, %c0_63, %c0_64] : memref<8x8x128xf32, #tpu.memory_space<vmem>>, vector<1x8x128xf32>
    %187 = vector.shape_cast %186 : vector<1x8x128xf32> to vector<8x128xf32>
    %188 = vector.shape_cast %184 : vector<8x128xf32> to vector<1x8x128xf32>
    tpu.vector_store %arg6[%185, %c0_63, %c0_64], %188 {strides = array<i32>} : memref<8x8x128xf32, #tpu.memory_space<vmem>>, vector<1x8x128xf32>,
    %c5_i32 = arith.constant 5 : i32
    %189 = arith.index_cast %c5_i32 : i32 to index
    %c0_65 = arith.constant 0 : index
    %c0_66 = arith.constant 0 : index
    %190 = vector.load %arg9[%189, %c0_65, %c0_66] : memref<8x8x512xf32, #tpu.memory_space<vmem>>, vector<1x8x512xf32>
    %191 = vector.shape_cast %190 : vector<1x8x512xf32> to vector<8x512xf32>
    %c0_67 = arith.constant 0 : index
    %c0_68 = arith.constant 0 : index
    %192 = vector.load %arg4[%c0_67, %c0_68] : memref<128x512xf32, #tpu.memory_space<vmem>>, vector<128x512xf32>
    %cst_69 = arith.constant dense<0.000000e+00> : vector<8x512xf32>
    %193 = tpu.matmul %184, %192, %cst_69 {dimension_numbers = #tpu.dot_dimension_numbers<[1], [0], [0], [1], [0, 0, 1, 1], [], []>} : vector<8x128xf32>, vector<128x512xf32>, vector<8x512xf32> -> vector<8x512xf32>
    %194 = arith.addf %191, %193 : vector<8x512xf32>
    %195 = vector.extract_strided_slice %194 {offsets = [0, 0], sizes = [8, 128], strides = [1, 1]} : vector<8x512xf32> to vector<8x128xf32>
    %196 = arith.negf %195 : vector<8x128xf32>
    %197 = math.exp %196 : vector<8x128xf32>
    %cst_70 = arith.constant 1.000000e+00 : f32
    %198 = vector.broadcast %cst_70 : f32 to vector<8x128xf32>
    %199 = arith.addf %198, %197 : vector<8x128xf32>
    %200 = arith.divf %198, %199 : vector<8x128xf32>
    %201 = vector.extract_strided_slice %194 {offsets = [0, 128], sizes = [8, 128], strides = [1, 1]} : vector<8x512xf32> to vector<8x128xf32>
    %202 = arith.negf %201 : vector<8x128xf32>
    %203 = math.exp %202 : vector<8x128xf32>
    %cst_71 = arith.constant 1.000000e+00 : f32
    %204 = vector.broadcast %cst_71 : f32 to vector<8x128xf32>
    %205 = arith.addf %204, %203 : vector<8x128xf32>
    %206 = arith.divf %204, %205 : vector<8x128xf32>
    %207 = vector.extract_strided_slice %194 {offsets = [0, 256], sizes = [8, 128], strides = [1, 1]} : vector<8x512xf32> to vector<8x128xf32>
    %208 = math.tanh %207 : vector<8x128xf32>
    %209 = vector.extract_strided_slice %194 {offsets = [0, 384], sizes = [8, 128], strides = [1, 1]} : vector<8x512xf32> to vector<8x128xf32>
    %210 = arith.negf %209 : vector<8x128xf32>
    %211 = math.exp %210 : vector<8x128xf32>
    %cst_72 = arith.constant 1.000000e+00 : f32
    %212 = vector.broadcast %cst_72 : f32 to vector<8x128xf32>
    %213 = arith.addf %212, %211 : vector<8x128xf32>
    %214 = arith.divf %212, %213 : vector<8x128xf32>
    %215 = arith.mulf %206, %182 : vector<8x128xf32>
    %216 = arith.mulf %200, %208 : vector<8x128xf32>
    %217 = arith.addf %215, %216 : vector<8x128xf32>
    %218 = math.tanh %217 : vector<8x128xf32>
    %219 = arith.mulf %214, %218 : vector<8x128xf32>
    %220 = arith.index_cast %c5_i32 : i32 to index
    %c0_73 = arith.constant 0 : index
    %c0_74 = arith.constant 0 : index
    %221 = vector.load %arg6[%220, %c0_73, %c0_74] : memref<8x8x128xf32, #tpu.memory_space<vmem>>, vector<1x8x128xf32>
    %222 = vector.shape_cast %221 : vector<1x8x128xf32> to vector<8x128xf32>
    %223 = vector.shape_cast %219 : vector<8x128xf32> to vector<1x8x128xf32>
    tpu.vector_store %arg6[%220, %c0_73, %c0_74], %223 {strides = array<i32>} : memref<8x8x128xf32, #tpu.memory_space<vmem>>, vector<1x8x128xf32>,
    %c6_i32 = arith.constant 6 : i32
    %224 = arith.index_cast %c6_i32 : i32 to index
    %c0_75 = arith.constant 0 : index
    %c0_76 = arith.constant 0 : index
    %225 = vector.load %arg9[%224, %c0_75, %c0_76] : memref<8x8x512xf32, #tpu.memory_space<vmem>>, vector<1x8x512xf32>
    %226 = vector.shape_cast %225 : vector<1x8x512xf32> to vector<8x512xf32>
    %c0_77 = arith.constant 0 : index
    %c0_78 = arith.constant 0 : index
    %227 = vector.load %arg4[%c0_77, %c0_78] : memref<128x512xf32, #tpu.memory_space<vmem>>, vector<128x512xf32>
    %cst_79 = arith.constant dense<0.000000e+00> : vector<8x512xf32>
    %228 = tpu.matmul %219, %227, %cst_79 {dimension_numbers = #tpu.dot_dimension_numbers<[1], [0], [0], [1], [0, 0, 1, 1], [], []>} : vector<8x128xf32>, vector<128x512xf32>, vector<8x512xf32> -> vector<8x512xf32>
    %229 = arith.addf %226, %228 : vector<8x512xf32>
    %230 = vector.extract_strided_slice %229 {offsets = [0, 0], sizes = [8, 128], strides = [1, 1]} : vector<8x512xf32> to vector<8x128xf32>
    %231 = arith.negf %230 : vector<8x128xf32>
    %232 = math.exp %231 : vector<8x128xf32>
    %cst_80 = arith.constant 1.000000e+00 : f32
    %233 = vector.broadcast %cst_80 : f32 to vector<8x128xf32>
    %234 = arith.addf %233, %232 : vector<8x128xf32>
    %235 = arith.divf %233, %234 : vector<8x128xf32>
    %236 = vector.extract_strided_slice %229 {offsets = [0, 128], sizes = [8, 128], strides = [1, 1]} : vector<8x512xf32> to vector<8x128xf32>
    %237 = arith.negf %236 : vector<8x128xf32>
    %238 = math.exp %237 : vector<8x128xf32>
    %cst_81 = arith.constant 1.000000e+00 : f32
    %239 = vector.broadcast %cst_81 : f32 to vector<8x128xf32>
    %240 = arith.addf %239, %238 : vector<8x128xf32>
    %241 = arith.divf %239, %240 : vector<8x128xf32>
    %242 = vector.extract_strided_slice %229 {offsets = [0, 256], sizes = [8, 128], strides = [1, 1]} : vector<8x512xf32> to vector<8x128xf32>
    %243 = math.tanh %242 : vector<8x128xf32>
    %244 = vector.extract_strided_slice %229 {offsets = [0, 384], sizes = [8, 128], strides = [1, 1]} : vector<8x512xf32> to vector<8x128xf32>
    %245 = arith.negf %244 : vector<8x128xf32>
    %246 = math.exp %245 : vector<8x128xf32>
    %cst_82 = arith.constant 1.000000e+00 : f32
    %247 = vector.broadcast %cst_82 : f32 to vector<8x128xf32>
    %248 = arith.addf %247, %246 : vector<8x128xf32>
    %249 = arith.divf %247, %248 : vector<8x128xf32>
    %250 = arith.mulf %241, %217 : vector<8x128xf32>
    %251 = arith.mulf %235, %243 : vector<8x128xf32>
    %252 = arith.addf %250, %251 : vector<8x128xf32>
    %253 = math.tanh %252 : vector<8x128xf32>
    %254 = arith.mulf %249, %253 : vector<8x128xf32>
    %255 = arith.index_cast %c6_i32 : i32 to index
    %c0_83 = arith.constant 0 : index
    %c0_84 = arith.constant 0 : index
    %256 = vector.load %arg6[%255, %c0_83, %c0_84] : memref<8x8x128xf32, #tpu.memory_space<vmem>>, vector<1x8x128xf32>
    %257 = vector.shape_cast %256 : vector<1x8x128xf32> to vector<8x128xf32>
    %258 = vector.shape_cast %254 : vector<8x128xf32> to vector<1x8x128xf32>
    tpu.vector_store %arg6[%255, %c0_83, %c0_84], %258 {strides = array<i32>} : memref<8x8x128xf32, #tpu.memory_space<vmem>>, vector<1x8x128xf32>,
    %c7_i32 = arith.constant 7 : i32
    %259 = arith.index_cast %c7_i32 : i32 to index
    %c0_85 = arith.constant 0 : index
    %c0_86 = arith.constant 0 : index
    %260 = vector.load %arg9[%259, %c0_85, %c0_86] : memref<8x8x512xf32, #tpu.memory_space<vmem>>, vector<1x8x512xf32>
    %261 = vector.shape_cast %260 : vector<1x8x512xf32> to vector<8x512xf32>
    %c0_87 = arith.constant 0 : index
    %c0_88 = arith.constant 0 : index
    %262 = vector.load %arg4[%c0_87, %c0_88] : memref<128x512xf32, #tpu.memory_space<vmem>>, vector<128x512xf32>
    %cst_89 = arith.constant dense<0.000000e+00> : vector<8x512xf32>
    %263 = tpu.matmul %254, %262, %cst_89 {dimension_numbers = #tpu.dot_dimension_numbers<[1], [0], [0], [1], [0, 0, 1, 1], [], []>} : vector<8x128xf32>, vector<128x512xf32>, vector<8x512xf32> -> vector<8x512xf32>
    %264 = arith.addf %261, %263 : vector<8x512xf32>
    %265 = vector.extract_strided_slice %264 {offsets = [0, 0], sizes = [8, 128], strides = [1, 1]} : vector<8x512xf32> to vector<8x128xf32>
    %266 = arith.negf %265 : vector<8x128xf32>
    %267 = math.exp %266 : vector<8x128xf32>
    %cst_90 = arith.constant 1.000000e+00 : f32
    %268 = vector.broadcast %cst_90 : f32 to vector<8x128xf32>
    %269 = arith.addf %268, %267 : vector<8x128xf32>
    %270 = arith.divf %268, %269 : vector<8x128xf32>
    %271 = vector.extract_strided_slice %264 {offsets = [0, 128], sizes = [8, 128], strides = [1, 1]} : vector<8x512xf32> to vector<8x128xf32>
    %272 = arith.negf %271 : vector<8x128xf32>
    %273 = math.exp %272 : vector<8x128xf32>
    %cst_91 = arith.constant 1.000000e+00 : f32
    %274 = vector.broadcast %cst_91 : f32 to vector<8x128xf32>
    %275 = arith.addf %274, %273 : vector<8x128xf32>
    %276 = arith.divf %274, %275 : vector<8x128xf32>
    %277 = vector.extract_strided_slice %264 {offsets = [0, 256], sizes = [8, 128], strides = [1, 1]} : vector<8x512xf32> to vector<8x128xf32>
    %278 = math.tanh %277 : vector<8x128xf32>
    %279 = vector.extract_strided_slice %264 {offsets = [0, 384], sizes = [8, 128], strides = [1, 1]} : vector<8x512xf32> to vector<8x128xf32>
    %280 = arith.negf %279 : vector<8x128xf32>
    %281 = math.exp %280 : vector<8x128xf32>
    %cst_92 = arith.constant 1.000000e+00 : f32
    %282 = vector.broadcast %cst_92 : f32 to vector<8x128xf32>
    %283 = arith.addf %282, %281 : vector<8x128xf32>
    %284 = arith.divf %282, %283 : vector<8x128xf32>
    %285 = arith.mulf %276, %252 : vector<8x128xf32>
    %286 = arith.mulf %270, %278 : vector<8x128xf32>
    %287 = arith.addf %285, %286 : vector<8x128xf32>
    %288 = math.tanh %287 : vector<8x128xf32>
    %289 = arith.mulf %284, %288 : vector<8x128xf32>
    %290 = arith.index_cast %c7_i32 : i32 to index
    %c0_93 = arith.constant 0 : index
    %c0_94 = arith.constant 0 : index
    %291 = vector.load %arg6[%290, %c0_93, %c0_94] : memref<8x8x128xf32, #tpu.memory_space<vmem>>, vector<1x8x128xf32>
    %292 = vector.shape_cast %291 : vector<1x8x128xf32> to vector<8x128xf32>
    %293 = vector.shape_cast %289 : vector<8x128xf32> to vector<1x8x128xf32>
    tpu.vector_store %arg6[%290, %c0_93, %c0_94], %293 {strides = array<i32>} : memref<8x8x128xf32, #tpu.memory_space<vmem>>, vector<1x8x128xf32>,
    %c8_i32 = arith.constant 8 : i32
    %c0_95 = arith.constant 0 : index
    %c0_96 = arith.constant 0 : index
    %294 = vector.load %arg7[%c0_95, %c0_96] : memref<8x128xf32, #tpu.memory_space<vmem>>, vector<8x128xf32>
    tpu.vector_store %arg7[%c0_95, %c0_96], %289 {strides = array<i32>} : memref<8x128xf32, #tpu.memory_space<vmem>>, vector<8x128xf32>,
    %c0_97 = arith.constant 0 : index
    %c0_98 = arith.constant 0 : index
    %295 = vector.load %arg8[%c0_97, %c0_98] : memref<8x128xf32, #tpu.memory_space<vmem>>, vector<8x128xf32>
    tpu.vector_store %arg8[%c0_97, %c0_98], %287 {strides = array<i32>} : memref<8x128xf32, #tpu.memory_space<vmem>>, vector<8x128xf32>,
    return
  }
  func.func @transform_0(%arg0: i32, %arg1: i32) -> (i32, i32, i32) {
    %c0_i32 = arith.constant 0 : i32
    %c0_i32_0 = arith.constant 0 : i32
    return %arg1, %arg0, %c0_i32 : i32, i32, i32
  }
  func.func @transform_1(%arg0: i32, %arg1: i32) -> (i32, i32) {
    %c0_i32 = arith.constant 0 : i32
    %c0_i32_0 = arith.constant 0 : i32
    %c0_i32_1 = arith.constant 0 : i32
    return %c0_i32, %c0_i32_0 : i32, i32
  }
  func.func @transform_2(%arg0: i32, %arg1: i32) -> (i32, i32) {
    %c0_i32 = arith.constant 0 : i32
    %c0_i32_0 = arith.constant 0 : i32
    %c0_i32_1 = arith.constant 0 : i32
    return %c0_i32, %c0_i32_0 : i32, i32
  }
  func.func @transform_3(%arg0: i32, %arg1: i32) -> (i32, i32) {
    %c0_i32 = arith.constant 0 : i32
    %c0_i32_0 = arith.constant 0 : i32
    %c0_i32_1 = arith.constant 0 : i32
    return %c0_i32, %c0_i32_0 : i32, i32
  }
  func.func @transform_4(%arg0: i32, %arg1: i32) -> (i32, i32, i32) {
    %c0_i32 = arith.constant 0 : i32
    %c0_i32_0 = arith.constant 0 : i32
    return %arg1, %arg0, %c0_i32 : i32, i32, i32
  }
}

</mosaic_0001>

<bundles_post_ra>
// kernel: tpu_custom_call.1
= control target key start
LH: loop header
LB: loop body
LE: loop exit
PB: predicated region body
PF: predicated region fallthrough
CT: control target
= control target key end

     0   :  { %9 = vsyncpa [#allocation6], 0  ;;  %s3560_s0 = inlined_call_operand.hbm [shape: f32[8,8,128], index: 0, kind: input, shape index: {}]   ;;  %s3561_s1 = inlined_call_operand.hbm [shape: f32[128,512], index: 1, kind: input, shape index: {}]   ;;  %s3562_s2 = inlined_call_operand.hbm [shape: f32[128,512], index: 2, kind: input, shape index: {}]   ;;  %s3563_s3 = inlined_call_operand.hbm [shape: f32[1,512], index: 3, kind: input, shape index: {}]   ;;  %s3564_s4 = inlined_call_operand.hbm [shape: f32[8,8,128], index: 4, kind: output, shape index: {}]  }
   0x1   :  { %10 = vsyncpa [#allocation9], 0 }
   0x2   :  { %11 = vsyncpa [#allocation12], 0  ;;  %s30_s17 = sshll.u32 %s3561_s1, 4  ;;  %s31_s17 = int_to_ptr.hbm [resolvable:$true] %s30_s17 }
   0x3   :  { %12 = vsyncpa [#allocation7], 0  ;;  %s2420_s18 = smov [#allocation8]   ;;  %s17_s22 = sshll.u32 %s3560_s0, 4  ;;  %s18_s22 = int_to_ptr.hbm [resolvable:$true] %s17_s22 }
   0x4   :  { %s32_s19 = sshll.u32 %s2420_s18, 4  ;;  %s2421_s23 = smov 512   ;;  %s33_s19 = int_to_ptr.vmem [resolvable:$true] %s32_s19 }
   0x5   :  { %s2422_s24 = smov 32   ;;  %s2423_s25 = smov [#allocation5]  }
   0x6   :  { %38 = dma.hbm_to_vmem [thread:$0]  %s31_s17, 8192, %s33_s19, [#allocation9], %s2421_s23, %s2421_s23, %s2422_s24  }
   0x7   :  { %s19_s26 = sshll.u32 %s2423_s25, 4  ;;  %s2424_s27 = smov 128   ;;  %s20_s26 = int_to_ptr.vmem [resolvable:$true] %s19_s26 }
   0x8   :  { %s2425_s28 = smov 8   ;;  %s43_s30 = sshll.u32 %s3562_s2, 4  ;;  %s44_s30 = int_to_ptr.hbm [resolvable:$true] %s43_s30 }
   0x9   :  { %25 = dma.hbm_to_vmem [thread:$0]  %s18_s22, 1024, %s20_s26, [#allocation6], %s2424_s27, %s2424_s27, %s2425_s28  }
   0xa   :  { %s2426_s5 = smov [#allocation10]   ;;  %s57_s8 = sshll.u32 %s3563_s3, 4  ;;  %s58_s8 = int_to_ptr.hbm [resolvable:$true] %s57_s8 }
   0xb   :  { %s45_s0 = sshll.u32 %s2426_s5, 4  ;;  %s2427_s9 = smov [#allocation11]   ;;  %s46_s0 = int_to_ptr.vmem [resolvable:$true] %s45_s0 }
   0xc   :  { %51 = dma.hbm_to_vmem [thread:$0]  %s44_s30, 8192, %s46_s0, [#allocation9], %s2421_s23, %s2421_s23, %s2422_s24  }
   0xd   :  { %s59_s10 = sshll.u32 %s2427_s9, 4  ;;  %s60_s10 = int_to_ptr.vmem [resolvable:$true] %s59_s10 }
   0xe   :  { %62 = dma.hbm_to_vmem [thread:$0]  %s58_s8, 64, %s60_s10, [#allocation12]  }
   0xf   :  { %2412 = dma.done.wait [#allocation6], 1024  }
  0x10   :  { %2413 = vsyncadd [#allocation6], 4294966272 }
  0x11   :  { %2414 = dma.done.wait [#allocation9], 16384  }
  0x12   :  { %2415 = vsyncadd [#allocation9], 4294950912 }
  0x13   :  { %2416 = dma.done.wait [#allocation12], 64  }
  0x14   :  { %2417 = vsyncadd [#allocation12], 4294967232  ;;  %v153_v0 = vld [vmem:[#allocation8 + $0x1e0] sm:$0xff]  ;;  %v154_v1 = vld [vmem:[#allocation8 + $0x1e8] sm:$0xff]  ;;  %s2429_s2 = smov [#allocation13]   ;;  %s2115_s13 = sshll.u32 %s3564_s4, 4  ;;  %s2116_s13 = int_to_ptr.hbm [resolvable:$true] %s2115_s13 }
  0x15   :  { %v155_v2 = vld [vmem:[#allocation8 + $0x1f0] sm:$0xff]  ;;  %167 = vmatpush.msra.mxu0 %v153_v0  ;;  %208 = vmatpush.msra.mxu1 %v154_v1  ;;  %v156_v3 = vld [vmem:[#allocation8 + $0x1f8] sm:$0xff]  ;;  %v149_v4 = vld [vmem:[#allocation8 + $0x1c0] sm:$0xff]  ;;  %s2113_s3 = sshll.u32 %s2429_s2, 4  ;;  %s2114_s3 = int_to_ptr.vmem [resolvable:$true] %s2113_s3 }
  0x16   :  { %v150_v5 = vld [vmem:[#allocation8 + $0x1c8] sm:$0xff]  ;;  %249 = vmatpush.msra.mxu2 %v155_v2  ;;  %290 = vmatpush.msra.mxu3 %v156_v3  ;;  %v151_v6 = vld [vmem:[#allocation8 + $0x1d0] sm:$0xff]  ;;  %v152_v7 = vld [vmem:[#allocation8 + $0x1d8] sm:$0xff] }
  0x17   :  { %v145_v8 = vld [vmem:[#allocation8 + $0x1a0] sm:$0xff]  ;;  %168 = vmatpush.msra.mxu0 %v149_v4  ;;  %209 = vmatpush.msra.mxu1 %v150_v5  ;;  %v146_v9 = vld [vmem:[#allocation8 + $0x1a8] sm:$0xff]  ;;  %v147_v10 = vld [vmem:[#allocation8 + $0x1b0] sm:$0xff] }
  0x18   :  { %v148_v11 = vld [vmem:[#allocation8 + $0x1b8] sm:$0xff]  ;;  %250 = vmatpush.msra.mxu2 %v151_v6  ;;  %291 = vmatpush.msra.mxu3 %v152_v7  ;;  %v141_v12 = vld [vmem:[#allocation8 + $0x180] sm:$0xff]  ;;  %v142_v13 = vld [vmem:[#allocation8 + $0x188] sm:$0xff] }
  0x19   :  { %169 = vmatpush.msra.mxu0 %v145_v8  ;;  %210 = vmatpush.msra.mxu1 %v146_v9  ;;  %v143_v14 = vld [vmem:[#allocation8 + $0x190] sm:$0xff]  ;;  %v144_v15 = vld [vmem:[#allocation8 + $0x198] sm:$0xff]  ;;  %v137_v16 = vld [vmem:[#allocation8 + $0x160] sm:$0xff] }
  0x1a   :  { %251 = vmatpush.msra.mxu2 %v147_v10  ;;  %292 = vmatpush.msra.mxu3 %v148_v11  ;;  %v138_v17 = vld [vmem:[#allocation8 + $0x168] sm:$0xff]  ;;  %v139_v18 = vld [vmem:[#allocation8 + $0x170] sm:$0xff]  ;;  %v140_v19 = vld [vmem:[#allocation8 + $0x178] sm:$0xff] }
  0x1b   :  { %170 = vmatpush.msra.mxu0 %v141_v12  ;;  %211 = vmatpush.msra.mxu1 %v142_v13  ;;  %v133_v20 = vld [vmem:[#allocation8 + $0x140] sm:$0xff]  ;;  %v134_v21 = vld [vmem:[#allocation8 + $0x148] sm:$0xff]  ;;  %v135_v22 = vld [vmem:[#allocation8 + $0x150] sm:$0xff] }
  0x1c   :  { %252 = vmatpush.msra.mxu2 %v143_v14  ;;  %293 = vmatpush.msra.mxu3 %v144_v15  ;;  %v136_v23 = vld [vmem:[#allocation8 + $0x158] sm:$0xff]  ;;  %v129_v24 = vld [vmem:[#allocation8 + $0x120] sm:$0xff]  ;;  %v130_v25 = vld [vmem:[#allocation8 + $0x128] sm:$0xff] }
  0x1d   :  { %171 = vmatpush.msra.mxu0 %v137_v16  ;;  %212 = vmatpush.msra.mxu1 %v138_v17  ;;  %v131_v26 = vld [vmem:[#allocation8 + $0x130] sm:$0xff]  ;;  %v132_v27 = vld [vmem:[#allocation8 + $0x138] sm:$0xff]  ;;  %v125_v28 = vld [vmem:[#allocation8 + $0x100] sm:$0xff] }
  0x1e   :  { %253 = vmatpush.msra.mxu2 %v139_v18  ;;  %294 = vmatpush.msra.mxu3 %v140_v19  ;;  %v126_v29 = vld [vmem:[#allocation8 + $0x108] sm:$0xff]  ;;  %v127_v30 = vld [vmem:[#allocation8 + $0x110] sm:$0xff]  ;;  %v128_v31 = vld [vmem:[#allocation8 + $0x118] sm:$0xff] }
  0x1f   :  { %172 = vmatpush.msra.mxu0 %v133_v20  ;;  %213 = vmatpush.msra.mxu1 %v134_v21  ;;  %v121_v32 = vld [vmem:[#allocation8 + $0xe0] sm:$0xff]  ;;  %v122_v33 = vld [vmem:[#allocation8 + $0xe8] sm:$0xff]  ;;  %v123_v34 = vld [vmem:[#allocation8 + $0xf0] sm:$0xff] }
  0x20   :  { %254 = vmatpush.msra.mxu2 %v135_v22  ;;  %295 = vmatpush.msra.mxu3 %v136_v23  ;;  %v124_v35 = vld [vmem:[#allocation8 + $0xf8] sm:$0xff]  ;;  %v117_v36 = vld [vmem:[#allocation8 + $0xc0] sm:$0xff]  ;;  %v118_v37 = vld [vmem:[#allocation8 + $0xc8] sm:$0xff] }
  0x21   :  { %173 = vmatpush.msra.mxu0 %v129_v24  ;;  %214 = vmatpush.msra.mxu1 %v130_v25  ;;  %v119_v38 = vld [vmem:[#allocation8 + $0xd0] sm:$0xff]  ;;  %v120_v39 = vld [vmem:[#allocation8 + $0xd8] sm:$0xff]  ;;  %v113_v40 = vld [vmem:[#allocation8 + $0xa0] sm:$0xff] }
  0x22   :  { %255 = vmatpush.msra.mxu2 %v131_v26  ;;  %296 = vmatpush.msra.mxu3 %v132_v27  ;;  %v114_v41 = vld [vmem:[#allocation8 + $0xa8] sm:$0xff]  ;;  %v115_v42 = vld [vmem:[#allocation8 + $0xb0] sm:$0xff]  ;;  %v116_v43 = vld [vmem:[#allocation8 + $0xb8] sm:$0xff] }
  0x23   :  { %174 = vmatpush.msra.mxu0 %v125_v28  ;;  %215 = vmatpush.msra.mxu1 %v126_v29  ;;  %v109_v44 = vld [vmem:[#allocation8 + $0x80] sm:$0xff]  ;;  %v110_v45 = vld [vmem:[#allocation8 + $0x88] sm:$0xff]  ;;  %v111_v46 = vld [vmem:[#allocation8 + $0x90] sm:$0xff] }
  0x24   :  { %256 = vmatpush.msra.mxu2 %v127_v30  ;;  %297 = vmatpush.msra.mxu3 %v128_v31  ;;  %v112_v47 = vld [vmem:[#allocation8 + $0x98] sm:$0xff]  ;;  %v105_v48 = vld [vmem:[#allocation8 + $0x60] sm:$0xff]  ;;  %v106_v49 = vld [vmem:[#allocation8 + $0x68] sm:$0xff] }
  0x25   :  { %175 = vmatpush.msra.mxu0 %v121_v32  ;;  %216 = vmatpush.msra.mxu1 %v122_v33  ;;  %v107_v50 = vld [vmem:[#allocation8 + $0x70] sm:$0xff]  ;;  %v108_v51 = vld [vmem:[#allocation8 + $0x78] sm:$0xff]  ;;  %v101_v52 = vld [vmem:[#allocation8 + $0x40] sm:$0xff] }
  0x26   :  { %257 = vmatpush.msra.mxu2 %v123_v34  ;;  %298 = vmatpush.msra.mxu3 %v124_v35  ;;  %v102_v53 = vld [vmem:[#allocation8 + $0x48] sm:$0xff]  ;;  %v103_v54 = vld [vmem:[#allocation8 + $0x50] sm:$0xff]  ;;  %v104_v55 = vld [vmem:[#allocation8 + $0x58] sm:$0xff] }
  0x27   :  { %176 = vmatpush.msra.mxu0 %v117_v36  ;;  %217 = vmatpush.msra.mxu1 %v118_v37  ;;  %v97_v56 = vld [vmem:[#allocation8 + $0x20] sm:$0xff]  ;;  %v98_v57 = vld [vmem:[#allocation8 + $0x28] sm:$0xff]  ;;  %v99_v58 = vld [vmem:[#allocation8 + $0x30] sm:$0xff] }
  0x28   :  { %258 = vmatpush.msra.mxu2 %v119_v38  ;;  %299 = vmatpush.msra.mxu3 %v120_v39  ;;  %v100_v59 = vld [vmem:[#allocation8 + $0x38] sm:$0xff]  ;;  %v93_v60 = vld [vmem:[#allocation8] sm:$0xff]  ;;  %v94_v61 = vld [vmem:[#allocation8 + $0x8] sm:$0xff] }
  0x29   :  { %177 = vmatpush.msra.mxu0 %v113_v40  ;;  %218 = vmatpush.msra.mxu1 %v114_v41  ;;  %v95_v62 = vld [vmem:[#allocation8 + $0x10] sm:$0xff]  ;;  %v96_v63 = vld [vmem:[#allocation8 + $0x18] sm:$0xff]  ;;  %v85_v0 = vld [vmem:[#allocation5] sm:$0xff] }
  0x2a   :  { %259 = vmatpush.msra.mxu2 %v115_v42  ;;  %300 = vmatpush.msra.mxu3 %v116_v43  ;;  %v2470_v1 = vld [vmem:[#allocation10 + $0x1e0] sm:$0xff]  ;;  %v2472_v2 = vld [vmem:[#allocation10 + $0x1e8] sm:$0xff]  ;;  %v2474_v3 = vld [vmem:[#allocation10 + $0x1f8] sm:$0xff] }
  0x2b   :  { %178 = vmatpush.msra.mxu0 %v109_v44  ;;  %219 = vmatpush.msra.mxu1 %v110_v45  ;;  %v2476_v4 = vld [vmem:[#allocation10 + $0x1f0] sm:$0xff]  ;;  %v2478_v5 = vld [vmem:[#allocation10 + $0x1c0] sm:$0xff]  ;;  %v2480_v6 = vld [vmem:[#allocation10 + $0x1c8] sm:$0xff] }
  0x2c   :  { %260 = vmatpush.msra.mxu2 %v111_v46  ;;  %301 = vmatpush.msra.mxu3 %v112_v47  ;;  %v2484_v7 = vld [vmem:[#allocation10 + $0x1d8] sm:$0xff]  ;;  %v2486_v8 = vld [vmem:[#allocation10 + $0x1d0] sm:$0xff]  ;;  %v2489_v9 = vld [vmem:[#allocation10 + $0x1a0] sm:$0xff] }
  0x2d   :  { %179 = vmatpush.msra.mxu0 %v105_v48  ;;  %220 = vmatpush.msra.mxu1 %v106_v49  ;;  %v2491_v10 = vld [vmem:[#allocation10 + $0x1a8] sm:$0xff]  ;;  %v2496_v11 = vld [vmem:[#allocation10 + $0x1b8] sm:$0xff]  ;;  %v2498_v12 = vld [vmem:[#allocation10 + $0x1b0] sm:$0xff] }
  0x2e   :  { %261 = vmatpush.msra.mxu2 %v107_v50  ;;  %302 = vmatpush.msra.mxu3 %v108_v51  ;;  %v86_v13 = vld [vmem:[#allocation5 + $0x8] sm:$0xff]  ;;  %v2504_v14 = vld [vmem:[#allocation10 + $0x180] sm:$0xff]  ;;  %v2510_v16 = vld [vmem:[#allocation10 + $0x198] sm:$0xff] }
  0x2f   :  { %180 = vmatpush.msra.mxu0 %v101_v52  ;;  %221 = vmatpush.msra.mxu1 %v102_v53  ;;  %v2506_v15 = vld [vmem:[#allocation10 + $0x188] sm:$0xff]  ;;  %v2512_v17 = vld [vmem:[#allocation10 + $0x190] sm:$0xff]  ;;  %v2514_v18 = vld [vmem:[#allocation10 + $0x160] sm:$0xff] }
  0x30   :  { %262 = vmatpush.msra.mxu2 %v103_v54  ;;  %303 = vmatpush.msra.mxu3 %v104_v55  ;;  %v2516_v19 = vld [vmem:[#allocation10 + $0x168] sm:$0xff]  ;;  %v2520_v20 = vld [vmem:[#allocation10 + $0x178] sm:$0xff]  ;;  %v2522_v21 = vld [vmem:[#allocation10 + $0x170] sm:$0xff] }
  0x31   :  { %181 = vmatpush.msra.mxu0 %v97_v56  ;;  %222 = vmatpush.msra.mxu1 %v98_v57  ;;  %v2525_v22 = vld [vmem:[#allocation10 + $0x140] sm:$0xff]  ;;  %v2527_v23 = vld [vmem:[#allocation10 + $0x148] sm:$0xff]  ;;  %v2532_v24 = vld [vmem:[#allocation10 + $0x158] sm:$0xff] }
  0x32   :  { %263 = vmatpush.msra.mxu2 %v99_v58  ;;  %304 = vmatpush.msra.mxu3 %v100_v59  ;;  %v2534_v25 = vld [vmem:[#allocation10 + $0x150] sm:$0xff]  ;;  %v2540_v27 = vld [vmem:[#allocation10 + $0x120] sm:$0xff]  ;;  %v2542_v28 = vld [vmem:[#allocation10 + $0x128] sm:$0xff] }
  0x33   :  { %182 = vmatpush.msra.mxu0 %v93_v60  ;;  %223 = vmatpush.msra.mxu1 %v94_v61  ;;  %v87_v26 = vld [vmem:[#allocation5 + $0x10] sm:$0xff]  ;;  %v2546_v29 = vld [vmem:[#allocation10 + $0x138] sm:$0xff]  ;;  %v2550_v31 = vld [vmem:[#allocation10 + $0x100] sm:$0xff] }
  0x34   :  { %264 = vmatpush.msra.mxu2 %v95_v62  ;;  %305 = vmatpush.msra.mxu3 %v96_v63  ;;  %v2548_v30 = vld [vmem:[#allocation10 + $0x130] sm:$0xff]  ;;  %v2552_v32 = vld [vmem:[#allocation10 + $0x108] sm:$0xff]  ;;  %v2556_v33 = vld [vmem:[#allocation10 + $0x118] sm:$0xff] }
  0x35   :  { %183 = vmatmul.f32.vlgmr.msra.gmra.mxu0 %v85_v0  ;;  %224 = vmatmul.f32.vlgmr.msra.gmra.mxu1 %v85_v0  ;;  %v2558_v34 = vld [vmem:[#allocation10 + $0x110] sm:$0xff]  ;;  %v2561_v35 = vld [vmem:[#allocation10 + $0xe0] sm:$0xff]  ;;  %v2563_v36 = vld [vmem:[#allocation10 + $0xe8] sm:$0xff] }
  0x36   :  { %265 = vmatmul.f32.vlgmr.msra.gmra.mxu2 %v85_v0  ;;  %306 = vmatmul.f32.vlgmr.msra.gmra.mxu3 %v85_v0  ;;  %v2568_v37 = vld [vmem:[#allocation10 + $0xf8] sm:$0xff]  ;;  %v2570_v38 = vld [vmem:[#allocation10 + $0xf0] sm:$0xff]  ;;  %v2576_v40 = vld [vmem:[#allocation10 + $0xc0] sm:$0xff] }
  0x37   :  { %433 = vmatpush.msrb.mxu0 %v2470_v1  ;;  %453 = vmatpush.msrb.mxu1 %v2472_v2  ;;  %v88_v39 = vld [vmem:[#allocation5 + $0x18] sm:$0xff]  ;;  %v2578_v41 = vld [vmem:[#allocation10 + $0xc8] sm:$0xff]  ;;  %v2584_v43 = vld [vmem:[#allocation10 + $0xd0] sm:$0xff] }
  0x38   :  { %493 = vmatpush.msrb.mxu3 %v2474_v3  ;;  %473 = vmatpush.msrb.mxu2 %v2476_v4  ;;  %v2582_v42 = vld [vmem:[#allocation10 + $0xd8] sm:$0xff]  ;;  %v2586_v44 = vld [vmem:[#allocation10 + $0xa0] sm:$0xff]  ;;  %v2588_v45 = vld [vmem:[#allocation10 + $0xa8] sm:$0xff] }
  0x39   :  { %434 = vmatpush.msrb.mxu0 %v2478_v5  ;;  %454 = vmatpush.msrb.mxu1 %v2480_v6  ;;  %v2592_v46 = vld [vmem:[#allocation10 + $0xb8] sm:$0xff]  ;;  %v2594_v47 = vld [vmem:[#allocation10 + $0xb0] sm:$0xff]  ;;  %v2597_v48 = vld [vmem:[#allocation10 + $0x80] sm:$0xff] }
  0x3a   :  { %494 = vmatpush.msrb.mxu3 %v2484_v7  ;;  %474 = vmatpush.msrb.mxu2 %v2486_v8  ;;  %v2599_v49 = vld [vmem:[#allocation10 + $0x88] sm:$0xff]  ;;  %v2604_v50 = vld [vmem:[#allocation10 + $0x98] sm:$0xff]  ;;  %v2606_v51 = vld [vmem:[#allocation10 + $0x90] sm:$0xff] }
  0x3b   :  { %435 = vmatpush.msrb.mxu0 %v2489_v9  ;;  %455 = vmatpush.msrb.mxu1 %v2491_v10  ;;  %v89_v52 = vld [vmem:[#allocation5 + $0x20] sm:$0xff]  ;;  %v2614_v54 = vld [vmem:[#allocation10 + $0x68] sm:$0xff]  ;;  %v2618_v55 = vld [vmem:[#allocation10 + $0x78] sm:$0xff] }
  0x3c   :  { %495 = vmatpush.msrb.mxu3 %v2496_v11  ;;  %475 = vmatpush.msrb.mxu2 %v2498_v12  ;;  %v2612_v53 = vld [vmem:[#allocation10 + $0x60] sm:$0xff]  ;;  %v2620_v56 = vld [vmem:[#allocation10 + $0x70] sm:$0xff]  ;;  %v2624_v58 = vld [vmem:[#allocation10 + $0x48] sm:$0xff] }
  0x3d   :  { %186 = vmatmul.f32.gmra.mxu0 %v86_v13  ;;  %227 = vmatmul.f32.gmra.mxu1 %v86_v13  ;;  %v2622_v57 = vld [vmem:[#allocation10 + $0x40] sm:$0xff]  ;;  %3602 = vst [vmem:[#allocation18_spill] sm:$0xff] %v2624_v58  ;;  %v2628_v59 = vld [vmem:[#allocation10 + $0x58] sm:$0xff]  ;;  %v2630_v60 = vld [vmem:[#allocation10 + $0x50] sm:$0xff] }
  0x3e   :  { %268 = vmatmul.f32.gmra.mxu2 %v86_v13  ;;  %309 = vmatmul.f32.gmra.mxu3 %v86_v13  ;;  %v2633_v61 = vld [vmem:[#allocation10 + $0x20] sm:$0xff]  ;;  %v2635_v62 = vld [vmem:[#allocation10 + $0x28] sm:$0xff]  ;;  %v2640_v63 = vld [vmem:[#allocation10 + $0x30] sm:$0xff] }
  0x3f   :  { %436 = vmatpush.msrb.mxu0 %v2504_v14  ;;  %456 = vmatpush.msrb.mxu1 %v2506_v15  ;;  %v2642_v0 = vld [vmem:[#allocation10 + $0x38] sm:$0xff]  ;;  %v90_v13 = vld [vmem:[#allocation5 + $0x28] sm:$0xff] }
  0x40   :  { %496 = vmatpush.msrb.mxu3 %v2510_v16  ;;  %476 = vmatpush.msrb.mxu2 %v2512_v17  ;;  %3603 = vst [vmem:[#allocation19_spill] sm:$0xff] %v2642_v0 }
  0x41   :  { %437 = vmatpush.msrb.mxu0 %v2514_v18  ;;  %457 = vmatpush.msrb.mxu1 %v2516_v19 }
  0x42   :  { %497 = vmatpush.msrb.mxu3 %v2520_v20  ;;  %477 = vmatpush.msrb.mxu2 %v2522_v21 }
  0x43   :  { %438 = vmatpush.msrb.mxu0 %v2525_v22  ;;  %458 = vmatpush.msrb.mxu1 %v2527_v23 }
  0x44   :  { %498 = vmatpush.msrb.mxu3 %v2532_v24  ;;  %478 = vmatpush.msrb.mxu2 %v2534_v25 }
  0x45   :  { %189 = vmatmul.f32.gmra.mxu0 %v87_v26  ;;  %230 = vmatmul.f32.gmra.mxu1 %v87_v26 }
  0x46   :  { %271 = vmatmul.f32.gmra.mxu2 %v87_v26  ;;  %312 = vmatmul.f32.gmra.mxu3 %v87_v26  ;;  %v2648_v26 = vld [vmem:[#allocation10] sm:$0xff] }
  0x47   :  { %439 = vmatpush.msrb.mxu0 %v2540_v27  ;;  %459 = vmatpush.msrb.mxu1 %v2542_v28 }
  0x48   :  { %499 = vmatpush.msrb.mxu3 %v2546_v29  ;;  %479 = vmatpush.msrb.mxu2 %v2548_v30 }
  0x49   :  { %440 = vmatpush.msrb.mxu0 %v2550_v31  ;;  %460 = vmatpush.msrb.mxu1 %v2552_v32 }
  0x4a   :  { %500 = vmatpush.msrb.mxu3 %v2556_v33  ;;  %480 = vmatpush.msrb.mxu2 %v2558_v34 }
  0x4b   :  { %441 = vmatpush.msrb.mxu0 %v2561_v35  ;;  %461 = vmatpush.msrb.mxu1 %v2563_v36 }
  0x4c   :  { %501 = vmatpush.msrb.mxu3 %v2568_v37  ;;  %481 = vmatpush.msrb.mxu2 %v2570_v38 }
  0x4d   :  { %192 = vmatmul.f32.gmra.mxu0 %v88_v39  ;;  %233 = vmatmul.f32.gmra.mxu1 %v88_v39 }
  0x4e   :  { %274 = vmatmul.f32.gmra.mxu2 %v88_v39  ;;  %315 = vmatmul.f32.gmra.mxu3 %v88_v39  ;;  %v2650_v39 = vld [vmem:[#allocation10 + $0x8] sm:$0xff] }
  0x4f   :  { %442 = vmatpush.msrb.mxu0 %v2576_v40  ;;  %462 = vmatpush.msrb.mxu1 %v2578_v41 }
  0x50   :  { %502 = vmatpush.msrb.mxu3 %v2582_v42  ;;  %482 = vmatpush.msrb.mxu2 %v2584_v43 }
  0x51   :  { %443 = vmatpush.msrb.mxu0 %v2586_v44  ;;  %463 = vmatpush.msrb.mxu1 %v2588_v45 }
  0x52   :  { %503 = vmatpush.msrb.mxu3 %v2592_v46  ;;  %483 = vmatpush.msrb.mxu2 %v2594_v47 }
  0x53   :  { %444 = vmatpush.msrb.mxu0 %v2597_v48  ;;  %464 = vmatpush.msrb.mxu1 %v2599_v49 }
  0x54   :  { %504 = vmatpush.msrb.mxu3 %v2604_v50  ;;  %484 = vmatpush.msrb.mxu2 %v2606_v51 }
  0x55   :  { %195 = vmatmul.f32.gmra.mxu0 %v89_v52  ;;  %236 = vmatmul.f32.gmra.mxu1 %v89_v52 }
  0x56   :  { %277 = vmatmul.f32.gmra.mxu2 %v89_v52  ;;  %318 = vmatmul.f32.gmra.mxu3 %v89_v52  ;;  %v2654_v52 = vld [vmem:[#allocation10 + $0x10] sm:$0xff] }
  0x57   :  { %445 = vmatpush.msrb.mxu0 %v2612_v53  ;;  %465 = vmatpush.msrb.mxu1 %v2614_v54 }
  0x58   :  { %505 = vmatpush.msrb.mxu3 %v2618_v55  ;;  %485 = vmatpush.msrb.mxu2 %v2620_v56 }
  0x59   :  { %446 = vmatpush.msrb.mxu0 %v2622_v57  ;;  %466 = vmatpush.msrb.mxu1 %v2624_v58  ;;  %v2656_v58 = vld [vmem:[#allocation10 + $0x18] sm:$0xff] }
  0x5a   :  { %506 = vmatpush.msrb.mxu3 %v2628_v59  ;;  %486 = vmatpush.msrb.mxu2 %v2630_v60 }
  0x5b   :  { %447 = vmatpush.msrb.mxu0 %v2633_v61  ;;  %467 = vmatpush.msrb.mxu1 %v2635_v62 }
  0x5c   :  { %487 = vmatpush.msrb.mxu2 %v2640_v63  ;;  %507 = vmatpush.msrb.mxu3 %v2642_v0  ;;  %v91_v0 = vld [vmem:[#allocation5 + $0x30] sm:$0xff] }
  0x5d   :  { %198 = vmatmul.f32.gmra.mxu0 %v90_v13  ;;  %239 = vmatmul.f32.gmra.mxu1 %v90_v13 }
  0x5e   :  { %280 = vmatmul.f32.gmra.mxu2 %v90_v13  ;;  %321 = vmatmul.f32.gmra.mxu3 %v90_v13  ;;  %v92_v13 = vld [vmem:[#allocation5 + $0x38] sm:$0xff] }
  0x5f   :  { %448 = vmatpush.msrb.mxu0 %v2648_v26  ;;  %468 = vmatpush.msrb.mxu1 %v2650_v39 }
  0x60   :  { %488 = vmatpush.msrb.mxu2 %v2654_v52  ;;  %508 = vmatpush.msrb.mxu3 %v2656_v58 }
  0x61   :  { %650 = vmatpush.msra.mxu0 %v2470_v1  ;;  %670 = vmatpush.msra.mxu1 %v2472_v2 }
  0x62   :  { %690 = vmatpush.msra.mxu2 %v2476_v4  ;;  %710 = vmatpush.msra.mxu3 %v2474_v3 }
  0x63   :  { %651 = vmatpush.msra.mxu0 %v2478_v5  ;;  %671 = vmatpush.msra.mxu1 %v2480_v6 }
  0x64   :  { %691 = vmatpush.msra.mxu2 %v2486_v8  ;;  %711 = vmatpush.msra.mxu3 %v2484_v7 }
  0x65   :  { %201 = vmatmul.f32.gmra.mxu0 %v91_v0  ;;  %242 = vmatmul.f32.gmra.mxu1 %v91_v0 }
  0x66   :  { %283 = vmatmul.f32.gmra.mxu2 %v91_v0  ;;  %324 = vmatmul.f32.gmra.mxu3 %v91_v0  ;;  %v2428_v0 = vmov 0.0  }
  0x67   :  { %652 = vmatpush.msra.mxu0 %v2489_v9  ;;  %672 = vmatpush.msra.mxu1 %v2491_v10 }
  0x68   :  { %692 = vmatpush.msra.mxu2 %v2498_v12  ;;  %712 = vmatpush.msra.mxu3 %v2496_v11 }
  0x69   :  { %653 = vmatpush.msra.mxu0 %v2504_v14  ;;  %673 = vmatpush.msra.mxu1 %v2506_v15 }
  0x6a   :  { %693 = vmatpush.msra.mxu2 %v2512_v17  ;;  %713 = vmatpush.msra.mxu3 %v2510_v16 }
  0x6b   :  { %654 = vmatpush.msra.mxu0 %v2514_v18  ;;  %674 = vmatpush.msra.mxu1 %v2516_v19 }
  0x6c   :  { %694 = vmatpush.msra.mxu2 %v2522_v21  ;;  %714 = vmatpush.msra.mxu3 %v2520_v20 }
  0x6d   :  { %204 = vmatmul.f32.gmra.mxu0 %v92_v13  ;;  %245 = vmatmul.f32.gmra.mxu1 %v92_v13 }
  0x6e   :  { %286 = vmatmul.f32.gmra.mxu2 %v92_v13  ;;  %327 = vmatmul.f32.gmra.mxu3 %v92_v13  ;;  %v3604_v13 = vld [vmem:[#allocation18_spill] sm:$0xff] }
  0x6f   :  { %655 = vmatpush.msra.mxu0 %v2525_v22  ;;  %675 = vmatpush.msra.mxu1 %v2527_v23 }
  0x70   :  { %695 = vmatpush.msra.mxu2 %v2534_v25  ;;  %715 = vmatpush.msra.mxu3 %v2532_v24 }
  0x71   :  { %656 = vmatpush.msra.mxu0 %v2540_v27  ;;  %676 = vmatpush.msra.mxu1 %v2542_v28 }
  0x72   :  { %696 = vmatpush.msra.mxu2 %v2548_v30  ;;  %716 = vmatpush.msra.mxu3 %v2546_v29 }
  0x73   :  { %657 = vmatpush.msra.mxu0 %v2550_v31  ;;  %677 = vmatpush.msra.mxu1 %v2552_v32 }
  0x74   :  { %697 = vmatpush.msra.mxu2 %v2558_v34  ;;  %717 = vmatpush.msra.mxu3 %v2556_v33 }
  0x75   :  { %449 = vmatmul.f32.vlgmr.msrb.gmra.mxu0 %v2428_v0  ;;  %469 = vmatmul.f32.vlgmr.msrb.gmra.mxu1 %v2428_v0 }
  0x76   :  { %489 = vmatmul.f32.vlgmr.msrb.gmra.mxu2 %v2428_v0  ;;  %509 = vmatmul.f32.vlgmr.msrb.gmra.mxu3 %v2428_v0  ;;  %v3605_v0 = vld [vmem:[#allocation19_spill] sm:$0xff] }
  0x77   :  { %658 = vmatpush.msra.mxu0 %v2561_v35  ;;  %678 = vmatpush.msra.mxu1 %v2563_v36 }
  0x78   :  { %698 = vmatpush.msra.mxu2 %v2570_v38  ;;  %718 = vmatpush.msra.mxu3 %v2568_v37 }
  0x79   :  { %659 = vmatpush.msra.mxu0 %v2576_v40  ;;  %679 = vmatpush.msra.mxu1 %v2578_v41 }
  0x7a   :  { %699 = vmatpush.msra.mxu2 %v2584_v43  ;;  %719 = vmatpush.msra.mxu3 %v2582_v42 }
  0x7b   :  { %660 = vmatpush.msra.mxu0 %v2586_v44  ;;  %680 = vmatpush.msra.mxu1 %v2588_v45 }
  0x7c   :  { %700 = vmatpush.msra.mxu2 %v2594_v47  ;;  %720 = vmatpush.msra.mxu3 %v2592_v46 }
  0x7d   :  { %661 = vmatpush.msra.mxu0 %v2597_v48  ;;  %681 = vmatpush.msra.mxu1 %v2599_v49 }
  0x7e   :  { %701 = vmatpush.msra.mxu2 %v2606_v51  ;;  %721 = vmatpush.msra.mxu3 %v2604_v50 }
  0x7f   :  { %662 = vmatpush.msra.mxu0 %v2612_v53  ;;  %682 = vmatpush.msra.mxu1 %v2614_v54 }
  0x80   :  { %702 = vmatpush.msra.mxu2 %v2620_v56  ;;  %722 = vmatpush.msra.mxu3 %v2618_v55 }
  0x81   :  { %663 = vmatpush.msra.mxu0 %v2622_v57  ;;  %683 = vmatpush.msra.mxu1 %v3604_v13 }
  0x82   :  { %703 = vmatpush.msra.mxu2 %v2630_v60  ;;  %723 = vmatpush.msra.mxu3 %v2628_v59 }
  0x83   :  { %664 = vmatpush.msra.mxu0 %v2633_v61  ;;  %684 = vmatpush.msra.mxu1 %v2635_v62 }
  0x84   :  { %704 = vmatpush.msra.mxu2 %v2640_v63  ;;  %724 = vmatpush.msra.mxu3 %v3605_v0 }
  0x85   :  { %665 = vmatpush.msra.mxu0 %v2648_v26  ;;  %685 = vmatpush.msra.mxu1 %v2650_v39 }
  0x86   :  { %705 = vmatpush.msra.mxu2 %v2654_v52  ;;  %725 = vmatpush.msra.mxu3 %v2656_v58 }
  0x87   :  { %868 = vmatpush.msrb.mxu0 %v2470_v1  ;;  %888 = vmatpush.msrb.mxu1 %v2472_v2 }
  0x88   :  { %908 = vmatpush.msrb.mxu2 %v2476_v4  ;;  %928 = vmatpush.msrb.mxu3 %v2474_v3  ;;  %v157_v3 = vld [vmem:[#allocation11] sm:$0xf] }
  0x89   :  { %869 = vmatpush.msrb.mxu0 %v2478_v5  ;;  %889 = vmatpush.msrb.mxu1 %v2480_v6  ;;  %v159_v4 = vperm.slane %v157_v3, 0  ;;  %v160_v5 = vperm.slane %v157_v3, 1 }
  0x8a   :  { %909 = vmatpush.msrb.mxu2 %v2486_v8  ;;  %929 = vmatpush.msrb.mxu3 %v2484_v7 }
  0x8b   :  { %870 = vmatpush.msrb.mxu0 %v2489_v9  ;;  %890 = vmatpush.msrb.mxu1 %v2491_v10 }
  0x8c   :  { %910 = vmatpush.msrb.mxu2 %v2498_v12  ;;  %930 = vmatpush.msrb.mxu3 %v2496_v11  ;;  %v2798_v12 = vperm.slane %v157_v3, 2 }
  0x8d   :  { %871 = vmatpush.msrb.mxu0 %v2504_v14  ;;  %891 = vmatpush.msrb.mxu1 %v2506_v15  ;;  %v162_v14 = vperm.slane %v157_v3, 3 }
  0x8e   :  { %911 = vmatpush.msrb.mxu2 %v2512_v17  ;;  %931 = vmatpush.msrb.mxu3 %v2510_v16 }
  0x8f   :  { %872 = vmatpush.msrb.mxu0 %v2514_v18  ;;  %892 = vmatpush.msrb.mxu1 %v2516_v19 }
  0x90   :  { %912 = vmatpush.msrb.mxu2 %v2522_v21  ;;  %932 = vmatpush.msrb.mxu3 %v2520_v20 }
  0x91   :  { %873 = vmatpush.msrb.mxu0 %v2525_v22  ;;  %893 = vmatpush.msrb.mxu1 %v2527_v23 }
  0x92   :  { %913 = vmatpush.msrb.mxu2 %v2534_v25  ;;  %933 = vmatpush.msrb.mxu3 %v2532_v24 }
  0x93   :  { %874 = vmatpush.msrb.mxu0 %v2540_v27  ;;  %894 = vmatpush.msrb.mxu1 %v2542_v28 }
  0x94   :  { %914 = vmatpush.msrb.mxu2 %v2548_v30  ;;  %934 = vmatpush.msrb.mxu3 %v2546_v29 }
  0x95   :  { %875 = vmatpush.msrb.mxu0 %v2550_v31  ;;  %895 = vmatpush.msrb.mxu1 %v2552_v32 }
  0x96   :  { %915 = vmatpush.msrb.mxu2 %v2558_v34  ;;  %935 = vmatpush.msrb.mxu3 %v2556_v33 }
  0x97   :  { %876 = vmatpush.msrb.mxu0 %v2561_v35  ;;  %896 = vmatpush.msrb.mxu1 %v2563_v36 }
  0x98   :  { %916 = vmatpush.msrb.mxu2 %v2570_v38  ;;  %936 = vmatpush.msrb.mxu3 %v2568_v37 }
  0x99   :  { %877 = vmatpush.msrb.mxu0 %v2576_v40  ;;  %897 = vmatpush.msrb.mxu1 %v2578_v41 }
  0x9a   :  { %917 = vmatpush.msrb.mxu2 %v2584_v43  ;;  %937 = vmatpush.msrb.mxu3 %v2582_v42 }
  0x9b   :  { %878 = vmatpush.msrb.mxu0 %v2586_v44  ;;  %898 = vmatpush.msrb.mxu1 %v2588_v45 }
  0x9c   :  { %918 = vmatpush.msrb.mxu2 %v2594_v47  ;;  %938 = vmatpush.msrb.mxu3 %v2592_v46 }
  0x9d   :  { %879 = vmatpush.msrb.mxu0 %v2597_v48  ;;  %899 = vmatpush.msrb.mxu1 %v2599_v49 }
  0x9e   :  { %919 = vmatpush.msrb.mxu2 %v2606_v51  ;;  %939 = vmatpush.msrb.mxu3 %v2604_v50 }
  0x9f   :  { %880 = vmatpush.msrb.mxu0 %v2612_v53  ;;  %900 = vmatpush.msrb.mxu1 %v2614_v54 }
  0xa0   :  { %920 = vmatpush.msrb.mxu2 %v2620_v56  ;;  %940 = vmatpush.msrb.mxu3 %v2618_v55 }
  0xa1   :  { %881 = vmatpush.msrb.mxu0 %v2622_v57  ;;  %901 = vmatpush.msrb.mxu1 %v3604_v13 }
  0xa2   :  { %921 = vmatpush.msrb.mxu2 %v2630_v60  ;;  %941 = vmatpush.msrb.mxu3 %v2628_v59 }
  0xa3   :  { %882 = vmatpush.msrb.mxu0 %v2633_v61  ;;  %902 = vmatpush.msrb.mxu1 %v2635_v62 }
  0xa4   :  { %922 = vmatpush.msrb.mxu2 %v2640_v63  ;;  %942 = vmatpush.msrb.mxu3 %v3605_v0 }
  0xa5   :  { %883 = vmatpush.msrb.mxu0 %v2648_v26  ;;  %903 = vmatpush.msrb.mxu1 %v2650_v39 }
  0xa6   :  { %923 = vmatpush.msrb.mxu2 %v2654_v52  ;;  %943 = vmatpush.msrb.mxu3 %v2656_v58 }
  0xb2   :  { %v184_v1 = vpop.f32.mrf.mxu0  ;;  %v225_v2 = vpop.f32.mrf.mxu1 }
  0xb3   :  { %v185_v52 = vadd.f32 %v184_v1, %v159_v4  ;;  %v226_v13 = vadd.f32 %v225_v2, %v160_v5 }
  0xb9   :  { %v2790_v6 = vpop.f32.mrf.mxu2  ;;  %v2792_v7 = vpop.f32.mrf.mxu3 }
  0xba   :  { %v187_v8 = vpop.f32.mrf.mxu0  ;;  %v228_v9 = vpop.f32.mrf.mxu1 }
  0xbb   :  { %v2794_v10 = vadd.f32 %v187_v8, %v159_v4  ;;  %v2796_v11 = vadd.f32 %v228_v9, %v160_v5 }
  0xc1   :  { %v269_v15 = vpop.f32.mrf.mxu2  ;;  %v310_v16 = vpop.f32.mrf.mxu3 }
  0xc2   :  { %v2801_v17 = vadd.f32 %v269_v15, %v2798_v12  ;;  %v2803_v18 = vadd.f32 %v310_v16, %v162_v14  ;;  %v190_v19 = vpop.f32.mrf.mxu0  ;;  %v231_v20 = vpop.f32.mrf.mxu1 }
  0xc3   :  { %v2805_v21 = vadd.f32 %v190_v19, %v159_v4  ;;  %v2807_v22 = vadd.f32 %v231_v20, %v160_v5 }
  0xc9   :  { %v272_v23 = vpop.f32.mrf.mxu2  ;;  %v313_v24 = vpop.f32.mrf.mxu3 }
  0xca   :  { %v2810_v25 = vadd.f32 %v272_v23, %v2798_v12  ;;  %v2812_v27 = vadd.f32 %v313_v24, %v162_v14  ;;  %v193_v28 = vpop.f32.mrf.mxu0  ;;  %v234_v29 = vpop.f32.mrf.mxu1 }
  0xcb   :  { %v2814_v30 = vadd.f32 %v193_v28, %v159_v4  ;;  %v2816_v31 = vadd.f32 %v234_v29, %v160_v5  ;;  %v308_v28 = vadd.f32 %v2792_v7, %v162_v14 }
  0xcd   :  { %3606 = vst [vmem:[#allocation18_spill] sm:$0xff] %v2814_v30  ;;  %v3046_v30 = vld [vmem:[#allocation10 + $0x30] sm:$0xff] }
  0xce   :  { %3607 = vst [vmem:[#allocation19_spill] sm:$0xff] %v2816_v31  ;;  %v3042_v31 = vld [vmem:[#allocation10 + $0x28] sm:$0xff] }
  0xd1   :  { %v275_v32 = vpop.f32.mrf.mxu2  ;;  %v316_v33 = vpop.f32.mrf.mxu3 }
  0xd2   :  { %v2819_v34 = vadd.f32 %v275_v32, %v2798_v12  ;;  %v2821_v35 = vadd.f32 %v316_v33, %v162_v14  ;;  %v196_v36 = vpop.f32.mrf.mxu0  ;;  %v237_v37 = vpop.f32.mrf.mxu1 }
  0xd3   :  { %v2823_v38 = vadd.f32 %v196_v36, %v159_v4  ;;  %v2825_v40 = vadd.f32 %v237_v37, %v160_v5 }
  0xd4   :  { %3608 = vst [vmem:[#allocation20_spill] sm:$0xff] %v2819_v34 }
  0xd5   :  { %3609 = vst [vmem:[#allocation21_spill] sm:$0xff] %v2821_v35  ;;  %v3040_v35 = vld [vmem:[#allocation10 + $0x20] sm:$0xff] }
  0xd6   :  { %3610 = vst [vmem:[#allocation22_spill] sm:$0xff] %v2823_v38  ;;  %v3033_v38 = vld [vmem:[#allocation10 + $0x50] sm:$0xff] }
  0xd7   :  { %3611 = vst [vmem:[#allocation23_spill] sm:$0xff] %v2825_v40  ;;  %v3031_v40 = vld [vmem:[#allocation10 + $0x48] sm:$0xff] }
  0xd8   :  { %3645 = vst [vmem:[#allocation57_spill] sm:$0xff] %v3031_v40 }
  0xd9   :  { %v278_v41 = vpop.f32.mrf.mxu2  ;;  %v319_v42 = vpop.f32.mrf.mxu3 }
  0xda   :  { %v2828_v43 = vadd.f32 %v278_v41, %v2798_v12  ;;  %v2830_v44 = vadd.f32 %v319_v42, %v162_v14  ;;  %v199_v45 = vpop.f32.mrf.mxu0  ;;  %v240_v46 = vpop.f32.mrf.mxu1  ;;  %v267_v41 = vadd.f32 %v2790_v6, %v2798_v12 }
  0xdb   :  { %v2832_v47 = vadd.f32 %v199_v45, %v159_v4  ;;  %v2834_v48 = vadd.f32 %v240_v46, %v160_v5 }
  0xdc   :  { %3612 = vst [vmem:[#allocation24_spill] sm:$0xff] %v2828_v43  ;;  %v3025_v43 = vld [vmem:[#allocation10 + $0x78] sm:$0xff] }
  0xdd   :  { %3613 = vst [vmem:[#allocation25_spill] sm:$0xff] %v2830_v44 }
  0xde   :  { %3614 = vst [vmem:[#allocation26_spill] sm:$0xff] %v2832_v47  ;;  %v3023_v47 = vld [vmem:[#allocation10 + $0x70] sm:$0xff] }
  0xdf   :  { %3615 = vst [vmem:[#allocation27_spill] sm:$0xff] %v2834_v48  ;;  %v3019_v48 = vld [vmem:[#allocation10 + $0x68] sm:$0xff] }
  0xe0   :  { %3641 = vst [vmem:[#allocation53_spill] sm:$0xff] %v3019_v48 }
  0xe1   :  { %v281_v49 = vpop.f32.mrf.mxu2  ;;  %v322_v50 = vpop.f32.mrf.mxu3  ;;  %3642 = vst [vmem:[#allocation54_spill] sm:$0xff] %v3023_v47 }
  0xe2   :  { %v2837_v51 = vadd.f32 %v281_v49, %v2798_v12  ;;  %v2839_v53 = vadd.f32 %v322_v50, %v162_v14  ;;  %v202_v54 = vpop.f32.mrf.mxu0  ;;  %v243_v55 = vpop.f32.mrf.mxu1  ;;  %3643 = vst [vmem:[#allocation55_spill] sm:$0xff] %v3025_v43 }
  0xe3   :  { %v2841_v56 = vadd.f32 %v202_v54, %v159_v4  ;;  %v2843_v57 = vadd.f32 %v243_v55, %v160_v5 }
  0xe4   :  { %3616 = vst [vmem:[#allocation28_spill] sm:$0xff] %v2837_v51 }
  0xe5   :  { %3617 = vst [vmem:[#allocation29_spill] sm:$0xff] %v2839_v53  ;;  %v3011_v53 = vld [vmem:[#allocation10 + $0x90] sm:$0xff] }
  0xe6   :  { %3618 = vst [vmem:[#allocation30_spill] sm:$0xff] %v2841_v56  ;;  %v2999_v56 = vld [vmem:[#allocation10 + $0xb0] sm:$0xff] }
  0xe7   :  { %3619 = vst [vmem:[#allocation31_spill] sm:$0xff] %v2843_v57  ;;  %v2997_v57 = vld [vmem:[#allocation10 + $0xa8] sm:$0xff] }
  0xe9   :  { %v284_v58 = vpop.f32.mrf.mxu2  ;;  %v325_v59 = vpop.f32.mrf.mxu3 }
  0xea   :  { %v2846_v60 = vadd.f32 %v284_v58, %v2798_v12  ;;  %v2848_v61 = vadd.f32 %v325_v59, %v162_v14  ;;  %v205_v62 = vpop.f32.mrf.mxu0  ;;  %v246_v63 = vpop.f32.mrf.mxu1 }
  0xeb   :  { %v2850_v26 = vadd.f32 %v205_v62, %v159_v4  ;;  %v2852_v39 = vadd.f32 %v246_v63, %v160_v5 }
  0xec   :  { %3620 = vst [vmem:[#allocation32_spill] sm:$0xff] %v2846_v60  ;;  %v2991_v60 = vld [vmem:[#allocation10 + $0xd8] sm:$0xff] }
  0xed   :  { %3621 = vst [vmem:[#allocation33_spill] sm:$0xff] %v2848_v61  ;;  %v2995_v61 = vld [vmem:[#allocation10 + $0xa0] sm:$0xff] }
  0xee   :  { %3622 = vst [vmem:[#allocation34_spill] sm:$0xff] %v2850_v26 }
  0xef   :  { %3623 = vst [vmem:[#allocation35_spill] sm:$0xff] %v2852_v39 }
  0xf1   :  { %v287_v0 = vpop.f32.mrf.mxu2  ;;  %v328_v3 = vpop.f32.mrf.mxu3 }
  0xf2   :  { %v2855_v8 = vadd.f32 %v287_v0, %v2798_v12  ;;  %v2857_v9 = vadd.f32 %v328_v3, %v162_v14  ;;  %v450_v15 = vpop.f32.mrf.mxu0  ;;  %v470_v16 = vpop.f32.mrf.mxu1 }
  0xf3   :  { %v513_v19 = vadd.f32 %v450_v15, %v185_v52  ;;  %v514_v20 = vadd.f32 %v470_v16, %v226_v13 }
  0xf4   :  { %3624 = vst [vmem:[#allocation36_spill] sm:$0xff] %v2855_v8  ;;  %v2983_v8 = vld [vmem:[#allocation10 + $0xc8] sm:$0xff] }
  0xf5   :  { %3625 = vst [vmem:[#allocation37_spill] sm:$0xff] %v2857_v9  ;;  %v2130_v23 = vmul.f32 -1.442695, %v513_v19  ;;  %v2131_v24 = vmul.f32 -1.442695, %v514_v20  ;;  %v2985_v9 = vld [vmem:[#allocation10 + $0xd0] sm:$0xff] }
  0xf7   :  { %2164 = vpow2.f32 %v2130_v23 }
  0xf8   :  { %2166 = vpow2.f32 %v2131_v24 }
  0xf9   :  { %v510_v29 = vpop.f32.mrf.mxu3  ;;  %v490_v36 = vpop.f32.mrf.mxu2 }
  0xfa   :  { %v516_v1 = vadd.f32 %v510_v29, %v308_v28  ;;  %v515_v46 = vadd.f32 %v490_v36, %v267_v41 }
  0xfc   :  { %v2132_v2 = vmul.f32 -1.442695, %v516_v1 }
  0xfd   :  { %v2165_v4 = vpop.eup %2164 }
  0xfe   :  { %v2167_v5 = vpop.eup %2166  ;;  %v520_v32 = vadd.f32 1.0, %v2165_v4  ;;  %2168 = vpow2.f32 %v2132_v2 }
  0xff   :  { %v539_v33 = vadd.f32 1.0, %v2167_v5 }
 0x100   :  { %2170 = vrcp.f32 %v520_v32  ;;  %v532_v55 = vand.u32 2147483648, %v520_v32  ;;  %v530_v62 = vand.u32 2147483647, %v520_v32  ;;  %vm526_vm2 = vweird.f32 %v520_v32 }
 0x101   :  { %2172 = vrcp.f32 %v539_v33  ;;  %v551_v58 = vand.u32 2147483648, %v539_v33  ;;  %v549_v52 = vand.u32 2147483647, %v539_v33  ;;  %vm545_vm3 = vweird.f32 %v539_v33 }
 0x102   :  { %v533_v12 = vor.u32 1.1754944e-38, %v532_v55  ;;  %vm531_vm5 = vcmp.eq.f32.partialorder %v530_v62, 8.507059e+37 }
 0x103   :  { %v552_v15 = vor.u32 1.1754944e-38, %v551_v58  ;;  %vm550_vm7 = vcmp.eq.f32.partialorder %v549_v52, 8.507059e+37 }
 0x104   :  { %v2169_v37 = vpop.eup %2168 }
 0x105   :  { %v559_v42 = vadd.f32 1.0, %v2169_v37 }
 0x106   :  { %v2171_v45 = vpop.eup %2170 }
 0x107   :  { %v2173_v7 = vpop.eup %2172  ;;  %v522_v14 = vmul.f32 %v2171_v45, %v520_v32  ;;  %2174 = vrcp.f32 %v559_v42  ;;  %vm527_vm0 = vweird.f32 %v2171_v45  ;;  %v571_v32 = vand.u32 2147483648, %v559_v42 }
 0x108   :  { %v541_v49 = vmul.f32 %v2173_v7, %v539_v33  ;;  %2176 = vtanh.f32 %v515_v46  ;;  %vm546_vm1 = vweird.f32 %v2173_v7  ;;  %vm528_vm4 = vmor %vm526_vm2, %vm527_vm0  ;;  %vm565_vm9 = vweird.f32 %v559_v42 }
 0x109   :  { %v523_v50 = vsub.f32 1.0, %v522_v14  ;;  %vm547_vm6 = vmor %vm545_vm3, %vm546_vm1  ;;  %v569_v33 = vand.u32 2147483647, %v559_v42  ;;  %v572_v37 = vor.u32 1.1754944e-38, %v571_v32 }
 0x10a   :  { %v542_v54 = vsub.f32 1.0, %v541_v49 }
 0x10b   :  { %v524_v59 = vmul.f32 %v2171_v45, %v523_v50  ;;  %vm570_vm11 = vcmp.eq.f32.partialorder %v569_v33, 8.507059e+37 }
 0x10c   :  { %v543_v63 = vmul.f32 %v2173_v7, %v542_v54 }
 0x10d   :  { %v2175_v13 = vpop.eup %2174  ;;  %v525_v6 = vadd.f32 %v2171_v45, %v524_v59 }
 0x10e   :  { %v544_v0 = vadd.f32 %v2173_v7, %v543_v63  ;;  %v561_v3 = vmul.f32 %v2175_v13, %v559_v42  ;;  %v2177_v19 = vpop.eup %2176  ;;  %vm566_vm8 = vweird.f32 %v2175_v13 }
 0x10f   :  { %v529_v16 = vsel %vm528_vm4, %v2171_v45, %v525_v6  ;;  %vm567_vm10 = vmor %vm565_vm9, %vm566_vm8 }
 0x110   :  { %v534_v20 = vsel %vm531_vm5, %v533_v12, %v529_v16  ;;  %v548_v23 = vsel %vm547_vm6, %v2173_v7, %v544_v0  ;;  %v562_v24 = vsub.f32 1.0, %v561_v3 }
 0x111   :  { %v553_v28 = vsel %vm550_vm7, %v552_v15, %v548_v23  ;;  %v576_v29 = vmul.f32 %v2177_v19, %v534_v20 }
 0x112   :  { %v575_v1 = vmul.f32 0.0, %v553_v28  ;;  %v563_v2 = vmul.f32 %v2175_v13, %v562_v24 }
 0x114   :  { %v2862_v4 = vadd.f32 %v576_v29, %v575_v1  ;;  %v564_v5 = vadd.f32 %v2175_v13, %v563_v2 }
 0x116   :  { %2178 = vtanh.f32 %v2862_v4  ;;  %v568_v36 = vsel %vm567_vm10, %v2175_v13, %v564_v5 }
 0x117   :  { %v573_v45 = vsel %vm570_vm11, %v572_v37, %v568_v36 }
 0x11c   :  { %v2179_v41 = vpop.eup %2178 }
 0x11d   :  { %v579_v46 = vmul.f32 %v2179_v41, %v573_v45 }
 0x11f   :  { %580 = vst [vmem:[#allocation13] sm:$0xff] %v579_v46  ;;  %666 = vmatmul.f32.vlgmr.msra.gmra.mxu0 %v579_v46  ;;  %686 = vmatmul.f32.vlgmr.msra.gmra.mxu1 %v579_v46 }
 0x120   :  { %706 = vmatmul.f32.vlgmr.msra.gmra.mxu2 %v579_v46  ;;  %726 = vmatmul.f32.vlgmr.msra.gmra.mxu3 %v579_v46 }
 0x19c   :  { %v667_v7 = vpop.f32.mrf.mxu0  ;;  %v687_v14 = vpop.f32.mrf.mxu1 }
 0x19d   :  { %v730_v49 = vadd.f32 %v667_v7, %v2794_v10  ;;  %v731_v50 = vadd.f32 %v687_v14, %v2796_v11 }
 0x19f   :  { %v2133_v54 = vmul.f32 -1.442695, %v730_v49  ;;  %v2134_v42 = vmul.f32 -1.442695, %v731_v50 }
 0x1a1   :  { %2180 = vpow2.f32 %v2133_v54 }
 0x1a2   :  { %2182 = vpow2.f32 %v2134_v42 }
 0x1a3   :  { %v727_v55 = vpop.f32.mrf.mxu3  ;;  %v707_v6 = vpop.f32.mrf.mxu2 }
 0x1a4   :  { %v733_v58 = vadd.f32 %v727_v55, %v2803_v18  ;;  %v732_v11 = vadd.f32 %v707_v6, %v2801_v17 }
 0x1a6   :  { %v2135_v59 = vmul.f32 -1.442695, %v733_v58 }
 0x1a7   :  { %v2181_v62 = vpop.eup %2180 }
 0x1a8   :  { %v2183_v63 = vpop.eup %2182  ;;  %v737_v52 = vadd.f32 1.0, %v2181_v62  ;;  %2184 = vpow2.f32 %v2135_v59 }
 0x1a9   :  { %v756_v13 = vadd.f32 1.0, %v2183_v63 }
 0x1aa   :  { %2186 = vrcp.f32 %v737_v52  ;;  %v749_v20 = vand.u32 2147483648, %v737_v52  ;;  %v747_v28 = vand.u32 2147483647, %v737_v52  ;;  %vm743_vm14 = vweird.f32 %v737_v52 }
 0x1ab   :  { %2188 = vrcp.f32 %v756_v13  ;;  %v768_v23 = vand.u32 2147483648, %v756_v13  ;;  %v766_v1 = vand.u32 2147483647, %v756_v13  ;;  %vm762_vm15 = vweird.f32 %v756_v13 }
 0x1ac   :  { %v750_v17 = vor.u32 1.1754944e-38, %v749_v20  ;;  %vm748_vm2 = vcmp.eq.f32.partialorder %v747_v28, 8.507059e+37  ;;  %v2901_v20 = vld [vmem:[#allocation10 + $0x1b0] sm:$0xff]  ;;  %v2911_v28 = vld [vmem:[#allocation10 + $0x188] sm:$0xff] }
 0x1ad   :  { %v769_v36 = vor.u32 1.1754944e-38, %v768_v23  ;;  %vm767_vm3 = vcmp.eq.f32.partialorder %v766_v1, 8.507059e+37  ;;  %v2905_v23 = vld [vmem:[#allocation10 + $0x1b8] sm:$0xff]  ;;  %3632 = vst [vmem:[#allocation44_spill] sm:$0xff] %v2911_v28 }
 0x1ae   :  { %v2185_v12 = vpop.eup %2184  ;;  %3630 = vst [vmem:[#allocation42_spill] sm:$0xff] %v2905_v23  ;;  %v2917_v1 = vld [vmem:[#allocation10 + $0x198] sm:$0xff] }
 0x1af   :  { %v776_v10 = vadd.f32 1.0, %v2185_v12  ;;  %v2875_v12 = vld [vmem:[#allocation10 + $0x1e8] sm:$0xff] }
 0x1b0   :  { %v2187_v0 = vpop.eup %2186  ;;  %3626 = vst [vmem:[#allocation38_spill] sm:$0xff] %v2875_v12  ;;  %1106 = vmatpush.msra.mxu1 %v2875_v12 }
 0x1b1   :  { %v2189_v3 = vpop.eup %2188  ;;  %v739_v15 = vmul.f32 %v2187_v0, %v737_v52  ;;  %2190 = vrcp.f32 %v776_v10  ;;  %vm744_vm12 = vweird.f32 %v2187_v0  ;;  %v788_v58 = vand.u32 2147483648, %v776_v10 }
 0x1b2   :  { %v758_v16 = vmul.f32 %v2189_v3, %v756_v13  ;;  %2192 = vtanh.f32 %v732_v11  ;;  %vm763_vm13 = vweird.f32 %v2189_v3  ;;  %vm745_vm0 = vmor %vm743_vm14, %vm744_vm12  ;;  %vm782_vm5 = vweird.f32 %v776_v10  ;;  %v2885_v11 = vld [vmem:[#allocation10 + $0x1c0] sm:$0xff] }
 0x1b3   :  { %v740_v19 = vsub.f32 1.0, %v739_v15  ;;  %vm764_vm1 = vmor %vm762_vm15, %vm763_vm13  ;;  %v786_v59 = vand.u32 2147483647, %v776_v10  ;;  %v789_v63 = vor.u32 1.1754944e-38, %v788_v58  ;;  %3628 = vst [vmem:[#allocation40_spill] sm:$0xff] %v2885_v11  ;;  %v2889_v15 = vld [vmem:[#allocation10 + $0x1d0] sm:$0xff] }
 0x1b4   :  { %v759_v18 = vsub.f32 1.0, %v758_v16  ;;  %v2893_v16 = vld [vmem:[#allocation10 + $0x1d8] sm:$0xff]  ;;  %v2969_v58 = vld [vmem:[#allocation10 + $0xe0] sm:$0xff] }
 0x1b5   :  { %v741_v24 = vmul.f32 %v2187_v0, %v740_v19  ;;  %vm787_vm7 = vcmp.eq.f32.partialorder %v786_v59, 8.507059e+37  ;;  %v2897_v19 = vld [vmem:[#allocation10 + $0x1a0] sm:$0xff]  ;;  %v2971_v59 = vld [vmem:[#allocation10 + $0xe8] sm:$0xff] }
 0x1b6   :  { %v760_v29 = vmul.f32 %v2189_v3, %v759_v18  ;;  %v2899_v18 = vld [vmem:[#allocation10 + $0x1a8] sm:$0xff] }
 0x1b7   :  { %v2191_v2 = vpop.eup %2190  ;;  %v742_v5 = vadd.f32 %v2187_v0, %v741_v24  ;;  %v2909_v24 = vld [vmem:[#allocation10 + $0x180] sm:$0xff] }
 0x1b8   :  { %v761_v32 = vadd.f32 %v2189_v3, %v760_v29  ;;  %v778_v33 = vmul.f32 %v2191_v2, %v776_v10  ;;  %v2193_v41 = vpop.eup %2192  ;;  %vm783_vm4 = vweird.f32 %v2191_v2  ;;  %v2881_v10 = vld [vmem:[#allocation10 + $0x1f8] sm:$0xff]  ;;  %3631 = vst [vmem:[#allocation43_spill] sm:$0xff] %v2909_v24  ;;  %v2913_v29 = vld [vmem:[#allocation10 + $0x190] sm:$0xff] }
 0x1b9   :  { %v746_v37 = vsel %vm745_vm0, %v2187_v0, %v742_v5  ;;  %vm784_vm6 = vmor %vm782_vm5, %vm783_vm4  ;;  %v2877_v0 = vld [vmem:[#allocation10 + $0x1f0] sm:$0xff]  ;;  %1146 = vmatpush.msra.mxu3 %v2881_v10  ;;  %3633 = vst [vmem:[#allocation45_spill] sm:$0xff] %v2913_v29  ;;  %v2923_v5 = vld [vmem:[#allocation10 + $0x168] sm:$0xff] }
 0x1ba   :  { %v751_v45 = vsel %vm748_vm2, %v750_v17, %v746_v37  ;;  %v765_v46 = vsel %vm764_vm1, %v2189_v3, %v761_v32  ;;  %v779_v7 = vsub.f32 1.0, %v778_v33  ;;  %3627 = vst [vmem:[#allocation39_spill] sm:$0xff] %v2877_v0  ;;  %1126 = vmatpush.msra.mxu2 %v2877_v0  ;;  %v2887_v3 = vld [vmem:[#allocation10 + $0x1c8] sm:$0xff]  ;;  %v2925_v17 = vld [vmem:[#allocation10 + $0x170] sm:$0xff]  ;;  %v2929_v32 = vld [vmem:[#allocation10 + $0x178] sm:$0xff] }
 0x1bb   :  { %v770_v14 = vsel %vm767_vm3, %v769_v36, %v765_v46  ;;  %v793_v49 = vmul.f32 %v2193_v41, %v751_v45  ;;  %3629 = vst [vmem:[#allocation41_spill] sm:$0xff] %v2887_v3  ;;  %1107 = vmatpush.msra.mxu1 %v2887_v3  ;;  %1147 = vmatpush.msra.mxu3 %v2893_v16  ;;  %v2933_v33 = vld [vmem:[#allocation10 + $0x140] sm:$0xff]  ;;  %v2935_v36 = vld [vmem:[#allocation10 + $0x148] sm:$0xff]  ;;  %v2937_v37 = vld [vmem:[#allocation10 + $0x150] sm:$0xff] }
 0x1bc   :  { %v792_v50 = vmul.f32 %v770_v14, %v2862_v4  ;;  %v780_v54 = vmul.f32 %v2191_v2, %v779_v7  ;;  %v2873_v4 = vld [vmem:[#allocation10 + $0x1e0] sm:$0xff]  ;;  %1127 = vmatpush.msra.mxu2 %v2889_v15  ;;  %3634 = vst [vmem:[#allocation46_spill] sm:$0xff] %v2929_v32  ;;  %v2941_v41 = vld [vmem:[#allocation10 + $0x158] sm:$0xff]  ;;  %v2947_v46 = vld [vmem:[#allocation10 + $0x128] sm:$0xff] }
 0x1bd   :  { %1086 = vmatpush.msra.mxu0 %v2873_v4  ;;  %1108 = vmatpush.msra.mxu1 %v2899_v18  ;;  %3635 = vst [vmem:[#allocation47_spill] sm:$0xff] %v2937_v37  ;;  %v2945_v45 = vld [vmem:[#allocation10 + $0x120] sm:$0xff]  ;;  %v2949_v7 = vld [vmem:[#allocation10 + $0x130] sm:$0xff]  ;;  %v2953_v14 = vld [vmem:[#allocation10 + $0x138] sm:$0xff] }
 0x1be   :  { %v2870_v42 = vadd.f32 %v793_v49, %v792_v50  ;;  %v781_v55 = vadd.f32 %v2191_v2, %v780_v54  ;;  %1128 = vmatpush.msra.mxu2 %v2901_v20  ;;  %1148 = vmatpush.msra.mxu3 %v2905_v23  ;;  %3636 = vst [vmem:[#allocation48_spill] sm:$0xff] %v2947_v46  ;;  %v2957_v49 = vld [vmem:[#allocation10 + $0x100] sm:$0xff]  ;;  %v2959_v50 = vld [vmem:[#allocation10 + $0x108] sm:$0xff]  ;;  %v2961_v54 = vld [vmem:[#allocation10 + $0x110] sm:$0xff] }
 0x1bf   :  { %1087 = vmatpush.msra.mxu0 %v2885_v11  ;;  %1109 = vmatpush.msra.mxu1 %v2911_v28  ;;  %3637 = vst [vmem:[#allocation49_spill] sm:$0xff] %v2949_v7 }
 0x1c0   :  { %2194 = vtanh.f32 %v2870_v42  ;;  %v785_v62 = vsel %vm784_vm6, %v2191_v2, %v781_v55  ;;  %1129 = vmatpush.msra.mxu2 %v2913_v29  ;;  %1149 = vmatpush.msra.mxu3 %v2917_v1  ;;  %v2921_v2 = vld [vmem:[#allocation10 + $0x160] sm:$0xff]  ;;  %3638 = vst [vmem:[#allocation50_spill] sm:$0xff] %v2953_v14  ;;  %v2965_v55 = vld [vmem:[#allocation10 + $0x118] sm:$0xff] }
 0x1c1   :  { %v790_v13 = vsel %vm787_vm7, %v789_v63, %v785_v62  ;;  %1088 = vmatpush.msra.mxu0 %v2897_v19  ;;  %1110 = vmatpush.msra.mxu1 %v2923_v5  ;;  %v2973_v62 = vld [vmem:[#allocation10 + $0xf0] sm:$0xff]  ;;  %v2977_v63 = vld [vmem:[#allocation10 + $0xf8] sm:$0xff] }
 0x1c2   :  { %1130 = vmatpush.msra.mxu2 %v2925_v17  ;;  %1150 = vmatpush.msra.mxu3 %v2929_v32 }
 0x1c3   :  { %1089 = vmatpush.msra.mxu0 %v2909_v24  ;;  %1111 = vmatpush.msra.mxu1 %v2935_v36 }
 0x1c4   :  { %1131 = vmatpush.msra.mxu2 %v2937_v37  ;;  %1151 = vmatpush.msra.mxu3 %v2941_v41 }
 0x1c5   :  { %1090 = vmatpush.msra.mxu0 %v2921_v2  ;;  %1112 = vmatpush.msra.mxu1 %v2947_v46 }
 0x1c6   :  { %v2195_v52 = vpop.eup %2194  ;;  %1132 = vmatpush.msra.mxu2 %v2949_v7  ;;  %1152 = vmatpush.msra.mxu3 %v2953_v14 }
 0x1c7   :  { %v796_v6 = vmul.f32 %v2195_v52, %v790_v13  ;;  %1091 = vmatpush.msra.mxu0 %v2933_v33  ;;  %1113 = vmatpush.msra.mxu1 %v2959_v50 }
 0x1c8   :  { %1133 = vmatpush.msra.mxu2 %v2961_v54  ;;  %1153 = vmatpush.msra.mxu3 %v2965_v55 }
 0x1c9   :  { %798 = vst [vmem:[#allocation13 + $0x8] sm:$0xff] %v796_v6  ;;  %884 = vmatmul.f32.vlgmr.msrb.gmra.mxu0 %v796_v6  ;;  %904 = vmatmul.f32.vlgmr.msrb.gmra.mxu1 %v796_v6 }
 0x1ca   :  { %924 = vmatmul.f32.vlgmr.msrb.gmra.mxu2 %v796_v6  ;;  %944 = vmatmul.f32.vlgmr.msrb.gmra.mxu3 %v796_v6  ;;  %v2981_v6 = vld [vmem:[#allocation10 + $0xc0] sm:$0xff] }
 0x1cb   :  { %1092 = vmatpush.msra.mxu0 %v2945_v45  ;;  %1114 = vmatpush.msra.mxu1 %v2971_v59 }
 0x1cc   :  { %1134 = vmatpush.msra.mxu2 %v2973_v62  ;;  %1154 = vmatpush.msra.mxu3 %v2977_v63 }
 0x1cd   :  { %1093 = vmatpush.msra.mxu0 %v2957_v49  ;;  %1115 = vmatpush.msra.mxu1 %v2983_v8 }
 0x1ce   :  { %1135 = vmatpush.msra.mxu2 %v2985_v9  ;;  %1155 = vmatpush.msra.mxu3 %v2991_v60 }
 0x1cf   :  { %1094 = vmatpush.msra.mxu0 %v2969_v58  ;;  %1116 = vmatpush.msra.mxu1 %v2997_v57 }
 0x1d0   :  { %1136 = vmatpush.msra.mxu2 %v2999_v56 }
 0x1d1   :  { %1095 = vmatpush.msra.mxu0 %v2981_v6 }
 0x1d2   :  { %1137 = vmatpush.msra.mxu2 %v3011_v53 }
 0x1d3   :  { %1096 = vmatpush.msra.mxu0 %v2995_v61 }
 0x1d4   :  { %1138 = vmatpush.msra.mxu2 %v3023_v47 }
 0x1d6   :  { %1139 = vmatpush.msra.mxu2 %v3033_v38 }
 0x1d8   :  { %1140 = vmatpush.msra.mxu2 %v3046_v30 }
 0x246   :  { %v885_v52 = vpop.f32.mrf.mxu0  ;;  %v905_v13 = vpop.f32.mrf.mxu1 }
 0x247   :  { %v948_v39 = vadd.f32 %v885_v52, %v2805_v21  ;;  %v949_v26 = vadd.f32 %v905_v13, %v2807_v22  ;;  %v3003_v22 = vld [vmem:[#allocation10 + $0xb8] sm:$0xff]  ;;  %v3007_v52 = vld [vmem:[#allocation10 + $0x80] sm:$0xff]  ;;  %v3009_v13 = vld [vmem:[#allocation10 + $0x88] sm:$0xff] }
 0x248   :  { %1156 = vmatpush.msra.mxu3 %v3003_v22  ;;  %1097 = vmatpush.msra.mxu0 %v3007_v52 }
 0x249   :  { %v2136_v51 = vmul.f32 -1.442695, %v948_v39  ;;  %v2137_v21 = vmul.f32 -1.442695, %v949_v26  ;;  %1117 = vmatpush.msra.mxu1 %v3009_v13  ;;  %v3015_v26 = vld [vmem:[#allocation10 + $0x98] sm:$0xff]  ;;  %v3017_v39 = vld [vmem:[#allocation10 + $0x60] sm:$0xff] }
 0x24a   :  { %3639 = vst [vmem:[#allocation51_spill] sm:$0xff] %v3015_v26  ;;  %1157 = vmatpush.msra.mxu3 %v3015_v26  ;;  %1098 = vmatpush.msra.mxu0 %v3017_v39 }
 0x24b   :  { %2196 = vpow2.f32 %v2136_v51  ;;  %3640 = vst [vmem:[#allocation52_spill] sm:$0xff] %v3017_v39  ;;  %v3027_v51 = vld [vmem:[#allocation10 + $0x40] sm:$0xff]  ;;  %1118 = vmatpush.msra.mxu1 %v3019_v48  ;;  %v3048_v48 = vld [vmem:[#allocation10 + $0x38] sm:$0xff] }
 0x24c   :  { %2198 = vpow2.f32 %v2137_v21  ;;  %3644 = vst [vmem:[#allocation56_spill] sm:$0xff] %v3027_v51  ;;  %v3035_v21 = vld [vmem:[#allocation10 + $0x58] sm:$0xff]  ;;  %1158 = vmatpush.msra.mxu3 %v3025_v43  ;;  %1099 = vmatpush.msra.mxu0 %v3027_v51  ;;  %v3058_v51 = vld [vmem:[#allocation10 + $0x10] sm:$0xff] }
 0x24d   :  { %v945_v44 = vpop.f32.mrf.mxu3  ;;  %1119 = vmatpush.msra.mxu1 %v3031_v40  ;;  %v3060_v40 = vld [vmem:[#allocation10 + $0x18] sm:$0xff]  ;;  %1141 = vmatpush.msra.mxu2 %v3058_v51 }
 0x24e   :  { %v951_v34 = vadd.f32 %v945_v44, %v2812_v27  ;;  %1159 = vmatpush.msra.mxu3 %v3035_v21  ;;  %v3052_v27 = vld [vmem:[#allocation10] sm:$0xff]  ;;  %v3054_v44 = vld [vmem:[#allocation10 + $0x8] sm:$0xff]  ;;  %1100 = vmatpush.msra.mxu0 %v3040_v35 }
 0x24f   :  { %1120 = vmatpush.msra.mxu1 %v3042_v31  ;;  %1344 = vmatpush.msrb.mxu2 %v2877_v0 }
 0x250   :  { %v2138_v39 = vmul.f32 -1.442695, %v951_v34  ;;  %1160 = vmatpush.msra.mxu3 %v3048_v48  ;;  %1101 = vmatpush.msra.mxu0 %v3052_v27 }
 0x251   :  { %v2197_v43 = vpop.eup %2196  ;;  %1121 = vmatpush.msra.mxu1 %v3054_v44  ;;  %1345 = vmatpush.msrb.mxu2 %v2889_v15 }
 0x252   :  { %v2199_v47 = vpop.eup %2198  ;;  %v3062_v26 = vadd.f32 1.0, %v2197_v43  ;;  %2200 = vpow2.f32 %v2138_v39  ;;  %1161 = vmatpush.msra.mxu3 %v3060_v40  ;;  %1304 = vmatpush.msrb.mxu0 %v2873_v4  ;;  %v925_v43 = vpop.f32.mrf.mxu2 }
 0x253   :  { %v3066_v34 = vadd.f32 1.0, %v2199_v47  ;;  %1324 = vmatpush.msrb.mxu1 %v2875_v12  ;;  %v950_v0 = vadd.f32 %v925_v43, %v2810_v25  ;;  %1346 = vmatpush.msrb.mxu2 %v2901_v20 }
 0x254   :  { %2202 = vrcp.f32 %v3062_v26  ;;  %1364 = vmatpush.msrb.mxu3 %v2881_v10  ;;  %1305 = vmatpush.msrb.mxu0 %v2885_v11  ;;  %vm961_vm10 = vweird.f32 %v3062_v26 }
 0x255   :  { %2204 = vrcp.f32 %v3066_v34  ;;  %1325 = vmatpush.msrb.mxu1 %v2887_v3  ;;  %1347 = vmatpush.msrb.mxu2 %v2913_v29  ;;  %v965_v29 = vand.u32 2147483647, %v3062_v26  ;;  %vm980_vm11 = vweird.f32 %v3066_v34 }
 0x256   :  { %1365 = vmatpush.msrb.mxu3 %v2893_v16  ;;  %1306 = vmatpush.msrb.mxu0 %v2897_v19 }
 0x257   :  { %1326 = vmatpush.msrb.mxu1 %v2899_v18  ;;  %1348 = vmatpush.msrb.mxu2 %v2925_v17  ;;  %vm966_vm14 = vcmp.eq.f32.partialorder %v965_v29, 8.507059e+37 }
 0x258   :  { %v2201_v47 = vpop.eup %2200  ;;  %1366 = vmatpush.msrb.mxu3 %v2905_v23  ;;  %1307 = vmatpush.msrb.mxu0 %v2909_v24  ;;  %v967_v23 = vand.u32 2147483648, %v3062_v26 }
 0x259   :  { %v3082_v39 = vadd.f32 1.0, %v2201_v47  ;;  %1327 = vmatpush.msrb.mxu1 %v2911_v28  ;;  %v986_v28 = vand.u32 2147483648, %v3066_v34  ;;  %1349 = vmatpush.msrb.mxu2 %v2937_v37 }
 0x25a   :  { %v2203_v12 = vpop.eup %2202  ;;  %1367 = vmatpush.msrb.mxu3 %v2917_v1  ;;  %1308 = vmatpush.msrb.mxu0 %v2921_v2 }
 0x25b   :  { %v2205_v11 = vpop.eup %2204  ;;  %v957_v3 = vmul.f32 %v2203_v12, %v3062_v26  ;;  %2206 = vrcp.f32 %v3082_v39  ;;  %1328 = vmatpush.msrb.mxu1 %v2923_v5  ;;  %vm962_vm8 = vweird.f32 %v2203_v12  ;;  %1350 = vmatpush.msrb.mxu2 %v2949_v7  ;;  %v1006_v29 = vand.u32 2147483648, %v3082_v39 }
 0x25c   :  { %v976_v47 = vmul.f32 %v2205_v11, %v3066_v34  ;;  %2208 = vtanh.f32 %v950_v0  ;;  %1368 = vmatpush.msrb.mxu3 %v2929_v32  ;;  %1309 = vmatpush.msrb.mxu0 %v2933_v33  ;;  %vm981_vm9 = vweird.f32 %v2205_v11  ;;  %vm963_vm12 = vmor %vm961_vm10, %vm962_vm8  ;;  %vm1000_vm1 = vweird.f32 %v3082_v39 }
 0x25d   :  { %v958_v25 = vsub.f32 1.0, %v957_v3  ;;  %1329 = vmatpush.msrb.mxu1 %v2935_v36  ;;  %vm982_vm13 = vmor %vm980_vm11, %vm981_vm9  ;;  %1351 = vmatpush.msrb.mxu2 %v2961_v54 }
 0x25e   :  { %v977_v43 = vsub.f32 1.0, %v976_v47  ;;  %v984_v47 = vand.u32 2147483647, %v3066_v34  ;;  %1369 = vmatpush.msrb.mxu3 %v2941_v41  ;;  %1310 = vmatpush.msrb.mxu0 %v2945_v45 }
 0x25f   :  { %v959_v24 = vmul.f32 %v2203_v12, %v958_v25  ;;  %1330 = vmatpush.msrb.mxu1 %v2947_v46  ;;  %v968_v25 = vor.u32 1.1754944e-38, %v967_v23  ;;  %1352 = vmatpush.msrb.mxu2 %v2973_v62 }
 0x260   :  { %v978_v3 = vmul.f32 %v2205_v11, %v977_v43  ;;  %1370 = vmatpush.msrb.mxu3 %v2953_v14  ;;  %1311 = vmatpush.msrb.mxu0 %v2957_v49  ;;  %vm985_vm15 = vcmp.eq.f32.partialorder %v984_v47, 8.507059e+37  ;;  %v1007_v47 = vor.u32 1.1754944e-38, %v1006_v29  ;;  %v3659_v29 = vld [vmem:[#allocation44_spill] sm:$0xff] }
 0x261   :  { %v3108_v0 = vpop.eup %2206  ;;  %v960_v32 = vadd.f32 %v2203_v12, %v959_v24  ;;  %v987_v24 = vor.u32 1.1754944e-38, %v986_v28  ;;  %1331 = vmatpush.msrb.mxu1 %v2959_v50  ;;  %1353 = vmatpush.msrb.mxu2 %v2985_v9 }
 0x262   :  { %v979_v43 = vadd.f32 %v2205_v11, %v978_v3  ;;  %v996_v37 = vmul.f32 %v3108_v0, %v3082_v39  ;;  %v2209_v34 = vpop.eup %2208  ;;  %1371 = vmatpush.msrb.mxu3 %v2965_v55  ;;  %1312 = vmatpush.msrb.mxu0 %v2969_v58  ;;  %vm1001_vm0 = vweird.f32 %v3108_v0 }
 0x263   :  { %v964_v26 = vsel %vm963_vm12, %v2203_v12, %v960_v32  ;;  %1332 = vmatpush.msrb.mxu1 %v2971_v59  ;;  %1354 = vmatpush.msrb.mxu2 %v2999_v56  ;;  %v1004_v32 = vand.u32 2147483647, %v3082_v39  ;;  %vm1002_vm2 = vmor %vm1000_vm1, %vm1001_vm0  ;;  %v3651_v39 = vld [vmem:[#allocation56_spill] sm:$0xff] }
 0x264   :  { %v969_v46 = vsel %vm966_vm14, %v968_v25, %v964_v26  ;;  %v983_v23 = vsel %vm982_vm13, %v2205_v11, %v979_v43  ;;  %v997_v3 = vsub.f32 1.0, %v996_v37  ;;  %1372 = vmatpush.msrb.mxu3 %v2977_v63  ;;  %1313 = vmatpush.msrb.mxu0 %v2981_v6  ;;  %v3646_v37 = vld [vmem:[#allocation51_spill] sm:$0xff]  ;;  %v3649_v25 = vld [vmem:[#allocation54_spill] sm:$0xff] }
 0x265   :  { %v988_v7 = vsel %vm985_vm15, %v987_v24, %v983_v23  ;;  %v1011_v14 = vmul.f32 %v2209_v34, %v969_v46  ;;  %1333 = vmatpush.msrb.mxu1 %v2983_v8  ;;  %1355 = vmatpush.msrb.mxu2 %v3011_v53  ;;  %v3650_v43 = vld [vmem:[#allocation55_spill] sm:$0xff]  ;;  %vm1005_vm3 = vcmp.eq.f32.partialorder %v1004_v32, 8.507059e+37  ;;  %v3652_v24 = vld [vmem:[#allocation57_spill] sm:$0xff]  ;;  %v3653_v23 = vld [vmem:[#allocation38_spill] sm:$0xff] }
 0x266   :  { %v1010_v12 = vmul.f32 %v988_v7, %v2870_v42  ;;  %v998_v28 = vmul.f32 %v3108_v0, %v997_v3  ;;  %1373 = vmatpush.msrb.mxu3 %v2991_v60  ;;  %1314 = vmatpush.msrb.mxu0 %v2995_v61  ;;  %v3647_v7 = vld [vmem:[#allocation52_spill] sm:$0xff]  ;;  %v3654_v3 = vld [vmem:[#allocation39_spill] sm:$0xff] }
 0x267   :  { %1334 = vmatpush.msrb.mxu1 %v2997_v57  ;;  %1356 = vmatpush.msrb.mxu2 %v3649_v25 }
 0x268   :  { %v3132_v11 = vadd.f32 %v1011_v14, %v1010_v12  ;;  %v999_v42 = vadd.f32 %v3108_v0, %v998_v28  ;;  %1374 = vmatpush.msrb.mxu3 %v3003_v22  ;;  %1315 = vmatpush.msrb.mxu0 %v3007_v52  ;;  %v3648_v14 = vld [vmem:[#allocation53_spill] sm:$0xff]  ;;  %v3655_v12 = vld [vmem:[#allocation40_spill] sm:$0xff] }
 0x269   :  { %1335 = vmatpush.msrb.mxu1 %v3009_v13  ;;  %1357 = vmatpush.msrb.mxu2 %v3033_v38  ;;  %v3656_v28 = vld [vmem:[#allocation41_spill] sm:$0xff] }
 0x26a   :  { %2210 = vtanh.f32 %v3132_v11  ;;  %1375 = vmatpush.msrb.mxu3 %v3646_v37  ;;  %v1003_v46 = vsel %vm1002_vm2, %v3108_v0, %v999_v42  ;;  %1316 = vmatpush.msrb.mxu0 %v3647_v7  ;;  %v3658_v42 = vld [vmem:[#allocation43_spill] sm:$0xff] }
 0x26b   :  { %1336 = vmatpush.msrb.mxu1 %v3648_v14  ;;  %v1008_v34 = vsel %vm1005_vm3, %v1007_v47, %v1003_v46  ;;  %1358 = vmatpush.msrb.mxu2 %v3046_v30 }
 0x26c   :  { %1376 = vmatpush.msrb.mxu3 %v3650_v43  ;;  %1317 = vmatpush.msrb.mxu0 %v3651_v39 }
 0x26d   :  { %1337 = vmatpush.msrb.mxu1 %v3652_v24  ;;  %1359 = vmatpush.msrb.mxu2 %v3058_v51 }
 0x26e   :  { %1377 = vmatpush.msrb.mxu3 %v3035_v21  ;;  %1318 = vmatpush.msrb.mxu0 %v3040_v35 }
 0x26f   :  { %1338 = vmatpush.msrb.mxu1 %v3042_v31 }
 0x270   :  { %v2211_v26 = vpop.eup %2210  ;;  %1378 = vmatpush.msrb.mxu3 %v3048_v48  ;;  %1319 = vmatpush.msrb.mxu0 %v3052_v27 }
 0x271   :  { %v1014_v0 = vmul.f32 %v2211_v26, %v1008_v34  ;;  %1339 = vmatpush.msrb.mxu1 %v3054_v44 }
 0x272   :  { %1379 = vmatpush.msrb.mxu3 %v3060_v40 }
 0x273   :  { %1016 = vst [vmem:[#allocation13 + $0x10] sm:$0xff] %v1014_v0  ;;  %1102 = vmatmul.f32.vlgmr.msra.gmra.mxu0 %v1014_v0  ;;  %1122 = vmatmul.f32.vlgmr.msra.gmra.mxu1 %v1014_v0 }
 0x274   :  { %1142 = vmatmul.f32.vlgmr.msra.gmra.mxu2 %v1014_v0  ;;  %1162 = vmatmul.f32.vlgmr.msra.gmra.mxu3 %v1014_v0 }
 0x275   :  { %1522 = vmatpush.msra.mxu0 %v2873_v4  ;;  %1542 = vmatpush.msra.mxu1 %v3653_v23  ;;  %v3657_v4 = vld [vmem:[#allocation42_spill] sm:$0xff] }
 0x276   :  { %1562 = vmatpush.msra.mxu2 %v3654_v3  ;;  %1582 = vmatpush.msra.mxu3 %v2881_v10  ;;  %v3660_v10 = vld [vmem:[#allocation45_spill] sm:$0xff] }
 0x277   :  { %1523 = vmatpush.msra.mxu0 %v3655_v12  ;;  %1543 = vmatpush.msra.mxu1 %v3656_v28 }
 0x278   :  { %1563 = vmatpush.msra.mxu2 %v2889_v15  ;;  %1583 = vmatpush.msra.mxu3 %v2893_v16  ;;  %v3661_v15 = vld [vmem:[#allocation46_spill] sm:$0xff]  ;;  %v3662_v16 = vld [vmem:[#allocation47_spill] sm:$0xff] }
 0x279   :  { %1524 = vmatpush.msra.mxu0 %v2897_v19  ;;  %1544 = vmatpush.msra.mxu1 %v2899_v18  ;;  %v3663_v19 = vld [vmem:[#allocation48_spill] sm:$0xff]  ;;  %v3664_v18 = vld [vmem:[#allocation49_spill] sm:$0xff] }
 0x27a   :  { %1564 = vmatpush.msra.mxu2 %v2901_v20  ;;  %1584 = vmatpush.msra.mxu3 %v3657_v4  ;;  %v3665_v20 = vld [vmem:[#allocation50_spill] sm:$0xff] }
 0x27b   :  { %1525 = vmatpush.msra.mxu0 %v3658_v42  ;;  %1545 = vmatpush.msra.mxu1 %v3659_v29 }
 0x27c   :  { %1565 = vmatpush.msra.mxu2 %v3660_v10  ;;  %1585 = vmatpush.msra.mxu3 %v2917_v1 }
 0x27d   :  { %1526 = vmatpush.msra.mxu0 %v2921_v2  ;;  %1546 = vmatpush.msra.mxu1 %v2923_v5 }
 0x27e   :  { %1566 = vmatpush.msra.mxu2 %v2925_v17  ;;  %1586 = vmatpush.msra.mxu3 %v3661_v15  ;;  %v3670_v15 = vld [vmem:[#allocation22_spill] sm:$0xff] }
 0x27f   :  { %1527 = vmatpush.msra.mxu0 %v2933_v33  ;;  %1547 = vmatpush.msra.mxu1 %v2935_v36 }
 0x280   :  { %1567 = vmatpush.msra.mxu2 %v3662_v16  ;;  %1587 = vmatpush.msra.mxu3 %v2941_v41 }
 0x281   :  { %1528 = vmatpush.msra.mxu0 %v2945_v45  ;;  %1548 = vmatpush.msra.mxu1 %v3663_v19  ;;  %v3669_v45 = vld [vmem:[#allocation20_spill] sm:$0xff]  ;;  %v3671_v19 = vld [vmem:[#allocation23_spill] sm:$0xff] }
 0x282   :  { %1568 = vmatpush.msra.mxu2 %v3664_v18  ;;  %1588 = vmatpush.msra.mxu3 %v3665_v20 }
 0x283   :  { %1529 = vmatpush.msra.mxu0 %v2957_v49  ;;  %1549 = vmatpush.msra.mxu1 %v2959_v50 }
 0x284   :  { %1569 = vmatpush.msra.mxu2 %v2961_v54  ;;  %1589 = vmatpush.msra.mxu3 %v2965_v55 }
 0x285   :  { %1530 = vmatpush.msra.mxu0 %v2969_v58  ;;  %1550 = vmatpush.msra.mxu1 %v2971_v59 }
 0x286   :  { %1570 = vmatpush.msra.mxu2 %v2973_v62  ;;  %1590 = vmatpush.msra.mxu3 %v2977_v63 }
 0x287   :  { %1531 = vmatpush.msra.mxu0 %v2981_v6  ;;  %1551 = vmatpush.msra.mxu1 %v2983_v8 }
 0x288   :  { %1571 = vmatpush.msra.mxu2 %v2985_v9  ;;  %1591 = vmatpush.msra.mxu3 %v2991_v60  ;;  %v3667_v60 = vld [vmem:[#allocation19_spill] sm:$0xff] }
 0x289   :  { %1532 = vmatpush.msra.mxu0 %v2995_v61  ;;  %1552 = vmatpush.msra.mxu1 %v2997_v57 }
 0x28a   :  { %1572 = vmatpush.msra.mxu2 %v2999_v56  ;;  %1592 = vmatpush.msra.mxu3 %v3003_v22  ;;  %v3666_v56 = vld [vmem:[#allocation18_spill] sm:$0xff] }
 0x28b   :  { %1533 = vmatpush.msra.mxu0 %v3007_v52  ;;  %1553 = vmatpush.msra.mxu1 %v3009_v13 }
 0x28c   :  { %1573 = vmatpush.msra.mxu2 %v3011_v53  ;;  %1593 = vmatpush.msra.mxu3 %v3646_v37 }
 0x28d   :  { %1534 = vmatpush.msra.mxu0 %v3647_v7  ;;  %1554 = vmatpush.msra.mxu1 %v3648_v14 }
 0x28e   :  { %1574 = vmatpush.msra.mxu2 %v3649_v25  ;;  %1594 = vmatpush.msra.mxu3 %v3650_v43 }
 0x28f   :  { %1535 = vmatpush.msra.mxu0 %v3651_v39  ;;  %1555 = vmatpush.msra.mxu1 %v3652_v24 }
 0x290   :  { %1575 = vmatpush.msra.mxu2 %v3033_v38  ;;  %1595 = vmatpush.msra.mxu3 %v3035_v21 }
 0x291   :  { %1536 = vmatpush.msra.mxu0 %v3040_v35  ;;  %1556 = vmatpush.msra.mxu1 %v3042_v31 }
 0x292   :  { %1576 = vmatpush.msra.mxu2 %v3046_v30  ;;  %1596 = vmatpush.msra.mxu3 %v3048_v48  ;;  %v3668_v48 = vld [vmem:[#allocation21_spill] sm:$0xff] }
 0x293   :  { %1537 = vmatpush.msra.mxu0 %v3052_v27  ;;  %1557 = vmatpush.msra.mxu1 %v3054_v44 }
 0x294   :  { %1577 = vmatpush.msra.mxu2 %v3058_v51  ;;  %1597 = vmatpush.msra.mxu3 %v3060_v40 }
 0x2f0   :  { %v1103_v53 = vpop.f32.mrf.mxu0  ;;  %v1123_v38 = vpop.f32.mrf.mxu1 }
 0x2f1   :  { %v1166_v57 = vadd.f32 %v1103_v53, %v3666_v56  ;;  %v1167_v35 = vadd.f32 %v1123_v38, %v3667_v60  ;;  %v3672_v56 = vld [vmem:[#allocation25_spill] sm:$0xff] }
 0x2f3   :  { %v2139_v61 = vmul.f32 -1.442695, %v1166_v57  ;;  %v2140_v31 = vmul.f32 -1.442695, %v1167_v35 }
 0x2f5   :  { %2212 = vpow2.f32 %v2139_v61 }
 0x2f6   :  { %2214 = vpow2.f32 %v2140_v31 }
 0x2f7   :  { %v1163_v30 = vpop.f32.mrf.mxu3  ;;  %v1143_v40 = vpop.f32.mrf.mxu2 }
 0x2f8   :  { %v1169_v8 = vadd.f32 %v1163_v30, %v3668_v48  ;;  %v1168_v49 = vadd.f32 %v1143_v40, %v3669_v45 }
 0x2fa   :  { %v2141_v9 = vmul.f32 -1.442695, %v1169_v8 }
 0x2fb   :  { %v2213_v1 = vpop.eup %2212 }
 0x2fc   :  { %v2215_v2 = vpop.eup %2214  ;;  %v1173_v5 = vadd.f32 1.0, %v2213_v1  ;;  %2216 = vpow2.f32 %v2141_v9 }
 0x2fd   :  { %v1192_v17 = vadd.f32 1.0, %v2215_v2  ;;  %v3673_v2 = vld [vmem:[#allocation24_spill] sm:$0xff] }
 0x2fe   :  { %2218 = vrcp.f32 %v1173_v5  ;;  %v1185_v62 = vand.u32 2147483648, %v1173_v5  ;;  %v1183_v22 = vand.u32 2147483647, %v1173_v5  ;;  %vm1179_vm6 = vweird.f32 %v1173_v5 }
 0x2ff   :  { %2220 = vrcp.f32 %v1192_v17  ;;  %v1204_v63 = vand.u32 2147483648, %v1192_v17  ;;  %v1202_v13 = vand.u32 2147483647, %v1192_v17  ;;  %vm1198_vm7 = vweird.f32 %v1192_v17 }
 0x300   :  { %v1186_v27 = vor.u32 1.1754944e-38, %v1185_v62  ;;  %vm1184_vm10 = vcmp.eq.f32.partialorder %v1183_v22, 8.507059e+37 }
 0x301   :  { %v1205_v37 = vor.u32 1.1754944e-38, %v1204_v63  ;;  %vm1203_vm11 = vcmp.eq.f32.partialorder %v1202_v13, 8.507059e+37 }
 0x302   :  { %v2217_v33 = vpop.eup %2216 }
 0x303   :  { %v1212_v36 = vadd.f32 1.0, %v2217_v33 }
 0x304   :  { %v2219_v41 = vpop.eup %2218 }
 0x305   :  { %v2221_v50 = vpop.eup %2220  ;;  %v1175_v54 = vmul.f32 %v2219_v41, %v1173_v5  ;;  %2222 = vrcp.f32 %v1212_v36  ;;  %vm1180_vm4 = vweird.f32 %v2219_v41  ;;  %v1224_v23 = vand.u32 2147483648, %v1212_v36 }
 0x306   :  { %v1194_v55 = vmul.f32 %v2221_v50, %v1192_v17  ;;  %2224 = vtanh.f32 %v1168_v49  ;;  %vm1199_vm5 = vweird.f32 %v2221_v50  ;;  %vm1181_vm8 = vmor %vm1179_vm6, %vm1180_vm4  ;;  %vm1218_vm13 = vweird.f32 %v1212_v36 }
 0x307   :  { %v1176_v58 = vsub.f32 1.0, %v1175_v54  ;;  %vm1200_vm9 = vmor %vm1198_vm7, %vm1199_vm5  ;;  %v1222_v3 = vand.u32 2147483647, %v1212_v36  ;;  %v1225_v28 = vor.u32 1.1754944e-38, %v1224_v23 }
 0x308   :  { %v1195_v59 = vsub.f32 1.0, %v1194_v55 }
 0x309   :  { %v1177_v6 = vmul.f32 %v2219_v41, %v1176_v58  ;;  %vm1223_vm15 = vcmp.eq.f32.partialorder %v1222_v3, 8.507059e+37  ;;  %v3249_v3 = vld [vmem:[#allocation10 + $0x1e8] sm:$0xff] }
 0x30a   :  { %v1196_v52 = vmul.f32 %v2221_v50, %v1195_v59 }
 0x30b   :  { %v2223_v51 = vpop.eup %2222  ;;  %v1178_v21 = vadd.f32 %v2219_v41, %v1177_v6 }
 0x30c   :  { %v1197_v44 = vadd.f32 %v2221_v50, %v1196_v52  ;;  %v1214_v32 = vmul.f32 %v2223_v51, %v1212_v36  ;;  %v2225_v7 = vpop.eup %2224  ;;  %vm1219_vm12 = vweird.f32 %v2223_v51 }
 0x30d   :  { %v1182_v46 = vsel %vm1181_vm8, %v2219_v41, %v1178_v21  ;;  %vm1220_vm14 = vmor %vm1218_vm13, %vm1219_vm12 }
 0x30e   :  { %v1187_v14 = vsel %vm1184_vm10, %v1186_v27, %v1182_v46  ;;  %v1201_v47 = vsel %vm1200_vm9, %v2221_v50, %v1197_v44  ;;  %v1215_v25 = vsub.f32 1.0, %v1214_v32 }
 0x30f   :  { %v1206_v43 = vsel %vm1203_vm11, %v1205_v37, %v1201_v47  ;;  %v1229_v39 = vmul.f32 %v2225_v7, %v1187_v14 }
 0x310   :  { %v1228_v24 = vmul.f32 %v1206_v43, %v3132_v11  ;;  %v1216_v26 = vmul.f32 %v2223_v51, %v1215_v25 }
 0x312   :  { %v3236_v34 = vadd.f32 %v1229_v39, %v1228_v24  ;;  %v1217_v0 = vadd.f32 %v2223_v51, %v1216_v26 }
 0x314   :  { %2226 = vtanh.f32 %v3236_v34  ;;  %v1221_v12 = vsel %vm1220_vm14, %v2223_v51, %v1217_v0 }
 0x315   :  { %v1226_v42 = vsel %vm1223_vm15, %v1225_v28, %v1221_v12  ;;  %v3251_v12 = vld [vmem:[#allocation10 + $0x1f0] sm:$0xff]  ;;  %v3255_v28 = vld [vmem:[#allocation10 + $0x1f8] sm:$0xff] }
 0x31a   :  { %v2227_v4 = vpop.eup %2226 }
 0x31b   :  { %v1232_v29 = vmul.f32 %v2227_v4, %v1226_v42  ;;  %v3259_v4 = vld [vmem:[#allocation10 + $0x1c0] sm:$0xff]  ;;  %v3261_v42 = vld [vmem:[#allocation10 + $0x1c8] sm:$0xff] }
 0x31d   :  { %1234 = vst [vmem:[#allocation13 + $0x18] sm:$0xff] %v1232_v29  ;;  %1320 = vmatmul.f32.vlgmr.msrb.gmra.mxu0 %v1232_v29  ;;  %1340 = vmatmul.f32.vlgmr.msrb.gmra.mxu1 %v1232_v29 }
 0x31e   :  { %1360 = vmatmul.f32.vlgmr.msrb.gmra.mxu2 %v1232_v29  ;;  %1380 = vmatmul.f32.vlgmr.msrb.gmra.mxu3 %v1232_v29  ;;  %v3263_v29 = vld [vmem:[#allocation10 + $0x1d0] sm:$0xff] }
 0x31f   :  { %1760 = vmatpush.msrb.mxu1 %v3249_v3  ;;  %1780 = vmatpush.msrb.mxu2 %v3251_v12 }
 0x320   :  { %1800 = vmatpush.msrb.mxu3 %v3255_v28 }
 0x321   :  { %1761 = vmatpush.msrb.mxu1 %v3261_v42  ;;  %1781 = vmatpush.msrb.mxu2 %v3263_v29 }
 0x39a   :  { %v1321_v11 = vpop.f32.mrf.mxu0  ;;  %v1341_v10 = vpop.f32.mrf.mxu1 }
 0x39b   :  { %v1384_v16 = vadd.f32 %v1321_v11, %v3670_v15  ;;  %v1385_v18 = vadd.f32 %v1341_v10, %v3671_v19  ;;  %v3267_v11 = vld [vmem:[#allocation10 + $0x1d8] sm:$0xff]  ;;  %v3271_v10 = vld [vmem:[#allocation10 + $0x1a0] sm:$0xff]  ;;  %v3273_v15 = vld [vmem:[#allocation10 + $0x1a8] sm:$0xff] }
 0x39c   :  { %1801 = vmatpush.msrb.mxu3 %v3267_v11  ;;  %1762 = vmatpush.msrb.mxu1 %v3273_v15  ;;  %v3279_v19 = vld [vmem:[#allocation10 + $0x1b8] sm:$0xff] }
 0x39d   :  { %v2142_v20 = vmul.f32 -1.442695, %v1384_v16  ;;  %v2143_v53 = vmul.f32 -1.442695, %v1385_v18  ;;  %v3275_v16 = vld [vmem:[#allocation10 + $0x1b0] sm:$0xff]  ;;  %v3283_v18 = vld [vmem:[#allocation10 + $0x180] sm:$0xff] }
 0x39e   :  { %1782 = vmatpush.msrb.mxu2 %v3275_v16  ;;  %1802 = vmatpush.msrb.mxu3 %v3279_v19 }
 0x39f   :  { %2228 = vpow2.f32 %v2142_v20  ;;  %v3285_v20 = vld [vmem:[#allocation10 + $0x188] sm:$0xff] }
 0x3a0   :  { %2230 = vpow2.f32 %v2143_v53  ;;  %v3287_v53 = vld [vmem:[#allocation10 + $0x190] sm:$0xff]  ;;  %1763 = vmatpush.msrb.mxu1 %v3285_v20 }
 0x3a1   :  { %v1381_v38 = vpop.f32.mrf.mxu3  ;;  %v1361_v48 = vpop.f32.mrf.mxu2  ;;  %1783 = vmatpush.msrb.mxu2 %v3287_v53 }
 0x3a2   :  { %v1387_v57 = vadd.f32 %v1381_v38, %v3672_v56  ;;  %v1386_v5 = vadd.f32 %v1361_v48, %v3673_v2  ;;  %v3291_v38 = vld [vmem:[#allocation10 + $0x198] sm:$0xff]  ;;  %v3295_v56 = vld [vmem:[#allocation10 + $0x160] sm:$0xff] }
 0x3a3   :  { %1803 = vmatpush.msrb.mxu3 %v3291_v38  ;;  %v3315_v48 = vld [vmem:[#allocation10 + $0x158] sm:$0xff] }
 0x3a4   :  { %v2144_v60 = vmul.f32 -1.442695, %v1387_v57  ;;  %v3297_v57 = vld [vmem:[#allocation10 + $0x168] sm:$0xff]  ;;  %v3327_v2 = vld [vmem:[#allocation10 + $0x138] sm:$0xff] }
 0x3a5   :  { %v2229_v35 = vpop.eup %2228  ;;  %1764 = vmatpush.msrb.mxu1 %v3297_v57 }
 0x3a6   :  { %v2231_v61 = vpop.eup %2230  ;;  %v1391_v31 = vadd.f32 1.0, %v2229_v35  ;;  %2232 = vpow2.f32 %v2144_v60  ;;  %v3299_v60 = vld [vmem:[#allocation10 + $0x170] sm:$0xff]  ;;  %v3303_v35 = vld [vmem:[#allocation10 + $0x178] sm:$0xff] }
 0x3a7   :  { %v1410_v30 = vadd.f32 1.0, %v2231_v61  ;;  %1784 = vmatpush.msrb.mxu2 %v3299_v60  ;;  %1804 = vmatpush.msrb.mxu3 %v3303_v35  ;;  %v3307_v61 = vld [vmem:[#allocation10 + $0x140] sm:$0xff] }
 0x3a8   :  { %2234 = vrcp.f32 %v1391_v31  ;;  %v1403_v45 = vand.u32 2147483648, %v1391_v31  ;;  %v1401_v54 = vand.u32 2147483647, %v1391_v31  ;;  %vm1397_vm2 = vweird.f32 %v1391_v31 }
 0x3a9   :  { %2236 = vrcp.f32 %v1410_v30  ;;  %v1422_v49 = vand.u32 2147483648, %v1410_v30  ;;  %v1420_v58 = vand.u32 2147483647, %v1410_v30  ;;  %vm1416_vm3 = vweird.f32 %v1410_v30  ;;  %1805 = vmatpush.msrb.mxu3 %v3315_v48 }
 0x3aa   :  { %v1404_v63 = vor.u32 1.1754944e-38, %v1403_v45  ;;  %vm1402_vm6 = vcmp.eq.f32.partialorder %v1401_v54, 8.507059e+37  ;;  %v3347_v45 = vld [vmem:[#allocation10 + $0xf0] sm:$0xff] }
 0x3ab   :  { %v1423_v52 = vor.u32 1.1754944e-38, %v1422_v49  ;;  %vm1421_vm7 = vcmp.eq.f32.partialorder %v1420_v58, 8.507059e+37  ;;  %1806 = vmatpush.msrb.mxu3 %v3327_v2  ;;  %v3351_v49 = vld [vmem:[#allocation10 + $0xf8] sm:$0xff]  ;;  %v3357_v58 = vld [vmem:[#allocation10 + $0xc8] sm:$0xff] }
 0x3ac   :  { %v2233_v8 = vpop.eup %2232 }
 0x3ad   :  { %v1430_v9 = vadd.f32 1.0, %v2233_v8  ;;  %v3319_v8 = vld [vmem:[#allocation10 + $0x120] sm:$0xff] }
 0x3ae   :  { %v2235_v1 = vpop.eup %2234 }
 0x3af   :  { %v2237_v17 = vpop.eup %2236  ;;  %v1393_v40 = vmul.f32 %v2235_v1, %v1391_v31  ;;  %2238 = vrcp.f32 %v1430_v9  ;;  %vm1398_vm0 = vweird.f32 %v2235_v1  ;;  %v1442_v25 = vand.u32 2147483648, %v1430_v9  ;;  %v3309_v31 = vld [vmem:[#allocation10 + $0x148] sm:$0xff] }
 0x3b0   :  { %v1412_v33 = vmul.f32 %v2237_v17, %v1410_v30  ;;  %2240 = vtanh.f32 %v1386_v5  ;;  %vm1417_vm1 = vweird.f32 %v2237_v17  ;;  %vm1399_vm4 = vmor %vm1397_vm2, %vm1398_vm0  ;;  %vm1436_vm9 = vweird.f32 %v1430_v9  ;;  %v3311_v30 = vld [vmem:[#allocation10 + $0x150] sm:$0xff]  ;;  %1765 = vmatpush.msrb.mxu1 %v3309_v31  ;;  %v3331_v5 = vld [vmem:[#allocation10 + $0x100] sm:$0xff] }
 0x3b1   :  { %v1394_v36 = vsub.f32 1.0, %v1393_v40  ;;  %vm1418_vm5 = vmor %vm1416_vm3, %vm1417_vm1  ;;  %v1440_v43 = vand.u32 2147483647, %v1430_v9  ;;  %v1443_v24 = vor.u32 1.1754944e-38, %v1442_v25  ;;  %1785 = vmatpush.msrb.mxu2 %v3311_v30  ;;  %v3335_v40 = vld [vmem:[#allocation10 + $0x110] sm:$0xff]  ;;  %v3391_v25 = vld [vmem:[#allocation10 + $0x60] sm:$0xff] }
 0x3b2   :  { %v1413_v41 = vsub.f32 1.0, %v1412_v33  ;;  %v3339_v33 = vld [vmem:[#allocation10 + $0x118] sm:$0xff]  ;;  %3676 = vst [vmem:[#allocation51_spill] sm:$0xff] %v3391_v25 }
 0x3b3   :  { %v1395_v50 = vmul.f32 %v2235_v1, %v1394_v36  ;;  %vm1441_vm11 = vcmp.eq.f32.partialorder %v1440_v43, 8.507059e+37  ;;  %1807 = vmatpush.msrb.mxu3 %v3339_v33  ;;  %v3343_v36 = vld [vmem:[#allocation10 + $0xe0] sm:$0xff]  ;;  %v3393_v43 = vld [vmem:[#allocation10 + $0x68] sm:$0xff] }
 0x3b4   :  { %v1414_v55 = vmul.f32 %v2237_v17, %v1413_v41  ;;  %v3345_v41 = vld [vmem:[#allocation10 + $0xe8] sm:$0xff]  ;;  %3677 = vst [vmem:[#allocation52_spill] sm:$0xff] %v3393_v43 }
 0x3b5   :  { %v2239_v59 = vpop.eup %2238  ;;  %v1396_v62 = vadd.f32 %v2235_v1, %v1395_v50  ;;  %1808 = vmatpush.msrb.mxu3 %v3351_v49 }
 0x3b6   :  { %v1415_v6 = vadd.f32 %v2237_v17, %v1414_v55  ;;  %v1432_v22 = vmul.f32 %v2239_v59, %v1430_v9  ;;  %v2241_v51 = vpop.eup %2240  ;;  %vm1437_vm8 = vweird.f32 %v2239_v59  ;;  %v3321_v9 = vld [vmem:[#allocation10 + $0x128] sm:$0xff]  ;;  %v3355_v55 = vld [vmem:[#allocation10 + $0xc0] sm:$0xff] }
 0x3b7   :  { %v1400_v13 = vsel %vm1399_vm4, %v2235_v1, %v1396_v62  ;;  %vm1438_vm10 = vmor %vm1436_vm9, %vm1437_vm8  ;;  %v3323_v1 = vld [vmem:[#allocation10 + $0x130] sm:$0xff]  ;;  %1766 = vmatpush.msrb.mxu1 %v3321_v9  ;;  %v3674_v62 = vld [vmem:[#allocation26_spill] sm:$0xff] }
 0x3b8   :  { %v1405_v21 = vsel %vm1402_vm6, %v1404_v63, %v1400_v13  ;;  %v1419_v27 = vsel %vm1418_vm5, %v2237_v17, %v1415_v6  ;;  %v1433_v44 = vsub.f32 1.0, %v1432_v22  ;;  %1786 = vmatpush.msrb.mxu2 %v3323_v1  ;;  %v3333_v17 = vld [vmem:[#allocation10 + $0x108] sm:$0xff]  ;;  %v3369_v13 = vld [vmem:[#allocation10 + $0xa0] sm:$0xff] }
 0x3b9   :  { %v1424_v32 = vsel %vm1421_vm7, %v1423_v52, %v1419_v27  ;;  %v1447_v37 = vmul.f32 %v2241_v51, %v1405_v21  ;;  %1767 = vmatpush.msrb.mxu1 %v3333_v17  ;;  %v3675_v6 = vld [vmem:[#allocation27_spill] sm:$0xff]  ;;  %v3365_v52 = vld [vmem:[#allocation10 + $0xd8] sm:$0xff] }
 0x3ba   :  { %v1446_v46 = vmul.f32 %v1424_v32, %v3236_v34  ;;  %v1434_v7 = vmul.f32 %v2239_v59, %v1433_v44  ;;  %v3247_v34 = vld [vmem:[#allocation10 + $0x1e0] sm:$0xff]  ;;  %1787 = vmatpush.msrb.mxu2 %v3335_v40  ;;  %1809 = vmatpush.msrb.mxu3 %v3365_v52  ;;  %v3371_v51 = vld [vmem:[#allocation10 + $0xa8] sm:$0xff]  ;;  %v3373_v21 = vld [vmem:[#allocation10 + $0xb0] sm:$0xff] }
 0x3bb   :  { %1740 = vmatpush.msrb.mxu0 %v3247_v34  ;;  %1768 = vmatpush.msrb.mxu1 %v3345_v41  ;;  %v3377_v32 = vld [vmem:[#allocation10 + $0xb8] sm:$0xff] }
 0x3bc   :  { %v3244_v14 = vadd.f32 %v1447_v37, %v1446_v46  ;;  %v1435_v47 = vadd.f32 %v2239_v59, %v1434_v7  ;;  %1788 = vmatpush.msrb.mxu2 %v3347_v45  ;;  %1810 = vmatpush.msrb.mxu3 %v3377_v32  ;;  %v3381_v37 = vld [vmem:[#allocation10 + $0x80] sm:$0xff]  ;;  %v3383_v46 = vld [vmem:[#allocation10 + $0x88] sm:$0xff]  ;;  %v3385_v7 = vld [vmem:[#allocation10 + $0x90] sm:$0xff] }
 0x3bd   :  { %1741 = vmatpush.msrb.mxu0 %v3259_v4  ;;  %1769 = vmatpush.msrb.mxu1 %v3357_v58 }
 0x3be   :  { %2242 = vtanh.f32 %v3244_v14  ;;  %v1439_v39 = vsel %vm1438_vm10, %v2239_v59, %v1435_v47  ;;  %v3359_v59 = vld [vmem:[#allocation10 + $0xd0] sm:$0xff]  ;;  %v3389_v47 = vld [vmem:[#allocation10 + $0x98] sm:$0xff] }
 0x3bf   :  { %v1444_v0 = vsel %vm1441_vm11, %v1443_v24, %v1439_v39  ;;  %1742 = vmatpush.msrb.mxu0 %v3271_v10  ;;  %1789 = vmatpush.msrb.mxu2 %v3359_v59  ;;  %v3397_v39 = vld [vmem:[#allocation10 + $0x70] sm:$0xff]  ;;  %v3399_v24 = vld [vmem:[#allocation10 + $0x78] sm:$0xff] }
 0x3c0   :  { %1770 = vmatpush.msrb.mxu1 %v3371_v51  ;;  %1811 = vmatpush.msrb.mxu3 %v3389_v47  ;;  %3678 = vst [vmem:[#allocation53_spill] sm:$0xff] %v3397_v39 }
 0x3c1   :  { %1743 = vmatpush.msrb.mxu0 %v3283_v18  ;;  %1790 = vmatpush.msrb.mxu2 %v3373_v21  ;;  %3679 = vst [vmem:[#allocation54_spill] sm:$0xff] %v3399_v24 }
 0x3c2   :  { %1771 = vmatpush.msrb.mxu1 %v3383_v46  ;;  %1812 = vmatpush.msrb.mxu3 %v3399_v24 }
 0x3c3   :  { %1744 = vmatpush.msrb.mxu0 %v3295_v56  ;;  %1791 = vmatpush.msrb.mxu2 %v3385_v7 }
 0x3c4   :  { %v2243_v26 = vpop.eup %2242  ;;  %1772 = vmatpush.msrb.mxu1 %v3393_v43 }
 0x3c5   :  { %v1450_v23 = vmul.f32 %v2243_v26, %v1444_v0  ;;  %1745 = vmatpush.msrb.mxu0 %v3307_v61  ;;  %v3401_v26 = vld [vmem:[#allocation10 + $0x40] sm:$0xff]  ;;  %1792 = vmatpush.msrb.mxu2 %v3397_v39 }
 0x3c6   :  { %3680 = vst [vmem:[#allocation55_spill] sm:$0xff] %v3401_v26 }
 0x3c7   :  { %1452 = vst [vmem:[#allocation13 + $0x20] sm:$0xff] %v1450_v23  ;;  %1538 = vmatmul.f32.vlgmr.msra.gmra.mxu0 %v1450_v23  ;;  %1558 = vmatmul.f32.vlgmr.msra.gmra.mxu1 %v1450_v23 }
 0x3c8   :  { %1578 = vmatmul.f32.vlgmr.msra.gmra.mxu2 %v1450_v23  ;;  %1598 = vmatmul.f32.vlgmr.msra.gmra.mxu3 %v1450_v23  ;;  %v3405_v23 = vld [vmem:[#allocation10 + $0x48] sm:$0xff] }
 0x3c9   :  { %1746 = vmatpush.msrb.mxu0 %v3319_v8  ;;  %3681 = vst [vmem:[#allocation56_spill] sm:$0xff] %v3405_v23  ;;  %1773 = vmatpush.msrb.mxu1 %v3405_v23  ;;  %v3434_v23 = vld [vmem:[#allocation10 + $0x18] sm:$0xff] }
 0x3cb   :  { %1747 = vmatpush.msrb.mxu0 %v3331_v5 }
 0x3cd   :  { %1748 = vmatpush.msrb.mxu0 %v3343_v36 }
 0x3cf   :  { %1749 = vmatpush.msrb.mxu0 %v3355_v55 }
 0x3d1   :  { %1750 = vmatpush.msrb.mxu0 %v3369_v13 }
 0x3d3   :  { %1751 = vmatpush.msrb.mxu0 %v3381_v37 }
 0x3d5   :  { %1752 = vmatpush.msrb.mxu0 %v3391_v25 }
 0x3d7   :  { %1753 = vmatpush.msrb.mxu0 %v3401_v26  ;;  %v3432_v26 = vld [vmem:[#allocation10 + $0x10] sm:$0xff] }
 0x444   :  { %v1539_v50 = vpop.f32.mrf.mxu0  ;;  %v1559_v54 = vpop.f32.mrf.mxu1 }
 0x445   :  { %v1602_v63 = vadd.f32 %v1539_v50, %v3674_v62  ;;  %v1603_v22 = vadd.f32 %v1559_v54, %v3675_v6  ;;  %v3407_v50 = vld [vmem:[#allocation10 + $0x50] sm:$0xff]  ;;  %v3409_v54 = vld [vmem:[#allocation10 + $0x58] sm:$0xff]  ;;  %v3414_v6 = vld [vmem:[#allocation10 + $0x20] sm:$0xff] }
 0x446   :  { %v3682_v62 = vld [vmem:[#allocation29_spill] sm:$0xff]  ;;  %1793 = vmatpush.msrb.mxu2 %v3407_v50  ;;  %1813 = vmatpush.msrb.mxu3 %v3409_v54 }
 0x447   :  { %v2145_v27 = vmul.f32 -1.442695, %v1602_v63  ;;  %v2146_v44 = vmul.f32 -1.442695, %v1603_v22  ;;  %v3416_v22 = vld [vmem:[#allocation10 + $0x28] sm:$0xff]  ;;  %1754 = vmatpush.msrb.mxu0 %v3414_v6 }
 0x448   :  { %1774 = vmatpush.msrb.mxu1 %v3416_v22 }
 0x449   :  { %2244 = vpow2.f32 %v2145_v27  ;;  %v3420_v27 = vld [vmem:[#allocation10 + $0x30] sm:$0xff] }
 0x44a   :  { %2246 = vpow2.f32 %v2146_v44  ;;  %v3422_v44 = vld [vmem:[#allocation10 + $0x38] sm:$0xff]  ;;  %1794 = vmatpush.msrb.mxu2 %v3420_v27 }
 0x44b   :  { %v1599_v0 = vpop.f32.mrf.mxu3  ;;  %1814 = vmatpush.msrb.mxu3 %v3422_v44 }
 0x44c   :  { %v1605_v63 = vadd.f32 %v1599_v0, %v3682_v62  ;;  %v3426_v0 = vld [vmem:[#allocation10] sm:$0xff]  ;;  %v3428_v62 = vld [vmem:[#allocation10 + $0x8] sm:$0xff]  ;;  %1795 = vmatpush.msrb.mxu2 %v3432_v26 }
 0x44d   :  { %1755 = vmatpush.msrb.mxu0 %v3426_v0  ;;  %1775 = vmatpush.msrb.mxu1 %v3428_v62 }
 0x44e   :  { %v2147_v43 = vmul.f32 -1.442695, %v1605_v63  ;;  %1815 = vmatpush.msrb.mxu3 %v3434_v23  ;;  %1998 = vmatpush.msra.mxu2 %v3251_v12 }
 0x44f   :  { %v2245_v24 = vpop.eup %2244  ;;  %1958 = vmatpush.msra.mxu0 %v3247_v34  ;;  %1978 = vmatpush.msra.mxu1 %v3249_v3  ;;  %v3683_v3 = vld [vmem:[#allocation28_spill] sm:$0xff] }
 0x450   :  { %v2247_v39 = vpop.eup %2246  ;;  %v3436_v25 = vadd.f32 1.0, %v2245_v24  ;;  %2248 = vpow2.f32 %v2147_v43  ;;  %2018 = vmatpush.msra.mxu3 %v3255_v28  ;;  %v1579_v43 = vpop.f32.mrf.mxu2  ;;  %1999 = vmatpush.msra.mxu2 %v3263_v29 }
 0x451   :  { %v3440_v63 = vadd.f32 1.0, %v2247_v39  ;;  %1959 = vmatpush.msra.mxu0 %v3259_v4  ;;  %1979 = vmatpush.msra.mxu1 %v3261_v42  ;;  %v1604_v12 = vadd.f32 %v1579_v43, %v3683_v3 }
 0x452   :  { %2250 = vrcp.f32 %v3436_v25  ;;  %2019 = vmatpush.msra.mxu3 %v3267_v11  ;;  %2000 = vmatpush.msra.mxu2 %v3275_v16  ;;  %vm1615_vm14 = vweird.f32 %v3436_v25 }
 0x453   :  { %2252 = vrcp.f32 %v3440_v63  ;;  %1960 = vmatpush.msra.mxu0 %v3271_v10  ;;  %1980 = vmatpush.msra.mxu1 %v3273_v15  ;;  %v1621_v10 = vand.u32 2147483648, %v3436_v25  ;;  %v1640_v15 = vand.u32 2147483648, %v3440_v63  ;;  %vm1634_vm15 = vweird.f32 %v3440_v63 }
 0x454   :  { %2020 = vmatpush.msra.mxu3 %v3279_v19  ;;  %2001 = vmatpush.msra.mxu2 %v3287_v53  ;;  %v1619_v19 = vand.u32 2147483647, %v3436_v25 }
 0x455   :  { %1961 = vmatpush.msra.mxu0 %v3283_v18  ;;  %1981 = vmatpush.msra.mxu1 %v3285_v20  ;;  %v1638_v20 = vand.u32 2147483647, %v3440_v63 }
 0x456   :  { %v2249_v39 = vpop.eup %2248  ;;  %2021 = vmatpush.msra.mxu3 %v3291_v38  ;;  %2002 = vmatpush.msra.mxu2 %v3299_v60  ;;  %vm1620_vm2 = vcmp.eq.f32.partialorder %v1619_v19, 8.507059e+37 }
 0x457   :  { %v3456_v24 = vadd.f32 1.0, %v2249_v39  ;;  %1962 = vmatpush.msra.mxu0 %v3295_v56  ;;  %1982 = vmatpush.msra.mxu1 %v3297_v57  ;;  %v1622_v56 = vor.u32 1.1754944e-38, %v1621_v10  ;;  %vm1639_vm3 = vcmp.eq.f32.partialorder %v1638_v20, 8.507059e+37 }
 0x458   :  { %v2251_v34 = vpop.eup %2250  ;;  %2022 = vmatpush.msra.mxu3 %v3303_v35  ;;  %2003 = vmatpush.msra.mxu2 %v3311_v30  ;;  %v1641_v35 = vor.u32 1.1754944e-38, %v1640_v15 }
 0x459   :  { %v2253_v28 = vpop.eup %2252  ;;  %v1611_v4 = vmul.f32 %v2251_v34, %v3436_v25  ;;  %2254 = vrcp.f32 %v3456_v24  ;;  %vm1616_vm12 = vweird.f32 %v2251_v34  ;;  %1963 = vmatpush.msra.mxu0 %v3307_v61  ;;  %1983 = vmatpush.msra.mxu1 %v3309_v31  ;;  %vm1654_vm5 = vweird.f32 %v3456_v24 }
 0x45a   :  { %v1630_v42 = vmul.f32 %v2253_v28, %v3440_v63  ;;  %2256 = vtanh.f32 %v1604_v12  ;;  %vm1635_vm13 = vweird.f32 %v2253_v28  ;;  %2023 = vmatpush.msra.mxu3 %v3315_v48  ;;  %vm1617_vm0 = vmor %vm1615_vm14, %vm1616_vm12  ;;  %2004 = vmatpush.msra.mxu2 %v3323_v1 }
 0x45b   :  { %v1612_v29 = vsub.f32 1.0, %v1611_v4  ;;  %1964 = vmatpush.msra.mxu0 %v3319_v8  ;;  %1984 = vmatpush.msra.mxu1 %v3321_v9  ;;  %vm1636_vm1 = vmor %vm1634_vm15, %vm1635_vm13 }
 0x45c   :  { %v1631_v11 = vsub.f32 1.0, %v1630_v42  ;;  %2024 = vmatpush.msra.mxu3 %v3327_v2  ;;  %2005 = vmatpush.msra.mxu2 %v3335_v40  ;;  %v1660_v40 = vand.u32 2147483648, %v3456_v24 }
 0x45d   :  { %v1613_v16 = vmul.f32 %v2251_v34, %v1612_v29  ;;  %1965 = vmatpush.msra.mxu0 %v3331_v5  ;;  %1985 = vmatpush.msra.mxu1 %v3333_v17 }
 0x45e   :  { %v1632_v18 = vmul.f32 %v2253_v28, %v1631_v11  ;;  %2025 = vmatpush.msra.mxu3 %v3339_v33  ;;  %2006 = vmatpush.msra.mxu2 %v3347_v45  ;;  %v1658_v33 = vand.u32 2147483647, %v3456_v24  ;;  %v3685_v45 = vld [vmem:[#allocation52_spill] sm:$0xff] }
 0x45f   :  { %v3482_v53 = vpop.eup %2254  ;;  %v1614_v38 = vadd.f32 %v2251_v34, %v1613_v16  ;;  %1966 = vmatpush.msra.mxu0 %v3343_v36  ;;  %1986 = vmatpush.msra.mxu1 %v3345_v41  ;;  %v3684_v41 = vld [vmem:[#allocation51_spill] sm:$0xff] }
 0x460   :  { %v1633_v57 = vadd.f32 %v2253_v28, %v1632_v18  ;;  %v1650_v60 = vmul.f32 %v3482_v53, %v3456_v24  ;;  %v2257_v31 = vpop.eup %2256  ;;  %2026 = vmatpush.msra.mxu3 %v3351_v49  ;;  %2007 = vmatpush.msra.mxu2 %v3359_v59  ;;  %vm1655_vm4 = vweird.f32 %v3482_v53  ;;  %v1661_v49 = vor.u32 1.1754944e-38, %v1660_v40  ;;  %v3688_v59 = vld [vmem:[#allocation55_spill] sm:$0xff] }
 0x461   :  { %v1618_v61 = vsel %vm1617_vm0, %v2251_v34, %v1614_v38  ;;  %1967 = vmatpush.msra.mxu0 %v3355_v55  ;;  %1987 = vmatpush.msra.mxu1 %v3357_v58  ;;  %vm1656_vm6 = vmor %vm1654_vm5, %vm1655_vm4  ;;  %v3686_v55 = vld [vmem:[#allocation53_spill] sm:$0xff]  ;;  %v3687_v58 = vld [vmem:[#allocation54_spill] sm:$0xff]  ;;  %vm1659_vm7 = vcmp.eq.f32.partialorder %v1658_v33, 8.507059e+37 }
 0x462   :  { %v1623_v30 = vsel %vm1620_vm2, %v1622_v56, %v1618_v61  ;;  %v1637_v48 = vsel %vm1636_vm1, %v2253_v28, %v1633_v57  ;;  %v1651_v8 = vsub.f32 1.0, %v1650_v60  ;;  %2027 = vmatpush.msra.mxu3 %v3365_v52  ;;  %2008 = vmatpush.msra.mxu2 %v3373_v21  ;;  %v3689_v52 = vld [vmem:[#allocation56_spill] sm:$0xff] }
 0x463   :  { %v1642_v9 = vsel %vm1639_vm3, %v1641_v35, %v1637_v48  ;;  %v1665_v1 = vmul.f32 %v2257_v31, %v1623_v30  ;;  %1968 = vmatpush.msra.mxu0 %v3369_v13  ;;  %1988 = vmatpush.msra.mxu1 %v3371_v51  ;;  %v3693_v34 = vld [vmem:[#allocation32_spill] sm:$0xff] }
 0x464   :  { %v1664_v2 = vmul.f32 %v1642_v9, %v3244_v14  ;;  %v1652_v5 = vmul.f32 %v3482_v53, %v1651_v8  ;;  %2028 = vmatpush.msra.mxu3 %v3377_v32  ;;  %2009 = vmatpush.msra.mxu2 %v3385_v7 }
 0x465   :  { %1969 = vmatpush.msra.mxu0 %v3381_v37  ;;  %1989 = vmatpush.msra.mxu1 %v3383_v46  ;;  %v3690_v46 = vld [vmem:[#allocation30_spill] sm:$0xff] }
 0x466   :  { %v3506_v17 = vadd.f32 %v1665_v1, %v1664_v2  ;;  %v1653_v14 = vadd.f32 %v3482_v53, %v1652_v5  ;;  %2029 = vmatpush.msra.mxu3 %v3389_v47  ;;  %2010 = vmatpush.msra.mxu2 %v3686_v55  ;;  %v3691_v47 = vld [vmem:[#allocation31_spill] sm:$0xff] }
 0x467   :  { %1970 = vmatpush.msra.mxu0 %v3684_v41  ;;  %1990 = vmatpush.msra.mxu1 %v3685_v45 }
 0x468   :  { %2258 = vtanh.f32 %v3506_v17  ;;  %v1657_v36 = vsel %vm1656_vm6, %v3482_v53, %v1653_v14  ;;  %2030 = vmatpush.msra.mxu3 %v3687_v58  ;;  %2011 = vmatpush.msra.mxu2 %v3407_v50 }
 0x469   :  { %1971 = vmatpush.msra.mxu0 %v3688_v59  ;;  %1991 = vmatpush.msra.mxu1 %v3689_v52  ;;  %v1662_v51 = vsel %vm1659_vm7, %v1661_v49, %v1657_v36  ;;  %v3694_v59 = vld [vmem:[#allocation34_spill] sm:$0xff] }
 0x46a   :  { %2031 = vmatpush.msra.mxu3 %v3409_v54  ;;  %2012 = vmatpush.msra.mxu2 %v3420_v27 }
 0x46b   :  { %1972 = vmatpush.msra.mxu0 %v3414_v6  ;;  %1992 = vmatpush.msra.mxu1 %v3416_v22  ;;  %v3692_v22 = vld [vmem:[#allocation33_spill] sm:$0xff] }
 0x46c   :  { %2032 = vmatpush.msra.mxu3 %v3422_v44  ;;  %2013 = vmatpush.msra.mxu2 %v3432_v26 }
 0x46d   :  { %1973 = vmatpush.msra.mxu0 %v3426_v0  ;;  %1993 = vmatpush.msra.mxu1 %v3428_v62 }
 0x46e   :  { %v2259_v13 = vpop.eup %2258  ;;  %2033 = vmatpush.msra.mxu3 %v3434_v23 }
 0x46f   :  { %v1668_v21 = vmul.f32 %v2259_v13, %v1662_v51  ;;  %v3695_v13 = vld [vmem:[#allocation35_spill] sm:$0xff] }
 0x471   :  { %1670 = vst [vmem:[#allocation13 + $0x28] sm:$0xff] %v1668_v21  ;;  %1756 = vmatmul.f32.vlgmr.msrb.gmra.mxu0 %v1668_v21  ;;  %1776 = vmatmul.f32.vlgmr.msrb.gmra.mxu1 %v1668_v21 }
 0x472   :  { %1796 = vmatmul.f32.vlgmr.msrb.gmra.mxu2 %v1668_v21  ;;  %1816 = vmatmul.f32.vlgmr.msrb.gmra.mxu3 %v1668_v21 }
 0x4ee   :  { %v1757_v32 = vpop.f32.mrf.mxu0  ;;  %v1777_v37 = vpop.f32.mrf.mxu1 }
 0x4ef   :  { %v1820_v7 = vadd.f32 %v1757_v32, %v3690_v46  ;;  %v1821_v25 = vadd.f32 %v1777_v37, %v3691_v47  ;;  %v3696_v46 = vld [vmem:[#allocation37_spill] sm:$0xff] }
 0x4f1   :  { %v2148_v50 = vmul.f32 -1.442695, %v1820_v7  ;;  %v2149_v54 = vmul.f32 -1.442695, %v1821_v25 }
 0x4f3   :  { %2260 = vpow2.f32 %v2148_v50 }
 0x4f4   :  { %2262 = vpow2.f32 %v2149_v54 }
 0x4f5   :  { %v1817_v6 = vpop.f32.mrf.mxu3  ;;  %v1797_v23 = vpop.f32.mrf.mxu2 }
 0x4f6   :  { %v1823_v27 = vadd.f32 %v1817_v6, %v3692_v22  ;;  %v1822_v3 = vadd.f32 %v1797_v23, %v3693_v34 }
 0x4f8   :  { %v2150_v44 = vmul.f32 -1.442695, %v1823_v27 }
 0x4f9   :  { %v2261_v0 = vpop.eup %2260 }
 0x4fa   :  { %v2263_v62 = vpop.eup %2262  ;;  %v1827_v63 = vadd.f32 1.0, %v2261_v0  ;;  %2264 = vpow2.f32 %v2150_v44 }
 0x4fb   :  { %v1846_v26 = vadd.f32 1.0, %v2263_v62  ;;  %v3697_v62 = vld [vmem:[#allocation36_spill] sm:$0xff] }
 0x4fc   :  { %2266 = vrcp.f32 %v1827_v63  ;;  %v1839_v11 = vand.u32 2147483648, %v1827_v63  ;;  %v1837_v16 = vand.u32 2147483647, %v1827_v63  ;;  %vm1833_vm10 = vweird.f32 %v1827_v63 }
 0x4fd   :  { %2268 = vrcp.f32 %v1846_v26  ;;  %v1858_v10 = vand.u32 2147483648, %v1846_v26  ;;  %v1856_v18 = vand.u32 2147483647, %v1846_v26  ;;  %vm1852_vm11 = vweird.f32 %v1846_v26 }
 0x4fe   :  { %v1840_v38 = vor.u32 1.1754944e-38, %v1839_v11  ;;  %vm1838_vm14 = vcmp.eq.f32.partialorder %v1837_v16, 8.507059e+37 }
 0x4ff   :  { %v1859_v60 = vor.u32 1.1754944e-38, %v1858_v10  ;;  %vm1857_vm15 = vcmp.eq.f32.partialorder %v1856_v18, 8.507059e+37 }
 0x500   :  { %v2265_v43 = vpop.eup %2264 }
 0x501   :  { %v1866_v39 = vadd.f32 1.0, %v2265_v43 }
 0x502   :  { %v2267_v24 = vpop.eup %2266 }
 0x503   :  { %v2269_v12 = vpop.eup %2268  ;;  %v1829_v28 = vmul.f32 %v2267_v24, %v1827_v63  ;;  %2270 = vrcp.f32 %v1866_v39  ;;  %vm1834_vm8 = vweird.f32 %v2267_v24  ;;  %v1878_v40 = vand.u32 2147483648, %v1866_v39 }
 0x504   :  { %v1848_v4 = vmul.f32 %v2269_v12, %v1846_v26  ;;  %2272 = vtanh.f32 %v1822_v3  ;;  %vm1853_vm9 = vweird.f32 %v2269_v12  ;;  %vm1835_vm12 = vmor %vm1833_vm10, %vm1834_vm8  ;;  %vm1872_vm1 = vweird.f32 %v1866_v39 }
 0x505   :  { %v1830_v42 = vsub.f32 1.0, %v1829_v28  ;;  %vm1854_vm13 = vmor %vm1852_vm11, %vm1853_vm9  ;;  %v1876_v33 = vand.u32 2147483647, %v1866_v39  ;;  %v1879_v41 = vor.u32 1.1754944e-38, %v1878_v40 }
 0x506   :  { %v1849_v29 = vsub.f32 1.0, %v1848_v4 }
 0x507   :  { %v1831_v15 = vmul.f32 %v2267_v24, %v1830_v42  ;;  %vm1877_vm3 = vcmp.eq.f32.partialorder %v1876_v33, 8.507059e+37 }
 0x508   :  { %v1850_v19 = vmul.f32 %v2269_v12, %v1849_v29 }
 0x509   :  { %v2271_v20 = vpop.eup %2270  ;;  %v1832_v53 = vadd.f32 %v2267_v24, %v1831_v15 }
 0x50a   :  { %v1851_v56 = vadd.f32 %v2269_v12, %v1850_v19  ;;  %v1868_v57 = vmul.f32 %v2271_v20, %v1866_v39  ;;  %v2273_v61 = vpop.eup %2272  ;;  %vm1873_vm0 = vweird.f32 %v2271_v20 }
 0x50b   :  { %v1836_v35 = vsel %vm1835_vm12, %v2267_v24, %v1832_v53  ;;  %vm1874_vm2 = vmor %vm1872_vm1, %vm1873_vm0 }
 0x50c   :  { %v1841_v31 = vsel %vm1838_vm14, %v1840_v38, %v1836_v35  ;;  %v1855_v30 = vsel %vm1854_vm13, %v2269_v12, %v1851_v56  ;;  %v1869_v48 = vsub.f32 1.0, %v1868_v57 }
 0x50d   :  { %v1860_v8 = vsel %vm1857_vm15, %v1859_v60, %v1855_v30  ;;  %v1883_v9 = vmul.f32 %v2273_v61, %v1841_v31 }
 0x50e   :  { %v1882_v1 = vmul.f32 %v1860_v8, %v3506_v17  ;;  %v1870_v2 = vmul.f32 %v2271_v20, %v1869_v48 }
 0x510   :  { %v3546_v5 = vadd.f32 %v1883_v9, %v1882_v1  ;;  %v1871_v14 = vadd.f32 %v2271_v20, %v1870_v2 }
 0x512   :  { %2274 = vtanh.f32 %v3546_v5  ;;  %v1875_v36 = vsel %vm1874_vm2, %v2271_v20, %v1871_v14 }
 0x513   :  { %v1880_v49 = vsel %vm1877_vm3, %v1879_v41, %v1875_v36 }
 0x518   :  { %v2275_v45 = vpop.eup %2274 }
 0x519   :  { %v1886_v55 = vmul.f32 %v2275_v45, %v1880_v49 }
 0x51b   :  { %1888 = vst [vmem:[#allocation13 + $0x30] sm:$0xff] %v1886_v55  ;;  %1974 = vmatmul.f32.vlgmr.msra.gmra.mxu0 %v1886_v55  ;;  %1994 = vmatmul.f32.vlgmr.msra.gmra.mxu1 %v1886_v55 }
 0x51c   :  { %2014 = vmatmul.f32.vlgmr.msra.gmra.mxu2 %v1886_v55  ;;  %2034 = vmatmul.f32.vlgmr.msra.gmra.mxu3 %v1886_v55 }
 0x598   :  { %v1975_v17 = vpop.f32.mrf.mxu0  ;;  %v1995_v58 = vpop.f32.mrf.mxu1 }
 0x599   :  { %v2038_v52 = vadd.f32 %v1975_v17, %v3694_v59  ;;  %v2039_v51 = vadd.f32 %v1995_v58, %v3695_v13 }
 0x59b   :  { %v2151_v21 = vmul.f32 -1.442695, %v2038_v52  ;;  %v2152_v32 = vmul.f32 -1.442695, %v2039_v51 }
 0x59d   :  { %2276 = vpow2.f32 %v2151_v21 }
 0x59e   :  { %2278 = vpow2.f32 %v2152_v32 }
 0x59f   :  { %v2035_v37 = vpop.f32.mrf.mxu3  ;;  %v2015_v22 = vpop.f32.mrf.mxu2 }
 0x5a0   :  { %v2041_v7 = vadd.f32 %v2035_v37, %v3696_v46  ;;  %v2040_v63 = vadd.f32 %v2015_v22, %v3697_v62 }
 0x5a2   :  { %v2153_v47 = vmul.f32 -1.442695, %v2041_v7 }
 0x5a3   :  { %v2277_v25 = vpop.eup %2276 }
 0x5a4   :  { %v2279_v50 = vpop.eup %2278  ;;  %v2045_v54 = vadd.f32 1.0, %v2277_v25  ;;  %2280 = vpow2.f32 %v2153_v47 }
 0x5a5   :  { %v2064_v6 = vadd.f32 1.0, %v2279_v50 }
 0x5a6   :  { %2282 = vrcp.f32 %v2045_v54  ;;  %v2057_v34 = vand.u32 2147483648, %v2045_v54  ;;  %v2055_v28 = vand.u32 2147483647, %v2045_v54  ;;  %vm2051_vm6 = vweird.f32 %v2045_v54 }
 0x5a7   :  { %2284 = vrcp.f32 %v2064_v6  ;;  %v2076_v3 = vand.u32 2147483648, %v2064_v6  ;;  %v2074_v42 = vand.u32 2147483647, %v2064_v6  ;;  %vm2070_vm7 = vweird.f32 %v2064_v6 }
 0x5a8   :  { %v2058_v10 = vor.u32 1.1754944e-38, %v2057_v34  ;;  %vm2056_vm10 = vcmp.eq.f32.partialorder %v2055_v28, 8.507059e+37 }
 0x5a9   :  { %v2077_v19 = vor.u32 1.1754944e-38, %v2076_v3  ;;  %vm2075_vm11 = vcmp.eq.f32.partialorder %v2074_v42, 8.507059e+37 }
 0x5aa   :  { %v2281_v27 = vpop.eup %2280 }
 0x5ab   :  { %v2084_v44 = vadd.f32 1.0, %v2281_v27 }
 0x5ac   :  { %v2283_v0 = vpop.eup %2282 }
 0x5ad   :  { %v2285_v26 = vpop.eup %2284  ;;  %v2047_v23 = vmul.f32 %v2283_v0, %v2045_v54  ;;  %2286 = vrcp.f32 %v2084_v44  ;;  %vm2052_vm4 = vweird.f32 %v2283_v0  ;;  %v2096_v48 = vand.u32 2147483648, %v2084_v44 }
 0x5ae   :  { %v2066_v43 = vmul.f32 %v2285_v26, %v2064_v6  ;;  %2288 = vtanh.f32 %v2040_v63  ;;  %vm2071_vm5 = vweird.f32 %v2285_v26  ;;  %vm2053_vm8 = vmor %vm2051_vm6, %vm2052_vm4  ;;  %vm2090_vm13 = vweird.f32 %v2084_v44 }
 0x5af   :  { %v2048_v39 = vsub.f32 1.0, %v2047_v23  ;;  %vm2072_vm9 = vmor %vm2070_vm7, %vm2071_vm5  ;;  %v2094_v8 = vand.u32 2147483647, %v2084_v44  ;;  %v2097_v1 = vor.u32 1.1754944e-38, %v2096_v48 }
 0x5b0   :  { %v2067_v24 = vsub.f32 1.0, %v2066_v43 }
 0x5b1   :  { %v2049_v12 = vmul.f32 %v2283_v0, %v2048_v39  ;;  %vm2095_vm15 = vcmp.eq.f32.partialorder %v2094_v8, 8.507059e+37 }
 0x5b2   :  { %v2068_v4 = vmul.f32 %v2285_v26, %v2067_v24 }
 0x5b3   :  { %v2287_v29 = vpop.eup %2286  ;;  %v2050_v11 = vadd.f32 %v2283_v0, %v2049_v12 }
 0x5b4   :  { %v2069_v15 = vadd.f32 %v2285_v26, %v2068_v4  ;;  %v2086_v16 = vmul.f32 %v2287_v29, %v2084_v44  ;;  %v2289_v20 = vpop.eup %2288  ;;  %vm2091_vm12 = vweird.f32 %v2287_v29 }
 0x5b5   :  { %v2054_v18 = vsel %vm2053_vm8, %v2283_v0, %v2050_v11  ;;  %vm2092_vm14 = vmor %vm2090_vm13, %vm2091_vm12 }
 0x5b6   :  { %v2059_v53 = vsel %vm2056_vm10, %v2058_v10, %v2054_v18  ;;  %v2073_v38 = vsel %vm2072_vm9, %v2285_v26, %v2069_v15  ;;  %v2087_v56 = vsub.f32 1.0, %v2086_v16 }
 0x5b7   :  { %v2078_v57 = vsel %vm2075_vm11, %v2077_v19, %v2073_v38  ;;  %v2101_v60 = vmul.f32 %v2289_v20, %v2059_v53 }
 0x5b8   :  { %v2100_v35 = vmul.f32 %v2078_v57, %v3546_v5  ;;  %v2088_v61 = vmul.f32 %v2287_v29, %v2087_v56 }
 0x5ba   :  { %v2102_v31 = vadd.f32 %v2101_v60, %v2100_v35  ;;  %v2089_v30 = vadd.f32 %v2287_v29, %v2088_v61 }
 0x5bc   :  { %2290 = vtanh.f32 %v2102_v31  ;;  %v2093_v9 = vsel %vm2092_vm14, %v2287_v29, %v2089_v30 }
 0x5bd   :  { %v2098_v5 = vsel %vm2095_vm15, %v2097_v1, %v2093_v9 }
 0x5c2   :  { %v2291_v2 = vpop.eup %2290 }
 0x5c3   :  { %v2104_v14 = vmul.f32 %v2291_v2, %v2098_v5 }
 0x5c5   :  { %2106 = vst [vmem:[#allocation13 + $0x38] sm:$0xff] %v2104_v14 }
 0x5c6   :  { %2121 = dma.vmem_to_hbm [thread:$0]  %s2114_s3, 1024, %s2116_s13, [#allocation7], %s2424_s27, %s2424_s27, %s2425_s28  }
 0x5c7   :  { %2418 = dma.done.wait [#allocation7], 1024  }
 0x5c8   :  { %2419 = vsyncadd [#allocation7], 4294966272 }
 0x5c9   :  { %2126 = vsyncpa [#allocation6], 1 }
 0x5ca   :  { %2127 = vsyncpa [#allocation9], 1 }
 0x5cb   :  { %2128 = vsyncpa [#allocation12], 1 }
 0x5cc   :  { %2129 = vsyncpa [#allocation7], 1 }

</bundles_post_ra>
